<compile_context>
chip_gen: v5e
topology: v5e:2x2
jax: 0.10.0
libtpu: 0.0.40
codegen_flags: <defaults>
</compile_context>

<pallas_src>
import functools

import numpy as np
import jax
import jax.numpy as jnp
from jax.experimental import pallas as pl
from jax.experimental.pallas import tpu as pltpu


# -----------------------------------------------------------------------------
# Lane-roll helper (review item #1: shifts on XLU/VPU instead of MXU matmuls)
# -----------------------------------------------------------------------------
@functools.lru_cache(maxsize=None)
def _make_lane_roller():
    """Return roll_by(a, d) with roll_by(a, d)[..., p] == a[..., (p + d) % N].

    Uses pltpu.roll (XLU lane rotate).  A tiny probe kernel pins down the
    rotate direction convention once; if the primitive is unavailable in the
    running Pallas build we fall back to jnp.roll (slice+concat), which is
    still layout/VPU work and never touches the MXU.
    """
    try:
        def probe(x_ref, o_ref):
            o_ref[...] = pltpu.roll(x_ref[...], 1, axis=1)

        x = jnp.tile(jnp.arange(128, dtype=jnp.float32)[None, :], (8, 1))
        y = pl.pallas_call(
            probe, out_shape=jax.ShapeDtypeStruct((8, 128), jnp.float32))(x)
        np_roll_convention = bool(jax.device_get(y)[0, 1] == 0.0)
        if np_roll_convention:   # pltpu.roll(x, s)[p] == x[(p - s) % N]
            return lambda a, d: pltpu.roll(a, (-d) % a.shape[-1], axis=a.ndim - 1)
        return lambda a, d: pltpu.roll(a, d % a.shape[-1], axis=a.ndim - 1)
    except Exception:            # defensive fallback, identical semantics
        return lambda a, d: jnp.roll(a, -d, axis=-1)


# -----------------------------------------------------------------------------
# Constant operators, built once per (C, H, W) and cached (review item #9)
# -----------------------------------------------------------------------------
@functools.lru_cache(maxsize=None)
def _get_constants(C, H, W):
    WF = W // 2 + 1
    HW, HWF = H * W, H * WF
    HWFP = max(128, ((HWF + 127) // 128) * 128)     # 144 -> 256 for 16x16 (#3)

    h, w = np.arange(H), np.arange(W)
    u, v = np.arange(H), np.arange(WF)

    # Forward rfft2 (norm='backward' -> unscaled):  Yr = x @ Mr,  Yi = x @ Mi.
    theta = ((2.0 * np.pi / H) * np.outer(h, u)[:, None, :, None]
             + (2.0 * np.pi / W) * np.outer(w, v)[None, :, None, :])   # (H,W,H,WF)
    Mr = np.zeros((HW, HWFP), np.float32)
    Mi = np.zeros((HW, HWFP), np.float32)
    Mr[:, :HWF] = np.cos(theta).reshape(HW, HWF)
    Mi[:, :HWF] = (-np.sin(theta)).reshape(HW, HWF)

    # Inverse irfft2 (norm='backward' -> 1/(H*W)):  x = Gr @ IMr + Gi @ IMi.
    ang_h = 2.0 * np.pi * np.outer(h, u) / H
    ichc, ichs = np.cos(ang_h) / H, np.sin(ang_h) / H
    cv = np.full((WF,), 2.0)
    cv[0] = 1.0
    if W % 2 == 0:
        cv[-1] = 1.0
    ang_w = 2.0 * np.pi * np.outer(v, w) / W
    icw = cv[:, None] * np.cos(ang_w) / W
    isw = -cv[:, None] * np.sin(ang_w) / W
    IMr = np.zeros((HWFP, HW), np.float32)
    IMi = np.zeros((HWFP, HW), np.float32)
    IMr[:HWF] = (np.einsum('hu,vw->uvhw', ichc, icw)
                 + np.einsum('hu,vw->uvhw', ichs, isw)).reshape(HWF, HW)
    IMi[:HWF] = (-np.einsum('hu,vw->uvhw', ichs, icw)
                 + np.einsum('hu,vw->uvhw', ichc, isw)).reshape(HWF, HW)

    # 0/1 validity masks for the 9 zero-padded 3x3 shifts (image boundary).
    masks = np.zeros((9, C, HW), np.float32)
    s = 0
    for dy in (-1, 0, 1):
        for dx in (-1, 0, 1):
            m = np.zeros((H, W), np.float32)
            m[max(0, -dy):H - max(0, dy), max(0, -dx):W - max(0, dx)] = 1.0
            masks[s] = np.broadcast_to(m.reshape(1, HW), (C, HW))
            s += 1

    f32 = jnp.float32
    return (jnp.asarray(Mr, f32), jnp.asarray(Mi, f32),
            jnp.asarray(IMr, f32), jnp.asarray(IMi, f32),
            jnp.asarray(masks, f32), HWFP)


# -----------------------------------------------------------------------------
# Kernel: one image (C, H*W) per grid step
# -----------------------------------------------------------------------------
def _make_kernel(C, H, W):
    HW = H * W
    roll_by = _make_lane_roller()
    # flat source offsets for the 9 taps, raster order over (ky, kx)
    deltas = tuple(dy * W + dx for dy in (-1, 0, 1) for dx in (-1, 0, 1))

    def kernel(x_ref, mr_ref, mi_ref, imr_ref, imi_ref, mask_ref,
               w1_ref, w2_ref, wf1_ref, wf2_ref, out_ref):
        f32, bf16 = jnp.float32, jnp.bfloat16
        x = x_ref[...]                       # (C, HW) f32
        masks = mask_ref[...]                # (9, C, HW) f32 (0/1)

        def conv3x3(inp, w_ref):
            # inp (C, HW) f32; w_ref (9, C, C) bf16.  Shifts = lane roll + mask
            # (XLU/VPU); channel mixing = 9 tiny bf16 MXU matmuls, f32 accum.
            w = w_ref[...]
            acc = None
            for s, d in enumerate(deltas):
                if d == 0:
                    shifted = inp
                else:
                    shifted = roll_by(inp, d) * masks[s]
                term = jnp.dot(w[s], shifted.astype(bf16),
                               preferred_element_type=f32)
                acc = term if acc is None else acc + term
            return acc

        # ---------------- spatial branch: conv3x3 -> relu -> conv3x3 ----------
        t1 = jnp.maximum(conv3x3(x, w1_ref), 0.0)
        main = conv3x3(t1, w2_ref)

        # ---------------- frequency branch ------------------------------------
        # forward rDFT (f32 matmuls for accuracy; zero-padded freq columns)
        yr = jnp.dot(x, mr_ref[...], preferred_element_type=f32)   # (C, HWFP)
        yi = jnp.dot(x, mi_ref[...], preferred_element_type=f32)   # (C, HWFP)

        wf1 = wf1_ref[...]                   # (2C, 2C) bf16
        wf2 = wf2_ref[...]                   # (2C, 2C) bf16

        def mix(wm, ar, ai):
            # 1x1 conv on [real; imag] channels, applied as 4 (C,C) blocks (#8)
            r = (jnp.dot(wm[:C, :C], ar, preferred_element_type=f32)
                 + jnp.dot(wm[:C, C:], ai, preferred_element_type=f32))
            i = (jnp.dot(wm[C:, :C], ar, preferred_element_type=f32)
                 + jnp.dot(wm[C:, C:], ai, preferred_element_type=f32))
            return r, i

        g1r, g1i = mix(wf1, yr.astype(bf16), yi.astype(bf16))
        g1r = jnp.maximum(g1r, 0.0)          # f32 epilogue (v5e-safe)
        g1i = jnp.maximum(g1i, 0.0)
        g2r, g2i = mix(wf2, g1r.astype(bf16), g1i.astype(bf16))

        # inverse rDFT (f32 matmuls; zero-padded rows contribute nothing)
        fft_out = (jnp.dot(g2r, imr_ref[...], preferred_element_type=f32)
                   + jnp.dot(g2i, imi_ref[...], preferred_element_type=f32))

        # ---------------- combine: main(x) + x + irfft2(...) ------------------
        out_ref[...] = main + x + fft_out    # (C, 256) lane-dense store

    return kernel


@functools.lru_cache(maxsize=None)
def _get_call(B, C, H, W, HWFP, single_buffer_constants):
    HW = H * W
    kernel = _make_kernel(C, H, W)

    ckw = {}
    if single_buffer_constants:
        # Grid-invariant operands: one VMEM buffer instead of two (#6).
        ckw = dict(pipeline_mode=pl.Buffered(1))

    def cspec(shape):
        return pl.BlockSpec(shape, lambda b, _n=len(shape): (0,) * _n, **ckw)

    in_specs = [
        pl.BlockSpec((None, C, HW), lambda b: (b, 0, 0)),   # x: one image/step
        cspec((HW, HWFP)),        # Mr
        cspec((HW, HWFP)),        # Mi
        cspec((HWFP, HW)),        # IMr
        cspec((HWFP, HW)),        # IMi
        cspec((9, C, HW)),        # shift masks
        cspec((9, C, C)),         # conv1 taps (bf16)
        cspec((9, C, C)),         # conv2 taps (bf16)
        cspec((2 * C, 2 * C)),    # freq conv1 (bf16)
        cspec((2 * C, 2 * C)),    # freq conv2 (bf16)
    ]
    out_spec = pl.BlockSpec((None, C, HW), lambda b: (b, 0, 0))

    return pl.pallas_call(
        kernel,
        out_shape=jax.ShapeDtypeStruct((B, C, HW), jnp.float32),
        grid=(B,),
        in_specs=in_specs,
        out_specs=out_spec,
        compiler_params=pltpu.CompilerParams(
            dimension_semantics=("parallel",),          # v7x: 2 TC sharding (#5)
            vmem_limit_bytes=32 * 1024 * 1024,          # explicit budget (#6/#7)
        ),
    )


_SINGLE_BUFFER_OK = None     # probed once: does this Pallas accept Buffered(1)?


# -----------------------------------------------------------------------------
# Wrapper
# -----------------------------------------------------------------------------
def resfft_block(x, w1, w2, wf1, wf2):
    global _SINGLE_BUFFER_OK
    B, C, H, W = x.shape
    assert w1.shape == (C, C, 3, 3) and w2.shape == (C, C, 3, 3)
    assert wf1.shape == (2 * C, 2 * C, 1, 1) and wf2.shape == (2 * C, 2 * C, 1, 1)
    HW = H * W

    Mr, Mi, IMr, IMi, masks, HWFP = _get_constants(C, H, W)

    bf16 = jnp.bfloat16
    # Per-call weight prep is just transpose/cast (no kron, no zero padding).
    taps1 = jnp.transpose(w1.astype(bf16), (2, 3, 0, 1)).reshape(9, C, C)
    taps2 = jnp.transpose(w2.astype(bf16), (2, 3, 0, 1)).reshape(9, C, C)
    m1 = wf1[:, :, 0, 0].astype(bf16)
    m2 = wf2[:, :, 0, 0].astype(bf16)

    xf = x.reshape(B, C, HW).astype(jnp.float32)
    args = (xf, Mr, Mi, IMr, IMi, masks, taps1, taps2, m1, m2)

    def run(single_buffer):
        call = _get_call(B, C, H, W, HWFP, single_buffer)
        return jax.block_until_ready(call(*args))

    if _SINGLE_BUFFER_OK is None:
        try:
            out = run(True)
            _SINGLE_BUFFER_OK = True
        except Exception:
            # pipeline_mode=pl.Buffered(1) unsupported on this Pallas build;
            # default double buffering (constants total ~1.2 MB, harmless).
            _SINGLE_BUFFER_OK = False
            out = run(False)
    else:
        out = run(_SINGLE_BUFFER_OK)

    return out.reshape(B, C, H, W)


# -----------------------------------------------------------------------------
# Pure-JAX reference (for verification only)
# -----------------------------------------------------------------------------
def resfft_reference(x, w1, w2, wf1, wf2):
    dn = ('NCHW', 'OIHW', 'NCHW')

    def conv(a, w):
        return jax.lax.conv_general_dilated(a, w, (1, 1), 'SAME',
                                            dimension_numbers=dn)

    H, W = x.shape[2], x.shape[3]
    t = jnp.maximum(conv(x, w1), 0.0)
    t = conv(t, w2)

    y = jnp.fft.rfft2(x, norm='backward')
    yf = jnp.concatenate([y.real, y.imag], axis=1)
    g = jnp.maximum(conv(yf, wf1), 0.0)
    g = conv(g, wf2)
    yr, yi = jnp.split(g, 2, axis=1)
    yo = jnp.fft.irfft2(yr + 1j * yi, s=(H, W), norm='backward')
    return t + x + yo


if __name__ == "__main__":
    key = jax.random.PRNGKey(0)
    B, C, H, W = 2, 4, 16, 16            # n_feat = 4
    k = jax.random.split(key, 5)

    x = jax.random.normal(k[0], (B, C, H, W), jnp.float32)
    # TODO(synk): torch orthogonal_ init is replaced by deterministic gaussians
    # (synthetic weights; only shapes/semantics of the forward pass matter here).
    w1 = 0.1 * jax.random.normal(k[1], (C, C, 3, 3), jnp.float32)
    w2 = 0.1 * jax.random.normal(k[2], (C, C, 3, 3), jnp.float32)
    wf1 = 0.1 * jax.random.normal(k[3], (2 * C, 2 * C, 1, 1), jnp.float32)
    wf2 = 0.1 * jax.random.normal(k[4], (2 * C, 2 * C, 1, 1), jnp.float32)

    out = resfft_block(x, w1, w2, wf1, wf2)
    out = jax.block_until_ready(out)

    ref = resfft_reference(x, w1, w2, wf1, wf2)
    err = float(jnp.max(jnp.abs(out - ref)))
    # bf16 MXU operands in the conv-tap / 1x1-freq matmuls (DFT matmuls stay
    # f32): expected max-abs deviation vs. the f32 reference is ~5e-3.
    assert err < 2e-2, f"mismatch vs reference, max abs err = {err}"
    print("KERNEL_OK")
</pallas_src>

<mosaic_0001>
module attributes {stable_mosaic.version = 11 : i64} {
  func.func @probe(%arg0: memref<8x128xf32, #tpu.memory_space<vmem>>, %arg1: memref<8x128xf32, #tpu.memory_space<vmem>>) attributes {dimension_semantics = [], scalar_prefetch = 0 : i64, scratch_operands = 0 : i64, tpu.core_type = #tpu.core_type<tc>} {
    %c0 = arith.constant 0 : index
    %c0_0 = arith.constant 0 : index
    %0 = vector.load %arg0[%c0, %c0_0] : memref<8x128xf32, #tpu.memory_space<vmem>>, vector<8x128xf32>
    %c1_i32 = arith.constant 1 : i32
    %1 = tpu.dynamic_rotate %0 by %c1_i32 dim 1 : vector<8x128xf32>, i32 -> vector<8x128xf32>
    %c0_1 = arith.constant 0 : index
    %c0_2 = arith.constant 0 : index
    %2 = vector.load %arg1[%c0_1, %c0_2] : memref<8x128xf32, #tpu.memory_space<vmem>>, vector<8x128xf32>
    tpu.vector_store %arg1[%c0_1, %c0_2], %1 {strides = array<i32>} : memref<8x128xf32, #tpu.memory_space<vmem>>, vector<8x128xf32>,
    return
  }
}

module attributes {stable_mosaic.version = 11 : i64} {
  func.func @kernel(%arg0: i32, %arg1: memref<1x4x256xf32, #tpu.memory_space<vmem>>, %arg2: memref<256x256xf32, #tpu.memory_space<vmem>>, %arg3: memref<256x256xf32, #tpu.memory_space<vmem>>, %arg4: memref<256x256xf32, #tpu.memory_space<vmem>>, %arg5: memref<256x256xf32, #tpu.memory_space<vmem>>, %arg6: memref<9x4x256xf32, #tpu.memory_space<vmem>>, %arg7: memref<9x4x4xbf16, #tpu.memory_space<vmem>>, %arg8: memref<9x4x4xbf16, #tpu.memory_space<vmem>>, %arg9: memref<8x8xbf16, #tpu.memory_space<vmem>>, %arg10: memref<8x8xbf16, #tpu.memory_space<vmem>>, %arg11: memref<1x4x256xf32, #tpu.memory_space<vmem>>) attributes {dimension_semantics = [#tpu.dimension_semantics<parallel>], iteration_bounds = array<i64: 2>, scalar_prefetch = 0 : i64, scratch_operands = 0 : i64, tpu.core_type = #tpu.core_type<tc>, window_params = [{transform_indices = @transform_0, window_bounds = array<i64: 1, 4, 256>}, {pipeline_mode = #tpu.pipeline_mode<synchronous>, transform_indices = @transform_1, window_bounds = array<i64: 256, 256>}, {pipeline_mode = #tpu.pipeline_mode<synchronous>, transform_indices = @transform_2, window_bounds = array<i64: 256, 256>}, {pipeline_mode = #tpu.pipeline_mode<synchronous>, transform_indices = @transform_3, window_bounds = array<i64: 256, 256>}, {pipeline_mode = #tpu.pipeline_mode<synchronous>, transform_indices = @transform_4, window_bounds = array<i64: 256, 256>}, {pipeline_mode = #tpu.pipeline_mode<synchronous>, transform_indices = @transform_5, window_bounds = array<i64: 9, 4, 256>}, {pipeline_mode = #tpu.pipeline_mode<synchronous>, transform_indices = @transform_6, window_bounds = array<i64: 9, 4, 4>}, {pipeline_mode = #tpu.pipeline_mode<synchronous>, transform_indices = @transform_7, window_bounds = array<i64: 9, 4, 4>}, {pipeline_mode = #tpu.pipeline_mode<synchronous>, transform_indices = @transform_8, window_bounds = array<i64: 8, 8>}, {pipeline_mode = #tpu.pipeline_mode<synchronous>, transform_indices = @transform_9, window_bounds = array<i64: 8, 8>}, {transform_indices = @transform_10, window_bounds = array<i64: 1, 4, 256>}]} {
    %c0 = arith.constant 0 : index
    %c0_0 = arith.constant 0 : index
    %c0_1 = arith.constant 0 : index
    %0 = vector.load %arg1[%c0, %c0_0, %c0_1] : memref<1x4x256xf32, #tpu.memory_space<vmem>>, vector<1x4x256xf32>
    %1 = vector.shape_cast %0 : vector<1x4x256xf32> to vector<4x256xf32>
    %c0_2 = arith.constant 0 : index
    %c0_3 = arith.constant 0 : index
    %c0_4 = arith.constant 0 : index
    %2 = vector.load %arg6[%c0_2, %c0_3, %c0_4] : memref<9x4x256xf32, #tpu.memory_space<vmem>>, vector<9x4x256xf32>
    %c0_5 = arith.constant 0 : index
    %c0_6 = arith.constant 0 : index
    %c0_7 = arith.constant 0 : index
    %3 = vector.load %arg7[%c0_5, %c0_6, %c0_7] : memref<9x4x4xbf16, #tpu.memory_space<vmem>>, vector<9x4x4xbf16>
    %4 = vector.extract_strided_slice %1 {offsets = [0, 239], sizes = [4, 17], strides = [1, 1]} : vector<4x256xf32> to vector<4x17xf32>
    %5 = vector.extract_strided_slice %1 {offsets = [0, 0], sizes = [4, 239], strides = [1, 1]} : vector<4x256xf32> to vector<4x239xf32>
    %6 = tpu.concatenate %4, %5 in 1 : vector<4x17xf32>, vector<4x239xf32> -> vector<4x256xf32>
    %7 = vector.extract_strided_slice %2 {offsets = [0, 0, 0], sizes = [1, 4, 256], strides = [1, 1, 1]} : vector<9x4x256xf32> to vector<1x4x256xf32>
    %8 = vector.shape_cast %7 : vector<1x4x256xf32> to vector<4x256xf32>
    %9 = arith.mulf %6, %8 : vector<4x256xf32>
    %10 = vector.extract_strided_slice %3 {offsets = [0, 0, 0], sizes = [1, 4, 4], strides = [1, 1, 1]} : vector<9x4x4xbf16> to vector<1x4x4xbf16>
    %11 = vector.shape_cast %10 : vector<1x4x4xbf16> to vector<4x4xbf16>
    %12 = arith.truncf %9 : vector<4x256xf32> to vector<4x256xbf16>
    %cst = arith.constant dense<0.000000e+00> : vector<4x256xf32>
    %13 = tpu.matmul %11, %12, %cst {dimension_numbers = #tpu.dot_dimension_numbers<[1], [0], [0], [1], [0, 0, 1, 1], [], []>} : vector<4x4xbf16>, vector<4x256xbf16>, vector<4x256xf32> -> vector<4x256xf32>
    %14 = vector.extract_strided_slice %1 {offsets = [0, 240], sizes = [4, 16], strides = [1, 1]} : vector<4x256xf32> to vector<4x16xf32>
    %15 = vector.extract_strided_slice %1 {offsets = [0, 0], sizes = [4, 240], strides = [1, 1]} : vector<4x256xf32> to vector<4x240xf32>
    %16 = tpu.concatenate %14, %15 in 1 : vector<4x16xf32>, vector<4x240xf32> -> vector<4x256xf32>
    %17 = vector.extract_strided_slice %2 {offsets = [1, 0, 0], sizes = [1, 4, 256], strides = [1, 1, 1]} : vector<9x4x256xf32> to vector<1x4x256xf32>
    %18 = vector.shape_cast %17 : vector<1x4x256xf32> to vector<4x256xf32>
    %19 = arith.mulf %16, %18 : vector<4x256xf32>
    %20 = vector.extract_strided_slice %3 {offsets = [1, 0, 0], sizes = [1, 4, 4], strides = [1, 1, 1]} : vector<9x4x4xbf16> to vector<1x4x4xbf16>
    %21 = vector.shape_cast %20 : vector<1x4x4xbf16> to vector<4x4xbf16>
    %22 = arith.truncf %19 : vector<4x256xf32> to vector<4x256xbf16>
    %cst_8 = arith.constant dense<0.000000e+00> : vector<4x256xf32>
    %23 = tpu.matmul %21, %22, %cst_8 {dimension_numbers = #tpu.dot_dimension_numbers<[1], [0], [0], [1], [0, 0, 1, 1], [], []>} : vector<4x4xbf16>, vector<4x256xbf16>, vector<4x256xf32> -> vector<4x256xf32>
    %24 = arith.addf %13, %23 : vector<4x256xf32>
    %25 = vector.extract_strided_slice %1 {offsets = [0, 241], sizes = [4, 15], strides = [1, 1]} : vector<4x256xf32> to vector<4x15xf32>
    %26 = vector.extract_strided_slice %1 {offsets = [0, 0], sizes = [4, 241], strides = [1, 1]} : vector<4x256xf32> to vector<4x241xf32>
    %27 = tpu.concatenate %25, %26 in 1 : vector<4x15xf32>, vector<4x241xf32> -> vector<4x256xf32>
    %28 = vector.extract_strided_slice %2 {offsets = [2, 0, 0], sizes = [1, 4, 256], strides = [1, 1, 1]} : vector<9x4x256xf32> to vector<1x4x256xf32>
    %29 = vector.shape_cast %28 : vector<1x4x256xf32> to vector<4x256xf32>
    %30 = arith.mulf %27, %29 : vector<4x256xf32>
    %31 = vector.extract_strided_slice %3 {offsets = [2, 0, 0], sizes = [1, 4, 4], strides = [1, 1, 1]} : vector<9x4x4xbf16> to vector<1x4x4xbf16>
    %32 = vector.shape_cast %31 : vector<1x4x4xbf16> to vector<4x4xbf16>
    %33 = arith.truncf %30 : vector<4x256xf32> to vector<4x256xbf16>
    %cst_9 = arith.constant dense<0.000000e+00> : vector<4x256xf32>
    %34 = tpu.matmul %32, %33, %cst_9 {dimension_numbers = #tpu.dot_dimension_numbers<[1], [0], [0], [1], [0, 0, 1, 1], [], []>} : vector<4x4xbf16>, vector<4x256xbf16>, vector<4x256xf32> -> vector<4x256xf32>
    %35 = arith.addf %24, %34 : vector<4x256xf32>
    %36 = vector.extract_strided_slice %1 {offsets = [0, 255], sizes = [4, 1], strides = [1, 1]} : vector<4x256xf32> to vector<4x1xf32>
    %37 = vector.extract_strided_slice %1 {offsets = [0, 0], sizes = [4, 255], strides = [1, 1]} : vector<4x256xf32> to vector<4x255xf32>
    %38 = tpu.concatenate %36, %37 in 1 : vector<4x1xf32>, vector<4x255xf32> -> vector<4x256xf32>
    %39 = vector.extract_strided_slice %2 {offsets = [3, 0, 0], sizes = [1, 4, 256], strides = [1, 1, 1]} : vector<9x4x256xf32> to vector<1x4x256xf32>
    %40 = vector.shape_cast %39 : vector<1x4x256xf32> to vector<4x256xf32>
    %41 = arith.mulf %38, %40 : vector<4x256xf32>
    %42 = vector.extract_strided_slice %3 {offsets = [3, 0, 0], sizes = [1, 4, 4], strides = [1, 1, 1]} : vector<9x4x4xbf16> to vector<1x4x4xbf16>
    %43 = vector.shape_cast %42 : vector<1x4x4xbf16> to vector<4x4xbf16>
    %44 = arith.truncf %41 : vector<4x256xf32> to vector<4x256xbf16>
    %cst_10 = arith.constant dense<0.000000e+00> : vector<4x256xf32>
    %45 = tpu.matmul %43, %44, %cst_10 {dimension_numbers = #tpu.dot_dimension_numbers<[1], [0], [0], [1], [0, 0, 1, 1], [], []>} : vector<4x4xbf16>, vector<4x256xbf16>, vector<4x256xf32> -> vector<4x256xf32>
    %46 = arith.addf %35, %45 : vector<4x256xf32>
    %47 = vector.extract_strided_slice %3 {offsets = [4, 0, 0], sizes = [1, 4, 4], strides = [1, 1, 1]} : vector<9x4x4xbf16> to vector<1x4x4xbf16>
    %48 = vector.shape_cast %47 : vector<1x4x4xbf16> to vector<4x4xbf16>
    %49 = arith.truncf %1 : vector<4x256xf32> to vector<4x256xbf16>
    %cst_11 = arith.constant dense<0.000000e+00> : vector<4x256xf32>
    %50 = tpu.matmul %48, %49, %cst_11 {dimension_numbers = #tpu.dot_dimension_numbers<[1], [0], [0], [1], [0, 0, 1, 1], [], []>} : vector<4x4xbf16>, vector<4x256xbf16>, vector<4x256xf32> -> vector<4x256xf32>
    %51 = arith.addf %46, %50 : vector<4x256xf32>
    %52 = vector.extract_strided_slice %1 {offsets = [0, 1], sizes = [4, 255], strides = [1, 1]} : vector<4x256xf32> to vector<4x255xf32>
    %53 = vector.extract_strided_slice %1 {offsets = [0, 0], sizes = [4, 1], strides = [1, 1]} : vector<4x256xf32> to vector<4x1xf32>
    %54 = tpu.concatenate %52, %53 in 1 : vector<4x255xf32>, vector<4x1xf32> -> vector<4x256xf32>
    %55 = vector.extract_strided_slice %2 {offsets = [5, 0, 0], sizes = [1, 4, 256], strides = [1, 1, 1]} : vector<9x4x256xf32> to vector<1x4x256xf32>
    %56 = vector.shape_cast %55 : vector<1x4x256xf32> to vector<4x256xf32>
    %57 = arith.mulf %54, %56 : vector<4x256xf32>
    %58 = vector.extract_strided_slice %3 {offsets = [5, 0, 0], sizes = [1, 4, 4], strides = [1, 1, 1]} : vector<9x4x4xbf16> to vector<1x4x4xbf16>
    %59 = vector.shape_cast %58 : vector<1x4x4xbf16> to vector<4x4xbf16>
    %60 = arith.truncf %57 : vector<4x256xf32> to vector<4x256xbf16>
    %cst_12 = arith.constant dense<0.000000e+00> : vector<4x256xf32>
    %61 = tpu.matmul %59, %60, %cst_12 {dimension_numbers = #tpu.dot_dimension_numbers<[1], [0], [0], [1], [0, 0, 1, 1], [], []>} : vector<4x4xbf16>, vector<4x256xbf16>, vector<4x256xf32> -> vector<4x256xf32>
    %62 = arith.addf %51, %61 : vector<4x256xf32>
    %63 = vector.extract_strided_slice %1 {offsets = [0, 15], sizes = [4, 241], strides = [1, 1]} : vector<4x256xf32> to vector<4x241xf32>
    %64 = vector.extract_strided_slice %1 {offsets = [0, 0], sizes = [4, 15], strides = [1, 1]} : vector<4x256xf32> to vector<4x15xf32>
    %65 = tpu.concatenate %63, %64 in 1 : vector<4x241xf32>, vector<4x15xf32> -> vector<4x256xf32>
    %66 = vector.extract_strided_slice %2 {offsets = [6, 0, 0], sizes = [1, 4, 256], strides = [1, 1, 1]} : vector<9x4x256xf32> to vector<1x4x256xf32>
    %67 = vector.shape_cast %66 : vector<1x4x256xf32> to vector<4x256xf32>
    %68 = arith.mulf %65, %67 : vector<4x256xf32>
    %69 = vector.extract_strided_slice %3 {offsets = [6, 0, 0], sizes = [1, 4, 4], strides = [1, 1, 1]} : vector<9x4x4xbf16> to vector<1x4x4xbf16>
    %70 = vector.shape_cast %69 : vector<1x4x4xbf16> to vector<4x4xbf16>
    %71 = arith.truncf %68 : vector<4x256xf32> to vector<4x256xbf16>
    %cst_13 = arith.constant dense<0.000000e+00> : vector<4x256xf32>
    %72 = tpu.matmul %70, %71, %cst_13 {dimension_numbers = #tpu.dot_dimension_numbers<[1], [0], [0], [1], [0, 0, 1, 1], [], []>} : vector<4x4xbf16>, vector<4x256xbf16>, vector<4x256xf32> -> vector<4x256xf32>
    %73 = arith.addf %62, %72 : vector<4x256xf32>
    %74 = vector.extract_strided_slice %1 {offsets = [0, 16], sizes = [4, 240], strides = [1, 1]} : vector<4x256xf32> to vector<4x240xf32>
    %75 = vector.extract_strided_slice %1 {offsets = [0, 0], sizes = [4, 16], strides = [1, 1]} : vector<4x256xf32> to vector<4x16xf32>
    %76 = tpu.concatenate %74, %75 in 1 : vector<4x240xf32>, vector<4x16xf32> -> vector<4x256xf32>
    %77 = vector.extract_strided_slice %2 {offsets = [7, 0, 0], sizes = [1, 4, 256], strides = [1, 1, 1]} : vector<9x4x256xf32> to vector<1x4x256xf32>
    %78 = vector.shape_cast %77 : vector<1x4x256xf32> to vector<4x256xf32>
    %79 = arith.mulf %76, %78 : vector<4x256xf32>
    %80 = vector.extract_strided_slice %3 {offsets = [7, 0, 0], sizes = [1, 4, 4], strides = [1, 1, 1]} : vector<9x4x4xbf16> to vector<1x4x4xbf16>
    %81 = vector.shape_cast %80 : vector<1x4x4xbf16> to vector<4x4xbf16>
    %82 = arith.truncf %79 : vector<4x256xf32> to vector<4x256xbf16>
    %cst_14 = arith.constant dense<0.000000e+00> : vector<4x256xf32>
    %83 = tpu.matmul %81, %82, %cst_14 {dimension_numbers = #tpu.dot_dimension_numbers<[1], [0], [0], [1], [0, 0, 1, 1], [], []>} : vector<4x4xbf16>, vector<4x256xbf16>, vector<4x256xf32> -> vector<4x256xf32>
    %84 = arith.addf %73, %83 : vector<4x256xf32>
    %85 = vector.extract_strided_slice %1 {offsets = [0, 17], sizes = [4, 239], strides = [1, 1]} : vector<4x256xf32> to vector<4x239xf32>
    %86 = vector.extract_strided_slice %1 {offsets = [0, 0], sizes = [4, 17], strides = [1, 1]} : vector<4x256xf32> to vector<4x17xf32>
    %87 = tpu.concatenate %85, %86 in 1 : vector<4x239xf32>, vector<4x17xf32> -> vector<4x256xf32>
    %88 = vector.extract_strided_slice %2 {offsets = [8, 0, 0], sizes = [1, 4, 256], strides = [1, 1, 1]} : vector<9x4x256xf32> to vector<1x4x256xf32>
    %89 = vector.shape_cast %88 : vector<1x4x256xf32> to vector<4x256xf32>
    %90 = arith.mulf %87, %89 : vector<4x256xf32>
    %91 = vector.extract_strided_slice %3 {offsets = [8, 0, 0], sizes = [1, 4, 4], strides = [1, 1, 1]} : vector<9x4x4xbf16> to vector<1x4x4xbf16>
    %92 = vector.shape_cast %91 : vector<1x4x4xbf16> to vector<4x4xbf16>
    %93 = arith.truncf %90 : vector<4x256xf32> to vector<4x256xbf16>
    %cst_15 = arith.constant dense<0.000000e+00> : vector<4x256xf32>
    %94 = tpu.matmul %92, %93, %cst_15 {dimension_numbers = #tpu.dot_dimension_numbers<[1], [0], [0], [1], [0, 0, 1, 1], [], []>} : vector<4x4xbf16>, vector<4x256xbf16>, vector<4x256xf32> -> vector<4x256xf32>
    %95 = arith.addf %84, %94 : vector<4x256xf32>
    %cst_16 = arith.constant 0.000000e+00 : f32
    %96 = vector.broadcast %cst_16 : f32 to vector<4x256xf32>
    %97 = arith.maximumf %95, %96 : vector<4x256xf32>
    %c0_17 = arith.constant 0 : index
    %c0_18 = arith.constant 0 : index
    %c0_19 = arith.constant 0 : index
    %98 = vector.load %arg8[%c0_17, %c0_18, %c0_19] : memref<9x4x4xbf16, #tpu.memory_space<vmem>>, vector<9x4x4xbf16>
    %99 = vector.extract_strided_slice %97 {offsets = [0, 239], sizes = [4, 17], strides = [1, 1]} : vector<4x256xf32> to vector<4x17xf32>
    %100 = vector.extract_strided_slice %97 {offsets = [0, 0], sizes = [4, 239], strides = [1, 1]} : vector<4x256xf32> to vector<4x239xf32>
    %101 = tpu.concatenate %99, %100 in 1 : vector<4x17xf32>, vector<4x239xf32> -> vector<4x256xf32>
    %102 = vector.extract_strided_slice %2 {offsets = [0, 0, 0], sizes = [1, 4, 256], strides = [1, 1, 1]} : vector<9x4x256xf32> to vector<1x4x256xf32>
    %103 = vector.shape_cast %102 : vector<1x4x256xf32> to vector<4x256xf32>
    %104 = arith.mulf %101, %103 : vector<4x256xf32>
    %105 = vector.extract_strided_slice %98 {offsets = [0, 0, 0], sizes = [1, 4, 4], strides = [1, 1, 1]} : vector<9x4x4xbf16> to vector<1x4x4xbf16>
    %106 = vector.shape_cast %105 : vector<1x4x4xbf16> to vector<4x4xbf16>
    %107 = arith.truncf %104 : vector<4x256xf32> to vector<4x256xbf16>
    %cst_20 = arith.constant dense<0.000000e+00> : vector<4x256xf32>
    %108 = tpu.matmul %106, %107, %cst_20 {dimension_numbers = #tpu.dot_dimension_numbers<[1], [0], [0], [1], [0, 0, 1, 1], [], []>} : vector<4x4xbf16>, vector<4x256xbf16>, vector<4x256xf32> -> vector<4x256xf32>
    %109 = vector.extract_strided_slice %97 {offsets = [0, 240], sizes = [4, 16], strides = [1, 1]} : vector<4x256xf32> to vector<4x16xf32>
    %110 = vector.extract_strided_slice %97 {offsets = [0, 0], sizes = [4, 240], strides = [1, 1]} : vector<4x256xf32> to vector<4x240xf32>
    %111 = tpu.concatenate %109, %110 in 1 : vector<4x16xf32>, vector<4x240xf32> -> vector<4x256xf32>
    %112 = vector.extract_strided_slice %2 {offsets = [1, 0, 0], sizes = [1, 4, 256], strides = [1, 1, 1]} : vector<9x4x256xf32> to vector<1x4x256xf32>
    %113 = vector.shape_cast %112 : vector<1x4x256xf32> to vector<4x256xf32>
    %114 = arith.mulf %111, %113 : vector<4x256xf32>
    %115 = vector.extract_strided_slice %98 {offsets = [1, 0, 0], sizes = [1, 4, 4], strides = [1, 1, 1]} : vector<9x4x4xbf16> to vector<1x4x4xbf16>
    %116 = vector.shape_cast %115 : vector<1x4x4xbf16> to vector<4x4xbf16>
    %117 = arith.truncf %114 : vector<4x256xf32> to vector<4x256xbf16>
    %cst_21 = arith.constant dense<0.000000e+00> : vector<4x256xf32>
    %118 = tpu.matmul %116, %117, %cst_21 {dimension_numbers = #tpu.dot_dimension_numbers<[1], [0], [0], [1], [0, 0, 1, 1], [], []>} : vector<4x4xbf16>, vector<4x256xbf16>, vector<4x256xf32> -> vector<4x256xf32>
    %119 = arith.addf %108, %118 : vector<4x256xf32>
    %120 = vector.extract_strided_slice %97 {offsets = [0, 241], sizes = [4, 15], strides = [1, 1]} : vector<4x256xf32> to vector<4x15xf32>
    %121 = vector.extract_strided_slice %97 {offsets = [0, 0], sizes = [4, 241], strides = [1, 1]} : vector<4x256xf32> to vector<4x241xf32>
    %122 = tpu.concatenate %120, %121 in 1 : vector<4x15xf32>, vector<4x241xf32> -> vector<4x256xf32>
    %123 = vector.extract_strided_slice %2 {offsets = [2, 0, 0], sizes = [1, 4, 256], strides = [1, 1, 1]} : vector<9x4x256xf32> to vector<1x4x256xf32>
    %124 = vector.shape_cast %123 : vector<1x4x256xf32> to vector<4x256xf32>
    %125 = arith.mulf %122, %124 : vector<4x256xf32>
    %126 = vector.extract_strided_slice %98 {offsets = [2, 0, 0], sizes = [1, 4, 4], strides = [1, 1, 1]} : vector<9x4x4xbf16> to vector<1x4x4xbf16>
    %127 = vector.shape_cast %126 : vector<1x4x4xbf16> to vector<4x4xbf16>
    %128 = arith.truncf %125 : vector<4x256xf32> to vector<4x256xbf16>
    %cst_22 = arith.constant dense<0.000000e+00> : vector<4x256xf32>
    %129 = tpu.matmul %127, %128, %cst_22 {dimension_numbers = #tpu.dot_dimension_numbers<[1], [0], [0], [1], [0, 0, 1, 1], [], []>} : vector<4x4xbf16>, vector<4x256xbf16>, vector<4x256xf32> -> vector<4x256xf32>
    %130 = arith.addf %119, %129 : vector<4x256xf32>
    %131 = vector.extract_strided_slice %97 {offsets = [0, 255], sizes = [4, 1], strides = [1, 1]} : vector<4x256xf32> to vector<4x1xf32>
    %132 = vector.extract_strided_slice %97 {offsets = [0, 0], sizes = [4, 255], strides = [1, 1]} : vector<4x256xf32> to vector<4x255xf32>
    %133 = tpu.concatenate %131, %132 in 1 : vector<4x1xf32>, vector<4x255xf32> -> vector<4x256xf32>
    %134 = vector.extract_strided_slice %2 {offsets = [3, 0, 0], sizes = [1, 4, 256], strides = [1, 1, 1]} : vector<9x4x256xf32> to vector<1x4x256xf32>
    %135 = vector.shape_cast %134 : vector<1x4x256xf32> to vector<4x256xf32>
    %136 = arith.mulf %133, %135 : vector<4x256xf32>
    %137 = vector.extract_strided_slice %98 {offsets = [3, 0, 0], sizes = [1, 4, 4], strides = [1, 1, 1]} : vector<9x4x4xbf16> to vector<1x4x4xbf16>
    %138 = vector.shape_cast %137 : vector<1x4x4xbf16> to vector<4x4xbf16>
    %139 = arith.truncf %136 : vector<4x256xf32> to vector<4x256xbf16>
    %cst_23 = arith.constant dense<0.000000e+00> : vector<4x256xf32>
    %140 = tpu.matmul %138, %139, %cst_23 {dimension_numbers = #tpu.dot_dimension_numbers<[1], [0], [0], [1], [0, 0, 1, 1], [], []>} : vector<4x4xbf16>, vector<4x256xbf16>, vector<4x256xf32> -> vector<4x256xf32>
    %141 = arith.addf %130, %140 : vector<4x256xf32>
    %142 = vector.extract_strided_slice %98 {offsets = [4, 0, 0], sizes = [1, 4, 4], strides = [1, 1, 1]} : vector<9x4x4xbf16> to vector<1x4x4xbf16>
    %143 = vector.shape_cast %142 : vector<1x4x4xbf16> to vector<4x4xbf16>
    %144 = arith.truncf %97 : vector<4x256xf32> to vector<4x256xbf16>
    %cst_24 = arith.constant dense<0.000000e+00> : vector<4x256xf32>
    %145 = tpu.matmul %143, %144, %cst_24 {dimension_numbers = #tpu.dot_dimension_numbers<[1], [0], [0], [1], [0, 0, 1, 1], [], []>} : vector<4x4xbf16>, vector<4x256xbf16>, vector<4x256xf32> -> vector<4x256xf32>
    %146 = arith.addf %141, %145 : vector<4x256xf32>
    %147 = vector.extract_strided_slice %97 {offsets = [0, 1], sizes = [4, 255], strides = [1, 1]} : vector<4x256xf32> to vector<4x255xf32>
    %148 = vector.extract_strided_slice %97 {offsets = [0, 0], sizes = [4, 1], strides = [1, 1]} : vector<4x256xf32> to vector<4x1xf32>
    %149 = tpu.concatenate %147, %148 in 1 : vector<4x255xf32>, vector<4x1xf32> -> vector<4x256xf32>
    %150 = vector.extract_strided_slice %2 {offsets = [5, 0, 0], sizes = [1, 4, 256], strides = [1, 1, 1]} : vector<9x4x256xf32> to vector<1x4x256xf32>
    %151 = vector.shape_cast %150 : vector<1x4x256xf32> to vector<4x256xf32>
    %152 = arith.mulf %149, %151 : vector<4x256xf32>
    %153 = vector.extract_strided_slice %98 {offsets = [5, 0, 0], sizes = [1, 4, 4], strides = [1, 1, 1]} : vector<9x4x4xbf16> to vector<1x4x4xbf16>
    %154 = vector.shape_cast %153 : vector<1x4x4xbf16> to vector<4x4xbf16>
    %155 = arith.truncf %152 : vector<4x256xf32> to vector<4x256xbf16>
    %cst_25 = arith.constant dense<0.000000e+00> : vector<4x256xf32>
    %156 = tpu.matmul %154, %155, %cst_25 {dimension_numbers = #tpu.dot_dimension_numbers<[1], [0], [0], [1], [0, 0, 1, 1], [], []>} : vector<4x4xbf16>, vector<4x256xbf16>, vector<4x256xf32> -> vector<4x256xf32>
    %157 = arith.addf %146, %156 : vector<4x256xf32>
    %158 = vector.extract_strided_slice %97 {offsets = [0, 15], sizes = [4, 241], strides = [1, 1]} : vector<4x256xf32> to vector<4x241xf32>
    %159 = vector.extract_strided_slice %97 {offsets = [0, 0], sizes = [4, 15], strides = [1, 1]} : vector<4x256xf32> to vector<4x15xf32>
    %160 = tpu.concatenate %158, %159 in 1 : vector<4x241xf32>, vector<4x15xf32> -> vector<4x256xf32>
    %161 = vector.extract_strided_slice %2 {offsets = [6, 0, 0], sizes = [1, 4, 256], strides = [1, 1, 1]} : vector<9x4x256xf32> to vector<1x4x256xf32>
    %162 = vector.shape_cast %161 : vector<1x4x256xf32> to vector<4x256xf32>
    %163 = arith.mulf %160, %162 : vector<4x256xf32>
    %164 = vector.extract_strided_slice %98 {offsets = [6, 0, 0], sizes = [1, 4, 4], strides = [1, 1, 1]} : vector<9x4x4xbf16> to vector<1x4x4xbf16>
    %165 = vector.shape_cast %164 : vector<1x4x4xbf16> to vector<4x4xbf16>
    %166 = arith.truncf %163 : vector<4x256xf32> to vector<4x256xbf16>
    %cst_26 = arith.constant dense<0.000000e+00> : vector<4x256xf32>
    %167 = tpu.matmul %165, %166, %cst_26 {dimension_numbers = #tpu.dot_dimension_numbers<[1], [0], [0], [1], [0, 0, 1, 1], [], []>} : vector<4x4xbf16>, vector<4x256xbf16>, vector<4x256xf32> -> vector<4x256xf32>
    %168 = arith.addf %157, %167 : vector<4x256xf32>
    %169 = vector.extract_strided_slice %97 {offsets = [0, 16], sizes = [4, 240], strides = [1, 1]} : vector<4x256xf32> to vector<4x240xf32>
    %170 = vector.extract_strided_slice %97 {offsets = [0, 0], sizes = [4, 16], strides = [1, 1]} : vector<4x256xf32> to vector<4x16xf32>
    %171 = tpu.concatenate %169, %170 in 1 : vector<4x240xf32>, vector<4x16xf32> -> vector<4x256xf32>
    %172 = vector.extract_strided_slice %2 {offsets = [7, 0, 0], sizes = [1, 4, 256], strides = [1, 1, 1]} : vector<9x4x256xf32> to vector<1x4x256xf32>
    %173 = vector.shape_cast %172 : vector<1x4x256xf32> to vector<4x256xf32>
    %174 = arith.mulf %171, %173 : vector<4x256xf32>
    %175 = vector.extract_strided_slice %98 {offsets = [7, 0, 0], sizes = [1, 4, 4], strides = [1, 1, 1]} : vector<9x4x4xbf16> to vector<1x4x4xbf16>
    %176 = vector.shape_cast %175 : vector<1x4x4xbf16> to vector<4x4xbf16>
    %177 = arith.truncf %174 : vector<4x256xf32> to vector<4x256xbf16>
    %cst_27 = arith.constant dense<0.000000e+00> : vector<4x256xf32>
    %178 = tpu.matmul %176, %177, %cst_27 {dimension_numbers = #tpu.dot_dimension_numbers<[1], [0], [0], [1], [0, 0, 1, 1], [], []>} : vector<4x4xbf16>, vector<4x256xbf16>, vector<4x256xf32> -> vector<4x256xf32>
    %179 = arith.addf %168, %178 : vector<4x256xf32>
    %180 = vector.extract_strided_slice %97 {offsets = [0, 17], sizes = [4, 239], strides = [1, 1]} : vector<4x256xf32> to vector<4x239xf32>
    %181 = vector.extract_strided_slice %97 {offsets = [0, 0], sizes = [4, 17], strides = [1, 1]} : vector<4x256xf32> to vector<4x17xf32>
    %182 = tpu.concatenate %180, %181 in 1 : vector<4x239xf32>, vector<4x17xf32> -> vector<4x256xf32>
    %183 = vector.extract_strided_slice %2 {offsets = [8, 0, 0], sizes = [1, 4, 256], strides = [1, 1, 1]} : vector<9x4x256xf32> to vector<1x4x256xf32>
    %184 = vector.shape_cast %183 : vector<1x4x256xf32> to vector<4x256xf32>
    %185 = arith.mulf %182, %184 : vector<4x256xf32>
    %186 = vector.extract_strided_slice %98 {offsets = [8, 0, 0], sizes = [1, 4, 4], strides = [1, 1, 1]} : vector<9x4x4xbf16> to vector<1x4x4xbf16>
    %187 = vector.shape_cast %186 : vector<1x4x4xbf16> to vector<4x4xbf16>
    %188 = arith.truncf %185 : vector<4x256xf32> to vector<4x256xbf16>
    %cst_28 = arith.constant dense<0.000000e+00> : vector<4x256xf32>
    %189 = tpu.matmul %187, %188, %cst_28 {dimension_numbers = #tpu.dot_dimension_numbers<[1], [0], [0], [1], [0, 0, 1, 1], [], []>} : vector<4x4xbf16>, vector<4x256xbf16>, vector<4x256xf32> -> vector<4x256xf32>
    %190 = arith.addf %179, %189 : vector<4x256xf32>
    %c0_29 = arith.constant 0 : index
    %c0_30 = arith.constant 0 : index
    %191 = vector.load %arg2[%c0_29, %c0_30] : memref<256x256xf32, #tpu.memory_space<vmem>>, vector<256x256xf32>
    %cst_31 = arith.constant dense<0.000000e+00> : vector<4x256xf32>
    %192 = tpu.matmul %1, %191, %cst_31 {dimension_numbers = #tpu.dot_dimension_numbers<[1], [0], [0], [1], [0, 0, 1, 1], [], []>} : vector<4x256xf32>, vector<256x256xf32>, vector<4x256xf32> -> vector<4x256xf32>
    %c0_32 = arith.constant 0 : index
    %c0_33 = arith.constant 0 : index
    %193 = vector.load %arg3[%c0_32, %c0_33] : memref<256x256xf32, #tpu.memory_space<vmem>>, vector<256x256xf32>
    %cst_34 = arith.constant dense<0.000000e+00> : vector<4x256xf32>
    %194 = tpu.matmul %1, %193, %cst_34 {dimension_numbers = #tpu.dot_dimension_numbers<[1], [0], [0], [1], [0, 0, 1, 1], [], []>} : vector<4x256xf32>, vector<256x256xf32>, vector<4x256xf32> -> vector<4x256xf32>
    %c0_35 = arith.constant 0 : index
    %c0_36 = arith.constant 0 : index
    %195 = vector.load %arg9[%c0_35, %c0_36] : memref<8x8xbf16, #tpu.memory_space<vmem>>, vector<8x8xbf16>
    %c0_37 = arith.constant 0 : index
    %c0_38 = arith.constant 0 : index
    %196 = vector.load %arg10[%c0_37, %c0_38] : memref<8x8xbf16, #tpu.memory_space<vmem>>, vector<8x8xbf16>
    %197 = arith.truncf %192 : vector<4x256xf32> to vector<4x256xbf16>
    %198 = arith.truncf %194 : vector<4x256xf32> to vector<4x256xbf16>
    %199 = vector.extract_strided_slice %195 {offsets = [0, 0], sizes = [4, 4], strides = [1, 1]} : vector<8x8xbf16> to vector<4x4xbf16>
    %cst_39 = arith.constant dense<0.000000e+00> : vector<4x256xf32>
    %200 = tpu.matmul %199, %197, %cst_39 {dimension_numbers = #tpu.dot_dimension_numbers<[1], [0], [0], [1], [0, 0, 1, 1], [], []>} : vector<4x4xbf16>, vector<4x256xbf16>, vector<4x256xf32> -> vector<4x256xf32>
    %201 = vector.extract_strided_slice %195 {offsets = [0, 4], sizes = [4, 4], strides = [1, 1]} : vector<8x8xbf16> to vector<4x4xbf16>
    %cst_40 = arith.constant dense<0.000000e+00> : vector<4x256xf32>
    %202 = tpu.matmul %201, %198, %cst_40 {dimension_numbers = #tpu.dot_dimension_numbers<[1], [0], [0], [1], [0, 0, 1, 1], [], []>} : vector<4x4xbf16>, vector<4x256xbf16>, vector<4x256xf32> -> vector<4x256xf32>
    %203 = arith.addf %200, %202 : vector<4x256xf32>
    %204 = vector.extract_strided_slice %195 {offsets = [4, 0], sizes = [4, 4], strides = [1, 1]} : vector<8x8xbf16> to vector<4x4xbf16>
    %cst_41 = arith.constant dense<0.000000e+00> : vector<4x256xf32>
    %205 = tpu.matmul %204, %197, %cst_41 {dimension_numbers = #tpu.dot_dimension_numbers<[1], [0], [0], [1], [0, 0, 1, 1], [], []>} : vector<4x4xbf16>, vector<4x256xbf16>, vector<4x256xf32> -> vector<4x256xf32>
    %206 = vector.extract_strided_slice %195 {offsets = [4, 4], sizes = [4, 4], strides = [1, 1]} : vector<8x8xbf16> to vector<4x4xbf16>
    %cst_42 = arith.constant dense<0.000000e+00> : vector<4x256xf32>
    %207 = tpu.matmul %206, %198, %cst_42 {dimension_numbers = #tpu.dot_dimension_numbers<[1], [0], [0], [1], [0, 0, 1, 1], [], []>} : vector<4x4xbf16>, vector<4x256xbf16>, vector<4x256xf32> -> vector<4x256xf32>
    %208 = arith.addf %205, %207 : vector<4x256xf32>
    %cst_43 = arith.constant 0.000000e+00 : f32
    %209 = vector.broadcast %cst_43 : f32 to vector<4x256xf32>
    %210 = arith.maximumf %203, %209 : vector<4x256xf32>
    %cst_44 = arith.constant 0.000000e+00 : f32
    %211 = vector.broadcast %cst_44 : f32 to vector<4x256xf32>
    %212 = arith.maximumf %208, %211 : vector<4x256xf32>
    %213 = arith.truncf %210 : vector<4x256xf32> to vector<4x256xbf16>
    %214 = arith.truncf %212 : vector<4x256xf32> to vector<4x256xbf16>
    %215 = vector.extract_strided_slice %196 {offsets = [0, 0], sizes = [4, 4], strides = [1, 1]} : vector<8x8xbf16> to vector<4x4xbf16>
    %cst_45 = arith.constant dense<0.000000e+00> : vector<4x256xf32>
    %216 = tpu.matmul %215, %213, %cst_45 {dimension_numbers = #tpu.dot_dimension_numbers<[1], [0], [0], [1], [0, 0, 1, 1], [], []>} : vector<4x4xbf16>, vector<4x256xbf16>, vector<4x256xf32> -> vector<4x256xf32>
    %217 = vector.extract_strided_slice %196 {offsets = [0, 4], sizes = [4, 4], strides = [1, 1]} : vector<8x8xbf16> to vector<4x4xbf16>
    %cst_46 = arith.constant dense<0.000000e+00> : vector<4x256xf32>
    %218 = tpu.matmul %217, %214, %cst_46 {dimension_numbers = #tpu.dot_dimension_numbers<[1], [0], [0], [1], [0, 0, 1, 1], [], []>} : vector<4x4xbf16>, vector<4x256xbf16>, vector<4x256xf32> -> vector<4x256xf32>
    %219 = arith.addf %216, %218 : vector<4x256xf32>
    %220 = vector.extract_strided_slice %196 {offsets = [4, 0], sizes = [4, 4], strides = [1, 1]} : vector<8x8xbf16> to vector<4x4xbf16>
    %cst_47 = arith.constant dense<0.000000e+00> : vector<4x256xf32>
    %221 = tpu.matmul %220, %213, %cst_47 {dimension_numbers = #tpu.dot_dimension_numbers<[1], [0], [0], [1], [0, 0, 1, 1], [], []>} : vector<4x4xbf16>, vector<4x256xbf16>, vector<4x256xf32> -> vector<4x256xf32>
    %222 = vector.extract_strided_slice %196 {offsets = [4, 4], sizes = [4, 4], strides = [1, 1]} : vector<8x8xbf16> to vector<4x4xbf16>
    %cst_48 = arith.constant dense<0.000000e+00> : vector<4x256xf32>
    %223 = tpu.matmul %222, %214, %cst_48 {dimension_numbers = #tpu.dot_dimension_numbers<[1], [0], [0], [1], [0, 0, 1, 1], [], []>} : vector<4x4xbf16>, vector<4x256xbf16>, vector<4x256xf32> -> vector<4x256xf32>
    %224 = arith.addf %221, %223 : vector<4x256xf32>
    %c0_49 = arith.constant 0 : index
    %c0_50 = arith.constant 0 : index
    %225 = vector.load %arg4[%c0_49, %c0_50] : memref<256x256xf32, #tpu.memory_space<vmem>>, vector<256x256xf32>
    %cst_51 = arith.constant dense<0.000000e+00> : vector<4x256xf32>
    %226 = tpu.matmul %219, %225, %cst_51 {dimension_numbers = #tpu.dot_dimension_numbers<[1], [0], [0], [1], [0, 0, 1, 1], [], []>} : vector<4x256xf32>, vector<256x256xf32>, vector<4x256xf32> -> vector<4x256xf32>
    %c0_52 = arith.constant 0 : index
    %c0_53 = arith.constant 0 : index
    %227 = vector.load %arg5[%c0_52, %c0_53] : memref<256x256xf32, #tpu.memory_space<vmem>>, vector<256x256xf32>
    %cst_54 = arith.constant dense<0.000000e+00> : vector<4x256xf32>
    %228 = tpu.matmul %224, %227, %cst_54 {dimension_numbers = #tpu.dot_dimension_numbers<[1], [0], [0], [1], [0, 0, 1, 1], [], []>} : vector<4x256xf32>, vector<256x256xf32>, vector<4x256xf32> -> vector<4x256xf32>
    %229 = arith.addf %226, %228 : vector<4x256xf32>
    %230 = arith.addf %190, %1 : vector<4x256xf32>
    %231 = arith.addf %230, %229 : vector<4x256xf32>
    %c0_55 = arith.constant 0 : index
    %c0_56 = arith.constant 0 : index
    %c0_57 = arith.constant 0 : index
    %232 = vector.load %arg11[%c0_55, %c0_56, %c0_57] : memref<1x4x256xf32, #tpu.memory_space<vmem>>, vector<1x4x256xf32>
    %233 = vector.shape_cast %232 : vector<1x4x256xf32> to vector<4x256xf32>
    %234 = vector.shape_cast %231 : vector<4x256xf32> to vector<1x4x256xf32>
    tpu.vector_store %arg11[%c0_55, %c0_56, %c0_57], %234 {strides = array<i32>} : memref<1x4x256xf32, #tpu.memory_space<vmem>>, vector<1x4x256xf32>,
    return
  }
  func.func @transform_0(%arg0: i32) -> (i32, i32, i32) {
    %c0_i32 = arith.constant 0 : i32
    %c0_i32_0 = arith.constant 0 : i32
    %c0_i32_1 = arith.constant 0 : i32
    return %arg0, %c0_i32, %c0_i32_0 : i32, i32, i32
  }
  func.func @transform_1(%arg0: i32) -> (i32, i32) {
    %c0_i32 = arith.constant 0 : i32
    %c0_i32_0 = arith.constant 0 : i32
    %c0_i32_1 = arith.constant 0 : i32
    return %c0_i32, %c0_i32_0 : i32, i32
  }
  func.func @transform_2(%arg0: i32) -> (i32, i32) {
    %c0_i32 = arith.constant 0 : i32
    %c0_i32_0 = arith.constant 0 : i32
    %c0_i32_1 = arith.constant 0 : i32
    return %c0_i32, %c0_i32_0 : i32, i32
  }
  func.func @transform_3(%arg0: i32) -> (i32, i32) {
    %c0_i32 = arith.constant 0 : i32
    %c0_i32_0 = arith.constant 0 : i32
    %c0_i32_1 = arith.constant 0 : i32
    return %c0_i32, %c0_i32_0 : i32, i32
  }
  func.func @transform_4(%arg0: i32) -> (i32, i32) {
    %c0_i32 = arith.constant 0 : i32
    %c0_i32_0 = arith.constant 0 : i32
    %c0_i32_1 = arith.constant 0 : i32
    return %c0_i32, %c0_i32_0 : i32, i32
  }
  func.func @transform_5(%arg0: i32) -> (i32, i32, i32) {
    %c0_i32 = arith.constant 0 : i32
    %c0_i32_0 = arith.constant 0 : i32
    %c0_i32_1 = arith.constant 0 : i32
    %c0_i32_2 = arith.constant 0 : i32
    return %c0_i32, %c0_i32_0, %c0_i32_1 : i32, i32, i32
  }
  func.func @transform_6(%arg0: i32) -> (i32, i32, i32) {
    %c0_i32 = arith.constant 0 : i32
    %c0_i32_0 = arith.constant 0 : i32
    %c0_i32_1 = arith.constant 0 : i32
    %c0_i32_2 = arith.constant 0 : i32
    return %c0_i32, %c0_i32_0, %c0_i32_1 : i32, i32, i32
  }
  func.func @transform_7(%arg0: i32) -> (i32, i32, i32) {
    %c0_i32 = arith.constant 0 : i32
    %c0_i32_0 = arith.constant 0 : i32
    %c0_i32_1 = arith.constant 0 : i32
    %c0_i32_2 = arith.constant 0 : i32
    return %c0_i32, %c0_i32_0, %c0_i32_1 : i32, i32, i32
  }
  func.func @transform_8(%arg0: i32) -> (i32, i32) {
    %c0_i32 = arith.constant 0 : i32
    %c0_i32_0 = arith.constant 0 : i32
    %c0_i32_1 = arith.constant 0 : i32
    return %c0_i32, %c0_i32_0 : i32, i32
  }
  func.func @transform_9(%arg0: i32) -> (i32, i32) {
    %c0_i32 = arith.constant 0 : i32
    %c0_i32_0 = arith.constant 0 : i32
    %c0_i32_1 = arith.constant 0 : i32
    return %c0_i32, %c0_i32_0 : i32, i32
  }
  func.func @transform_10(%arg0: i32) -> (i32, i32, i32) {
    %c0_i32 = arith.constant 0 : i32
    %c0_i32_0 = arith.constant 0 : i32
    %c0_i32_1 = arith.constant 0 : i32
    return %arg0, %c0_i32, %c0_i32_0 : i32, i32, i32
  }
}

module attributes {stable_mosaic.version = 11 : i64} {
  func.func @kernel(%arg0: i32, %arg1: memref<1x4x256xf32, #tpu.memory_space<vmem>>, %arg2: memref<256x256xf32, #tpu.memory_space<vmem>>, %arg3: memref<256x256xf32, #tpu.memory_space<vmem>>, %arg4: memref<256x256xf32, #tpu.memory_space<vmem>>, %arg5: memref<256x256xf32, #tpu.memory_space<vmem>>, %arg6: memref<9x4x256xf32, #tpu.memory_space<vmem>>, %arg7: memref<9x4x4xbf16, #tpu.memory_space<vmem>>, %arg8: memref<9x4x4xbf16, #tpu.memory_space<vmem>>, %arg9: memref<8x8xbf16, #tpu.memory_space<vmem>>, %arg10: memref<8x8xbf16, #tpu.memory_space<vmem>>, %arg11: memref<1x4x256xf32, #tpu.memory_space<vmem>>) attributes {dimension_semantics = [#tpu.dimension_semantics<parallel>], iteration_bounds = array<i64: 2>, scalar_prefetch = 0 : i64, scratch_operands = 0 : i64, tpu.core_type = #tpu.core_type<tc>, window_params = [{transform_indices = @transform_0, window_bounds = array<i64: 1, 4, 256>}, {pipeline_mode = #tpu.pipeline_mode<synchronous>, transform_indices = @transform_1, window_bounds = array<i64: 256, 256>}, {pipeline_mode = #tpu.pipeline_mode<synchronous>, transform_indices = @transform_2, window_bounds = array<i64: 256, 256>}, {pipeline_mode = #tpu.pipeline_mode<synchronous>, transform_indices = @transform_3, window_bounds = array<i64: 256, 256>}, {pipeline_mode = #tpu.pipeline_mode<synchronous>, transform_indices = @transform_4, window_bounds = array<i64: 256, 256>}, {pipeline_mode = #tpu.pipeline_mode<synchronous>, transform_indices = @transform_5, window_bounds = array<i64: 9, 4, 256>}, {pipeline_mode = #tpu.pipeline_mode<synchronous>, transform_indices = @transform_6, window_bounds = array<i64: 9, 4, 4>}, {pipeline_mode = #tpu.pipeline_mode<synchronous>, transform_indices = @transform_7, window_bounds = array<i64: 9, 4, 4>}, {pipeline_mode = #tpu.pipeline_mode<synchronous>, transform_indices = @transform_8, window_bounds = array<i64: 8, 8>}, {pipeline_mode = #tpu.pipeline_mode<synchronous>, transform_indices = @transform_9, window_bounds = array<i64: 8, 8>}, {transform_indices = @transform_10, window_bounds = array<i64: 1, 4, 256>}]} {
    %c0 = arith.constant 0 : index
    %c0_0 = arith.constant 0 : index
    %c0_1 = arith.constant 0 : index
    %0 = vector.load %arg1[%c0, %c0_0, %c0_1] : memref<1x4x256xf32, #tpu.memory_space<vmem>>, vector<1x4x256xf32>
    %1 = vector.shape_cast %0 : vector<1x4x256xf32> to vector<4x256xf32>
    %c0_2 = arith.constant 0 : index
    %c0_3 = arith.constant 0 : index
    %c0_4 = arith.constant 0 : index
    %2 = vector.load %arg6[%c0_2, %c0_3, %c0_4] : memref<9x4x256xf32, #tpu.memory_space<vmem>>, vector<9x4x256xf32>
    %c0_5 = arith.constant 0 : index
    %c0_6 = arith.constant 0 : index
    %c0_7 = arith.constant 0 : index
    %3 = vector.load %arg7[%c0_5, %c0_6, %c0_7] : memref<9x4x4xbf16, #tpu.memory_space<vmem>>, vector<9x4x4xbf16>
    %4 = vector.extract_strided_slice %1 {offsets = [0, 239], sizes = [4, 17], strides = [1, 1]} : vector<4x256xf32> to vector<4x17xf32>
    %5 = vector.extract_strided_slice %1 {offsets = [0, 0], sizes = [4, 239], strides = [1, 1]} : vector<4x256xf32> to vector<4x239xf32>
    %6 = tpu.concatenate %4, %5 in 1 : vector<4x17xf32>, vector<4x239xf32> -> vector<4x256xf32>
    %7 = vector.extract_strided_slice %2 {offsets = [0, 0, 0], sizes = [1, 4, 256], strides = [1, 1, 1]} : vector<9x4x256xf32> to vector<1x4x256xf32>
    %8 = vector.shape_cast %7 : vector<1x4x256xf32> to vector<4x256xf32>
    %9 = arith.mulf %6, %8 : vector<4x256xf32>
    %10 = vector.extract_strided_slice %3 {offsets = [0, 0, 0], sizes = [1, 4, 4], strides = [1, 1, 1]} : vector<9x4x4xbf16> to vector<1x4x4xbf16>
    %11 = vector.shape_cast %10 : vector<1x4x4xbf16> to vector<4x4xbf16>
    %12 = arith.truncf %9 : vector<4x256xf32> to vector<4x256xbf16>
    %cst = arith.constant dense<0.000000e+00> : vector<4x256xf32>
    %13 = tpu.matmul %11, %12, %cst {dimension_numbers = #tpu.dot_dimension_numbers<[1], [0], [0], [1], [0, 0, 1, 1], [], []>} : vector<4x4xbf16>, vector<4x256xbf16>, vector<4x256xf32> -> vector<4x256xf32>
    %14 = vector.extract_strided_slice %1 {offsets = [0, 240], sizes = [4, 16], strides = [1, 1]} : vector<4x256xf32> to vector<4x16xf32>
    %15 = vector.extract_strided_slice %1 {offsets = [0, 0], sizes = [4, 240], strides = [1, 1]} : vector<4x256xf32> to vector<4x240xf32>
    %16 = tpu.concatenate %14, %15 in 1 : vector<4x16xf32>, vector<4x240xf32> -> vector<4x256xf32>
    %17 = vector.extract_strided_slice %2 {offsets = [1, 0, 0], sizes = [1, 4, 256], strides = [1, 1, 1]} : vector<9x4x256xf32> to vector<1x4x256xf32>
    %18 = vector.shape_cast %17 : vector<1x4x256xf32> to vector<4x256xf32>
    %19 = arith.mulf %16, %18 : vector<4x256xf32>
    %20 = vector.extract_strided_slice %3 {offsets = [1, 0, 0], sizes = [1, 4, 4], strides = [1, 1, 1]} : vector<9x4x4xbf16> to vector<1x4x4xbf16>
    %21 = vector.shape_cast %20 : vector<1x4x4xbf16> to vector<4x4xbf16>
    %22 = arith.truncf %19 : vector<4x256xf32> to vector<4x256xbf16>
    %cst_8 = arith.constant dense<0.000000e+00> : vector<4x256xf32>
    %23 = tpu.matmul %21, %22, %cst_8 {dimension_numbers = #tpu.dot_dimension_numbers<[1], [0], [0], [1], [0, 0, 1, 1], [], []>} : vector<4x4xbf16>, vector<4x256xbf16>, vector<4x256xf32> -> vector<4x256xf32>
    %24 = arith.addf %13, %23 : vector<4x256xf32>
    %25 = vector.extract_strided_slice %1 {offsets = [0, 241], sizes = [4, 15], strides = [1, 1]} : vector<4x256xf32> to vector<4x15xf32>
    %26 = vector.extract_strided_slice %1 {offsets = [0, 0], sizes = [4, 241], strides = [1, 1]} : vector<4x256xf32> to vector<4x241xf32>
    %27 = tpu.concatenate %25, %26 in 1 : vector<4x15xf32>, vector<4x241xf32> -> vector<4x256xf32>
    %28 = vector.extract_strided_slice %2 {offsets = [2, 0, 0], sizes = [1, 4, 256], strides = [1, 1, 1]} : vector<9x4x256xf32> to vector<1x4x256xf32>
    %29 = vector.shape_cast %28 : vector<1x4x256xf32> to vector<4x256xf32>
    %30 = arith.mulf %27, %29 : vector<4x256xf32>
    %31 = vector.extract_strided_slice %3 {offsets = [2, 0, 0], sizes = [1, 4, 4], strides = [1, 1, 1]} : vector<9x4x4xbf16> to vector<1x4x4xbf16>
    %32 = vector.shape_cast %31 : vector<1x4x4xbf16> to vector<4x4xbf16>
    %33 = arith.truncf %30 : vector<4x256xf32> to vector<4x256xbf16>
    %cst_9 = arith.constant dense<0.000000e+00> : vector<4x256xf32>
    %34 = tpu.matmul %32, %33, %cst_9 {dimension_numbers = #tpu.dot_dimension_numbers<[1], [0], [0], [1], [0, 0, 1, 1], [], []>} : vector<4x4xbf16>, vector<4x256xbf16>, vector<4x256xf32> -> vector<4x256xf32>
    %35 = arith.addf %24, %34 : vector<4x256xf32>
    %36 = vector.extract_strided_slice %1 {offsets = [0, 255], sizes = [4, 1], strides = [1, 1]} : vector<4x256xf32> to vector<4x1xf32>
    %37 = vector.extract_strided_slice %1 {offsets = [0, 0], sizes = [4, 255], strides = [1, 1]} : vector<4x256xf32> to vector<4x255xf32>
    %38 = tpu.concatenate %36, %37 in 1 : vector<4x1xf32>, vector<4x255xf32> -> vector<4x256xf32>
    %39 = vector.extract_strided_slice %2 {offsets = [3, 0, 0], sizes = [1, 4, 256], strides = [1, 1, 1]} : vector<9x4x256xf32> to vector<1x4x256xf32>
    %40 = vector.shape_cast %39 : vector<1x4x256xf32> to vector<4x256xf32>
    %41 = arith.mulf %38, %40 : vector<4x256xf32>
    %42 = vector.extract_strided_slice %3 {offsets = [3, 0, 0], sizes = [1, 4, 4], strides = [1, 1, 1]} : vector<9x4x4xbf16> to vector<1x4x4xbf16>
    %43 = vector.shape_cast %42 : vector<1x4x4xbf16> to vector<4x4xbf16>
    %44 = arith.truncf %41 : vector<4x256xf32> to vector<4x256xbf16>
    %cst_10 = arith.constant dense<0.000000e+00> : vector<4x256xf32>
    %45 = tpu.matmul %43, %44, %cst_10 {dimension_numbers = #tpu.dot_dimension_numbers<[1], [0], [0], [1], [0, 0, 1, 1], [], []>} : vector<4x4xbf16>, vector<4x256xbf16>, vector<4x256xf32> -> vector<4x256xf32>
    %46 = arith.addf %35, %45 : vector<4x256xf32>
    %47 = vector.extract_strided_slice %3 {offsets = [4, 0, 0], sizes = [1, 4, 4], strides = [1, 1, 1]} : vector<9x4x4xbf16> to vector<1x4x4xbf16>
    %48 = vector.shape_cast %47 : vector<1x4x4xbf16> to vector<4x4xbf16>
    %49 = arith.truncf %1 : vector<4x256xf32> to vector<4x256xbf16>
    %cst_11 = arith.constant dense<0.000000e+00> : vector<4x256xf32>
    %50 = tpu.matmul %48, %49, %cst_11 {dimension_numbers = #tpu.dot_dimension_numbers<[1], [0], [0], [1], [0, 0, 1, 1], [], []>} : vector<4x4xbf16>, vector<4x256xbf16>, vector<4x256xf32> -> vector<4x256xf32>
    %51 = arith.addf %46, %50 : vector<4x256xf32>
    %52 = vector.extract_strided_slice %1 {offsets = [0, 1], sizes = [4, 255], strides = [1, 1]} : vector<4x256xf32> to vector<4x255xf32>
    %53 = vector.extract_strided_slice %1 {offsets = [0, 0], sizes = [4, 1], strides = [1, 1]} : vector<4x256xf32> to vector<4x1xf32>
    %54 = tpu.concatenate %52, %53 in 1 : vector<4x255xf32>, vector<4x1xf32> -> vector<4x256xf32>
    %55 = vector.extract_strided_slice %2 {offsets = [5, 0, 0], sizes = [1, 4, 256], strides = [1, 1, 1]} : vector<9x4x256xf32> to vector<1x4x256xf32>
    %56 = vector.shape_cast %55 : vector<1x4x256xf32> to vector<4x256xf32>
    %57 = arith.mulf %54, %56 : vector<4x256xf32>
    %58 = vector.extract_strided_slice %3 {offsets = [5, 0, 0], sizes = [1, 4, 4], strides = [1, 1, 1]} : vector<9x4x4xbf16> to vector<1x4x4xbf16>
    %59 = vector.shape_cast %58 : vector<1x4x4xbf16> to vector<4x4xbf16>
    %60 = arith.truncf %57 : vector<4x256xf32> to vector<4x256xbf16>
    %cst_12 = arith.constant dense<0.000000e+00> : vector<4x256xf32>
    %61 = tpu.matmul %59, %60, %cst_12 {dimension_numbers = #tpu.dot_dimension_numbers<[1], [0], [0], [1], [0, 0, 1, 1], [], []>} : vector<4x4xbf16>, vector<4x256xbf16>, vector<4x256xf32> -> vector<4x256xf32>
    %62 = arith.addf %51, %61 : vector<4x256xf32>
    %63 = vector.extract_strided_slice %1 {offsets = [0, 15], sizes = [4, 241], strides = [1, 1]} : vector<4x256xf32> to vector<4x241xf32>
    %64 = vector.extract_strided_slice %1 {offsets = [0, 0], sizes = [4, 15], strides = [1, 1]} : vector<4x256xf32> to vector<4x15xf32>
    %65 = tpu.concatenate %63, %64 in 1 : vector<4x241xf32>, vector<4x15xf32> -> vector<4x256xf32>
    %66 = vector.extract_strided_slice %2 {offsets = [6, 0, 0], sizes = [1, 4, 256], strides = [1, 1, 1]} : vector<9x4x256xf32> to vector<1x4x256xf32>
    %67 = vector.shape_cast %66 : vector<1x4x256xf32> to vector<4x256xf32>
    %68 = arith.mulf %65, %67 : vector<4x256xf32>
    %69 = vector.extract_strided_slice %3 {offsets = [6, 0, 0], sizes = [1, 4, 4], strides = [1, 1, 1]} : vector<9x4x4xbf16> to vector<1x4x4xbf16>
    %70 = vector.shape_cast %69 : vector<1x4x4xbf16> to vector<4x4xbf16>
    %71 = arith.truncf %68 : vector<4x256xf32> to vector<4x256xbf16>
    %cst_13 = arith.constant dense<0.000000e+00> : vector<4x256xf32>
    %72 = tpu.matmul %70, %71, %cst_13 {dimension_numbers = #tpu.dot_dimension_numbers<[1], [0], [0], [1], [0, 0, 1, 1], [], []>} : vector<4x4xbf16>, vector<4x256xbf16>, vector<4x256xf32> -> vector<4x256xf32>
    %73 = arith.addf %62, %72 : vector<4x256xf32>
    %74 = vector.extract_strided_slice %1 {offsets = [0, 16], sizes = [4, 240], strides = [1, 1]} : vector<4x256xf32> to vector<4x240xf32>
    %75 = vector.extract_strided_slice %1 {offsets = [0, 0], sizes = [4, 16], strides = [1, 1]} : vector<4x256xf32> to vector<4x16xf32>
    %76 = tpu.concatenate %74, %75 in 1 : vector<4x240xf32>, vector<4x16xf32> -> vector<4x256xf32>
    %77 = vector.extract_strided_slice %2 {offsets = [7, 0, 0], sizes = [1, 4, 256], strides = [1, 1, 1]} : vector<9x4x256xf32> to vector<1x4x256xf32>
    %78 = vector.shape_cast %77 : vector<1x4x256xf32> to vector<4x256xf32>
    %79 = arith.mulf %76, %78 : vector<4x256xf32>
    %80 = vector.extract_strided_slice %3 {offsets = [7, 0, 0], sizes = [1, 4, 4], strides = [1, 1, 1]} : vector<9x4x4xbf16> to vector<1x4x4xbf16>
    %81 = vector.shape_cast %80 : vector<1x4x4xbf16> to vector<4x4xbf16>
    %82 = arith.truncf %79 : vector<4x256xf32> to vector<4x256xbf16>
    %cst_14 = arith.constant dense<0.000000e+00> : vector<4x256xf32>
    %83 = tpu.matmul %81, %82, %cst_14 {dimension_numbers = #tpu.dot_dimension_numbers<[1], [0], [0], [1], [0, 0, 1, 1], [], []>} : vector<4x4xbf16>, vector<4x256xbf16>, vector<4x256xf32> -> vector<4x256xf32>
    %84 = arith.addf %73, %83 : vector<4x256xf32>
    %85 = vector.extract_strided_slice %1 {offsets = [0, 17], sizes = [4, 239], strides = [1, 1]} : vector<4x256xf32> to vector<4x239xf32>
    %86 = vector.extract_strided_slice %1 {offsets = [0, 0], sizes = [4, 17], strides = [1, 1]} : vector<4x256xf32> to vector<4x17xf32>
    %87 = tpu.concatenate %85, %86 in 1 : vector<4x239xf32>, vector<4x17xf32> -> vector<4x256xf32>
    %88 = vector.extract_strided_slice %2 {offsets = [8, 0, 0], sizes = [1, 4, 256], strides = [1, 1, 1]} : vector<9x4x256xf32> to vector<1x4x256xf32>
    %89 = vector.shape_cast %88 : vector<1x4x256xf32> to vector<4x256xf32>
    %90 = arith.mulf %87, %89 : vector<4x256xf32>
    %91 = vector.extract_strided_slice %3 {offsets = [8, 0, 0], sizes = [1, 4, 4], strides = [1, 1, 1]} : vector<9x4x4xbf16> to vector<1x4x4xbf16>
    %92 = vector.shape_cast %91 : vector<1x4x4xbf16> to vector<4x4xbf16>
    %93 = arith.truncf %90 : vector<4x256xf32> to vector<4x256xbf16>
    %cst_15 = arith.constant dense<0.000000e+00> : vector<4x256xf32>
    %94 = tpu.matmul %92, %93, %cst_15 {dimension_numbers = #tpu.dot_dimension_numbers<[1], [0], [0], [1], [0, 0, 1, 1], [], []>} : vector<4x4xbf16>, vector<4x256xbf16>, vector<4x256xf32> -> vector<4x256xf32>
    %95 = arith.addf %84, %94 : vector<4x256xf32>
    %cst_16 = arith.constant 0.000000e+00 : f32
    %96 = vector.broadcast %cst_16 : f32 to vector<4x256xf32>
    %97 = arith.maximumf %95, %96 : vector<4x256xf32>
    %c0_17 = arith.constant 0 : index
    %c0_18 = arith.constant 0 : index
    %c0_19 = arith.constant 0 : index
    %98 = vector.load %arg8[%c0_17, %c0_18, %c0_19] : memref<9x4x4xbf16, #tpu.memory_space<vmem>>, vector<9x4x4xbf16>
    %99 = vector.extract_strided_slice %97 {offsets = [0, 239], sizes = [4, 17], strides = [1, 1]} : vector<4x256xf32> to vector<4x17xf32>
    %100 = vector.extract_strided_slice %97 {offsets = [0, 0], sizes = [4, 239], strides = [1, 1]} : vector<4x256xf32> to vector<4x239xf32>
    %101 = tpu.concatenate %99, %100 in 1 : vector<4x17xf32>, vector<4x239xf32> -> vector<4x256xf32>
    %102 = vector.extract_strided_slice %2 {offsets = [0, 0, 0], sizes = [1, 4, 256], strides = [1, 1, 1]} : vector<9x4x256xf32> to vector<1x4x256xf32>
    %103 = vector.shape_cast %102 : vector<1x4x256xf32> to vector<4x256xf32>
    %104 = arith.mulf %101, %103 : vector<4x256xf32>
    %105 = vector.extract_strided_slice %98 {offsets = [0, 0, 0], sizes = [1, 4, 4], strides = [1, 1, 1]} : vector<9x4x4xbf16> to vector<1x4x4xbf16>
    %106 = vector.shape_cast %105 : vector<1x4x4xbf16> to vector<4x4xbf16>
    %107 = arith.truncf %104 : vector<4x256xf32> to vector<4x256xbf16>
    %cst_20 = arith.constant dense<0.000000e+00> : vector<4x256xf32>
    %108 = tpu.matmul %106, %107, %cst_20 {dimension_numbers = #tpu.dot_dimension_numbers<[1], [0], [0], [1], [0, 0, 1, 1], [], []>} : vector<4x4xbf16>, vector<4x256xbf16>, vector<4x256xf32> -> vector<4x256xf32>
    %109 = vector.extract_strided_slice %97 {offsets = [0, 240], sizes = [4, 16], strides = [1, 1]} : vector<4x256xf32> to vector<4x16xf32>
    %110 = vector.extract_strided_slice %97 {offsets = [0, 0], sizes = [4, 240], strides = [1, 1]} : vector<4x256xf32> to vector<4x240xf32>
    %111 = tpu.concatenate %109, %110 in 1 : vector<4x16xf32>, vector<4x240xf32> -> vector<4x256xf32>
    %112 = vector.extract_strided_slice %2 {offsets = [1, 0, 0], sizes = [1, 4, 256], strides = [1, 1, 1]} : vector<9x4x256xf32> to vector<1x4x256xf32>
    %113 = vector.shape_cast %112 : vector<1x4x256xf32> to vector<4x256xf32>
    %114 = arith.mulf %111, %113 : vector<4x256xf32>
    %115 = vector.extract_strided_slice %98 {offsets = [1, 0, 0], sizes = [1, 4, 4], strides = [1, 1, 1]} : vector<9x4x4xbf16> to vector<1x4x4xbf16>
    %116 = vector.shape_cast %115 : vector<1x4x4xbf16> to vector<4x4xbf16>
    %117 = arith.truncf %114 : vector<4x256xf32> to vector<4x256xbf16>
    %cst_21 = arith.constant dense<0.000000e+00> : vector<4x256xf32>
    %118 = tpu.matmul %116, %117, %cst_21 {dimension_numbers = #tpu.dot_dimension_numbers<[1], [0], [0], [1], [0, 0, 1, 1], [], []>} : vector<4x4xbf16>, vector<4x256xbf16>, vector<4x256xf32> -> vector<4x256xf32>
    %119 = arith.addf %108, %118 : vector<4x256xf32>
    %120 = vector.extract_strided_slice %97 {offsets = [0, 241], sizes = [4, 15], strides = [1, 1]} : vector<4x256xf32> to vector<4x15xf32>
    %121 = vector.extract_strided_slice %97 {offsets = [0, 0], sizes = [4, 241], strides = [1, 1]} : vector<4x256xf32> to vector<4x241xf32>
    %122 = tpu.concatenate %120, %121 in 1 : vector<4x15xf32>, vector<4x241xf32> -> vector<4x256xf32>
    %123 = vector.extract_strided_slice %2 {offsets = [2, 0, 0], sizes = [1, 4, 256], strides = [1, 1, 1]} : vector<9x4x256xf32> to vector<1x4x256xf32>
    %124 = vector.shape_cast %123 : vector<1x4x256xf32> to vector<4x256xf32>
    %125 = arith.mulf %122, %124 : vector<4x256xf32>
    %126 = vector.extract_strided_slice %98 {offsets = [2, 0, 0], sizes = [1, 4, 4], strides = [1, 1, 1]} : vector<9x4x4xbf16> to vector<1x4x4xbf16>
    %127 = vector.shape_cast %126 : vector<1x4x4xbf16> to vector<4x4xbf16>
    %128 = arith.truncf %125 : vector<4x256xf32> to vector<4x256xbf16>
    %cst_22 = arith.constant dense<0.000000e+00> : vector<4x256xf32>
    %129 = tpu.matmul %127, %128, %cst_22 {dimension_numbers = #tpu.dot_dimension_numbers<[1], [0], [0], [1], [0, 0, 1, 1], [], []>} : vector<4x4xbf16>, vector<4x256xbf16>, vector<4x256xf32> -> vector<4x256xf32>
    %130 = arith.addf %119, %129 : vector<4x256xf32>
    %131 = vector.extract_strided_slice %97 {offsets = [0, 255], sizes = [4, 1], strides = [1, 1]} : vector<4x256xf32> to vector<4x1xf32>
    %132 = vector.extract_strided_slice %97 {offsets = [0, 0], sizes = [4, 255], strides = [1, 1]} : vector<4x256xf32> to vector<4x255xf32>
    %133 = tpu.concatenate %131, %132 in 1 : vector<4x1xf32>, vector<4x255xf32> -> vector<4x256xf32>
    %134 = vector.extract_strided_slice %2 {offsets = [3, 0, 0], sizes = [1, 4, 256], strides = [1, 1, 1]} : vector<9x4x256xf32> to vector<1x4x256xf32>
    %135 = vector.shape_cast %134 : vector<1x4x256xf32> to vector<4x256xf32>
    %136 = arith.mulf %133, %135 : vector<4x256xf32>
    %137 = vector.extract_strided_slice %98 {offsets = [3, 0, 0], sizes = [1, 4, 4], strides = [1, 1, 1]} : vector<9x4x4xbf16> to vector<1x4x4xbf16>
    %138 = vector.shape_cast %137 : vector<1x4x4xbf16> to vector<4x4xbf16>
    %139 = arith.truncf %136 : vector<4x256xf32> to vector<4x256xbf16>
    %cst_23 = arith.constant dense<0.000000e+00> : vector<4x256xf32>
    %140 = tpu.matmul %138, %139, %cst_23 {dimension_numbers = #tpu.dot_dimension_numbers<[1], [0], [0], [1], [0, 0, 1, 1], [], []>} : vector<4x4xbf16>, vector<4x256xbf16>, vector<4x256xf32> -> vector<4x256xf32>
    %141 = arith.addf %130, %140 : vector<4x256xf32>
    %142 = vector.extract_strided_slice %98 {offsets = [4, 0, 0], sizes = [1, 4, 4], strides = [1, 1, 1]} : vector<9x4x4xbf16> to vector<1x4x4xbf16>
    %143 = vector.shape_cast %142 : vector<1x4x4xbf16> to vector<4x4xbf16>
    %144 = arith.truncf %97 : vector<4x256xf32> to vector<4x256xbf16>
    %cst_24 = arith.constant dense<0.000000e+00> : vector<4x256xf32>
    %145 = tpu.matmul %143, %144, %cst_24 {dimension_numbers = #tpu.dot_dimension_numbers<[1], [0], [0], [1], [0, 0, 1, 1], [], []>} : vector<4x4xbf16>, vector<4x256xbf16>, vector<4x256xf32> -> vector<4x256xf32>
    %146 = arith.addf %141, %145 : vector<4x256xf32>
    %147 = vector.extract_strided_slice %97 {offsets = [0, 1], sizes = [4, 255], strides = [1, 1]} : vector<4x256xf32> to vector<4x255xf32>
    %148 = vector.extract_strided_slice %97 {offsets = [0, 0], sizes = [4, 1], strides = [1, 1]} : vector<4x256xf32> to vector<4x1xf32>
    %149 = tpu.concatenate %147, %148 in 1 : vector<4x255xf32>, vector<4x1xf32> -> vector<4x256xf32>
    %150 = vector.extract_strided_slice %2 {offsets = [5, 0, 0], sizes = [1, 4, 256], strides = [1, 1, 1]} : vector<9x4x256xf32> to vector<1x4x256xf32>
    %151 = vector.shape_cast %150 : vector<1x4x256xf32> to vector<4x256xf32>
    %152 = arith.mulf %149, %151 : vector<4x256xf32>
    %153 = vector.extract_strided_slice %98 {offsets = [5, 0, 0], sizes = [1, 4, 4], strides = [1, 1, 1]} : vector<9x4x4xbf16> to vector<1x4x4xbf16>
    %154 = vector.shape_cast %153 : vector<1x4x4xbf16> to vector<4x4xbf16>
    %155 = arith.truncf %152 : vector<4x256xf32> to vector<4x256xbf16>
    %cst_25 = arith.constant dense<0.000000e+00> : vector<4x256xf32>
    %156 = tpu.matmul %154, %155, %cst_25 {dimension_numbers = #tpu.dot_dimension_numbers<[1], [0], [0], [1], [0, 0, 1, 1], [], []>} : vector<4x4xbf16>, vector<4x256xbf16>, vector<4x256xf32> -> vector<4x256xf32>
    %157 = arith.addf %146, %156 : vector<4x256xf32>
    %158 = vector.extract_strided_slice %97 {offsets = [0, 15], sizes = [4, 241], strides = [1, 1]} : vector<4x256xf32> to vector<4x241xf32>
    %159 = vector.extract_strided_slice %97 {offsets = [0, 0], sizes = [4, 15], strides = [1, 1]} : vector<4x256xf32> to vector<4x15xf32>
    %160 = tpu.concatenate %158, %159 in 1 : vector<4x241xf32>, vector<4x15xf32> -> vector<4x256xf32>
    %161 = vector.extract_strided_slice %2 {offsets = [6, 0, 0], sizes = [1, 4, 256], strides = [1, 1, 1]} : vector<9x4x256xf32> to vector<1x4x256xf32>
    %162 = vector.shape_cast %161 : vector<1x4x256xf32> to vector<4x256xf32>
    %163 = arith.mulf %160, %162 : vector<4x256xf32>
    %164 = vector.extract_strided_slice %98 {offsets = [6, 0, 0], sizes = [1, 4, 4], strides = [1, 1, 1]} : vector<9x4x4xbf16> to vector<1x4x4xbf16>
    %165 = vector.shape_cast %164 : vector<1x4x4xbf16> to vector<4x4xbf16>
    %166 = arith.truncf %163 : vector<4x256xf32> to vector<4x256xbf16>
    %cst_26 = arith.constant dense<0.000000e+00> : vector<4x256xf32>
    %167 = tpu.matmul %165, %166, %cst_26 {dimension_numbers = #tpu.dot_dimension_numbers<[1], [0], [0], [1], [0, 0, 1, 1], [], []>} : vector<4x4xbf16>, vector<4x256xbf16>, vector<4x256xf32> -> vector<4x256xf32>
    %168 = arith.addf %157, %167 : vector<4x256xf32>
    %169 = vector.extract_strided_slice %97 {offsets = [0, 16], sizes = [4, 240], strides = [1, 1]} : vector<4x256xf32> to vector<4x240xf32>
    %170 = vector.extract_strided_slice %97 {offsets = [0, 0], sizes = [4, 16], strides = [1, 1]} : vector<4x256xf32> to vector<4x16xf32>
    %171 = tpu.concatenate %169, %170 in 1 : vector<4x240xf32>, vector<4x16xf32> -> vector<4x256xf32>
    %172 = vector.extract_strided_slice %2 {offsets = [7, 0, 0], sizes = [1, 4, 256], strides = [1, 1, 1]} : vector<9x4x256xf32> to vector<1x4x256xf32>
    %173 = vector.shape_cast %172 : vector<1x4x256xf32> to vector<4x256xf32>
    %174 = arith.mulf %171, %173 : vector<4x256xf32>
    %175 = vector.extract_strided_slice %98 {offsets = [7, 0, 0], sizes = [1, 4, 4], strides = [1, 1, 1]} : vector<9x4x4xbf16> to vector<1x4x4xbf16>
    %176 = vector.shape_cast %175 : vector<1x4x4xbf16> to vector<4x4xbf16>
    %177 = arith.truncf %174 : vector<4x256xf32> to vector<4x256xbf16>
    %cst_27 = arith.constant dense<0.000000e+00> : vector<4x256xf32>
    %178 = tpu.matmul %176, %177, %cst_27 {dimension_numbers = #tpu.dot_dimension_numbers<[1], [0], [0], [1], [0, 0, 1, 1], [], []>} : vector<4x4xbf16>, vector<4x256xbf16>, vector<4x256xf32> -> vector<4x256xf32>
    %179 = arith.addf %168, %178 : vector<4x256xf32>
    %180 = vector.extract_strided_slice %97 {offsets = [0, 17], sizes = [4, 239], strides = [1, 1]} : vector<4x256xf32> to vector<4x239xf32>
    %181 = vector.extract_strided_slice %97 {offsets = [0, 0], sizes = [4, 17], strides = [1, 1]} : vector<4x256xf32> to vector<4x17xf32>
    %182 = tpu.concatenate %180, %181 in 1 : vector<4x239xf32>, vector<4x17xf32> -> vector<4x256xf32>
    %183 = vector.extract_strided_slice %2 {offsets = [8, 0, 0], sizes = [1, 4, 256], strides = [1, 1, 1]} : vector<9x4x256xf32> to vector<1x4x256xf32>
    %184 = vector.shape_cast %183 : vector<1x4x256xf32> to vector<4x256xf32>
    %185 = arith.mulf %182, %184 : vector<4x256xf32>
    %186 = vector.extract_strided_slice %98 {offsets = [8, 0, 0], sizes = [1, 4, 4], strides = [1, 1, 1]} : vector<9x4x4xbf16> to vector<1x4x4xbf16>
    %187 = vector.shape_cast %186 : vector<1x4x4xbf16> to vector<4x4xbf16>
    %188 = arith.truncf %185 : vector<4x256xf32> to vector<4x256xbf16>
    %cst_28 = arith.constant dense<0.000000e+00> : vector<4x256xf32>
    %189 = tpu.matmul %187, %188, %cst_28 {dimension_numbers = #tpu.dot_dimension_numbers<[1], [0], [0], [1], [0, 0, 1, 1], [], []>} : vector<4x4xbf16>, vector<4x256xbf16>, vector<4x256xf32> -> vector<4x256xf32>
    %190 = arith.addf %179, %189 : vector<4x256xf32>
    %c0_29 = arith.constant 0 : index
    %c0_30 = arith.constant 0 : index
    %191 = vector.load %arg2[%c0_29, %c0_30] : memref<256x256xf32, #tpu.memory_space<vmem>>, vector<256x256xf32>
    %cst_31 = arith.constant dense<0.000000e+00> : vector<4x256xf32>
    %192 = tpu.matmul %1, %191, %cst_31 {dimension_numbers = #tpu.dot_dimension_numbers<[1], [0], [0], [1], [0, 0, 1, 1], [], []>} : vector<4x256xf32>, vector<256x256xf32>, vector<4x256xf32> -> vector<4x256xf32>
    %c0_32 = arith.constant 0 : index
    %c0_33 = arith.constant 0 : index
    %193 = vector.load %arg3[%c0_32, %c0_33] : memref<256x256xf32, #tpu.memory_space<vmem>>, vector<256x256xf32>
    %cst_34 = arith.constant dense<0.000000e+00> : vector<4x256xf32>
    %194 = tpu.matmul %1, %193, %cst_34 {dimension_numbers = #tpu.dot_dimension_numbers<[1], [0], [0], [1], [0, 0, 1, 1], [], []>} : vector<4x256xf32>, vector<256x256xf32>, vector<4x256xf32> -> vector<4x256xf32>
    %c0_35 = arith.constant 0 : index
    %c0_36 = arith.constant 0 : index
    %195 = vector.load %arg9[%c0_35, %c0_36] : memref<8x8xbf16, #tpu.memory_space<vmem>>, vector<8x8xbf16>
    %c0_37 = arith.constant 0 : index
    %c0_38 = arith.constant 0 : index
    %196 = vector.load %arg10[%c0_37, %c0_38] : memref<8x8xbf16, #tpu.memory_space<vmem>>, vector<8x8xbf16>
    %197 = arith.truncf %192 : vector<4x256xf32> to vector<4x256xbf16>
    %198 = arith.truncf %194 : vector<4x256xf32> to vector<4x256xbf16>
    %199 = vector.extract_strided_slice %195 {offsets = [0, 0], sizes = [4, 4], strides = [1, 1]} : vector<8x8xbf16> to vector<4x4xbf16>
    %cst_39 = arith.constant dense<0.000000e+00> : vector<4x256xf32>
    %200 = tpu.matmul %199, %197, %cst_39 {dimension_numbers = #tpu.dot_dimension_numbers<[1], [0], [0], [1], [0, 0, 1, 1], [], []>} : vector<4x4xbf16>, vector<4x256xbf16>, vector<4x256xf32> -> vector<4x256xf32>
    %201 = vector.extract_strided_slice %195 {offsets = [0, 4], sizes = [4, 4], strides = [1, 1]} : vector<8x8xbf16> to vector<4x4xbf16>
    %cst_40 = arith.constant dense<0.000000e+00> : vector<4x256xf32>
    %202 = tpu.matmul %201, %198, %cst_40 {dimension_numbers = #tpu.dot_dimension_numbers<[1], [0], [0], [1], [0, 0, 1, 1], [], []>} : vector<4x4xbf16>, vector<4x256xbf16>, vector<4x256xf32> -> vector<4x256xf32>
    %203 = arith.addf %200, %202 : vector<4x256xf32>
    %204 = vector.extract_strided_slice %195 {offsets = [4, 0], sizes = [4, 4], strides = [1, 1]} : vector<8x8xbf16> to vector<4x4xbf16>
    %cst_41 = arith.constant dense<0.000000e+00> : vector<4x256xf32>
    %205 = tpu.matmul %204, %197, %cst_41 {dimension_numbers = #tpu.dot_dimension_numbers<[1], [0], [0], [1], [0, 0, 1, 1], [], []>} : vector<4x4xbf16>, vector<4x256xbf16>, vector<4x256xf32> -> vector<4x256xf32>
    %206 = vector.extract_strided_slice %195 {offsets = [4, 4], sizes = [4, 4], strides = [1, 1]} : vector<8x8xbf16> to vector<4x4xbf16>
    %cst_42 = arith.constant dense<0.000000e+00> : vector<4x256xf32>
    %207 = tpu.matmul %206, %198, %cst_42 {dimension_numbers = #tpu.dot_dimension_numbers<[1], [0], [0], [1], [0, 0, 1, 1], [], []>} : vector<4x4xbf16>, vector<4x256xbf16>, vector<4x256xf32> -> vector<4x256xf32>
    %208 = arith.addf %205, %207 : vector<4x256xf32>
    %cst_43 = arith.constant 0.000000e+00 : f32
    %209 = vector.broadcast %cst_43 : f32 to vector<4x256xf32>
    %210 = arith.maximumf %203, %209 : vector<4x256xf32>
    %cst_44 = arith.constant 0.000000e+00 : f32
    %211 = vector.broadcast %cst_44 : f32 to vector<4x256xf32>
    %212 = arith.maximumf %208, %211 : vector<4x256xf32>
    %213 = arith.truncf %210 : vector<4x256xf32> to vector<4x256xbf16>
    %214 = arith.truncf %212 : vector<4x256xf32> to vector<4x256xbf16>
    %215 = vector.extract_strided_slice %196 {offsets = [0, 0], sizes = [4, 4], strides = [1, 1]} : vector<8x8xbf16> to vector<4x4xbf16>
    %cst_45 = arith.constant dense<0.000000e+00> : vector<4x256xf32>
    %216 = tpu.matmul %215, %213, %cst_45 {dimension_numbers = #tpu.dot_dimension_numbers<[1], [0], [0], [1], [0, 0, 1, 1], [], []>} : vector<4x4xbf16>, vector<4x256xbf16>, vector<4x256xf32> -> vector<4x256xf32>
    %217 = vector.extract_strided_slice %196 {offsets = [0, 4], sizes = [4, 4], strides = [1, 1]} : vector<8x8xbf16> to vector<4x4xbf16>
    %cst_46 = arith.constant dense<0.000000e+00> : vector<4x256xf32>
    %218 = tpu.matmul %217, %214, %cst_46 {dimension_numbers = #tpu.dot_dimension_numbers<[1], [0], [0], [1], [0, 0, 1, 1], [], []>} : vector<4x4xbf16>, vector<4x256xbf16>, vector<4x256xf32> -> vector<4x256xf32>
    %219 = arith.addf %216, %218 : vector<4x256xf32>
    %220 = vector.extract_strided_slice %196 {offsets = [4, 0], sizes = [4, 4], strides = [1, 1]} : vector<8x8xbf16> to vector<4x4xbf16>
    %cst_47 = arith.constant dense<0.000000e+00> : vector<4x256xf32>
    %221 = tpu.matmul %220, %213, %cst_47 {dimension_numbers = #tpu.dot_dimension_numbers<[1], [0], [0], [1], [0, 0, 1, 1], [], []>} : vector<4x4xbf16>, vector<4x256xbf16>, vector<4x256xf32> -> vector<4x256xf32>
    %222 = vector.extract_strided_slice %196 {offsets = [4, 4], sizes = [4, 4], strides = [1, 1]} : vector<8x8xbf16> to vector<4x4xbf16>
    %cst_48 = arith.constant dense<0.000000e+00> : vector<4x256xf32>
    %223 = tpu.matmul %222, %214, %cst_48 {dimension_numbers = #tpu.dot_dimension_numbers<[1], [0], [0], [1], [0, 0, 1, 1], [], []>} : vector<4x4xbf16>, vector<4x256xbf16>, vector<4x256xf32> -> vector<4x256xf32>
    %224 = arith.addf %221, %223 : vector<4x256xf32>
    %c0_49 = arith.constant 0 : index
    %c0_50 = arith.constant 0 : index
    %225 = vector.load %arg4[%c0_49, %c0_50] : memref<256x256xf32, #tpu.memory_space<vmem>>, vector<256x256xf32>
    %cst_51 = arith.constant dense<0.000000e+00> : vector<4x256xf32>
    %226 = tpu.matmul %219, %225, %cst_51 {dimension_numbers = #tpu.dot_dimension_numbers<[1], [0], [0], [1], [0, 0, 1, 1], [], []>} : vector<4x256xf32>, vector<256x256xf32>, vector<4x256xf32> -> vector<4x256xf32>
    %c0_52 = arith.constant 0 : index
    %c0_53 = arith.constant 0 : index
    %227 = vector.load %arg5[%c0_52, %c0_53] : memref<256x256xf32, #tpu.memory_space<vmem>>, vector<256x256xf32>
    %cst_54 = arith.constant dense<0.000000e+00> : vector<4x256xf32>
    %228 = tpu.matmul %224, %227, %cst_54 {dimension_numbers = #tpu.dot_dimension_numbers<[1], [0], [0], [1], [0, 0, 1, 1], [], []>} : vector<4x256xf32>, vector<256x256xf32>, vector<4x256xf32> -> vector<4x256xf32>
    %229 = arith.addf %226, %228 : vector<4x256xf32>
    %230 = arith.addf %190, %1 : vector<4x256xf32>
    %231 = arith.addf %230, %229 : vector<4x256xf32>
    %c0_55 = arith.constant 0 : index
    %c0_56 = arith.constant 0 : index
    %c0_57 = arith.constant 0 : index
    %232 = vector.load %arg11[%c0_55, %c0_56, %c0_57] : memref<1x4x256xf32, #tpu.memory_space<vmem>>, vector<1x4x256xf32>
    %233 = vector.shape_cast %232 : vector<1x4x256xf32> to vector<4x256xf32>
    %234 = vector.shape_cast %231 : vector<4x256xf32> to vector<1x4x256xf32>
    tpu.vector_store %arg11[%c0_55, %c0_56, %c0_57], %234 {strides = array<i32>} : memref<1x4x256xf32, #tpu.memory_space<vmem>>, vector<1x4x256xf32>,
    return
  }
  func.func @transform_0(%arg0: i32) -> (i32, i32, i32) {
    %c0_i32 = arith.constant 0 : i32
    %c0_i32_0 = arith.constant 0 : i32
    %c0_i32_1 = arith.constant 0 : i32
    return %arg0, %c0_i32, %c0_i32_0 : i32, i32, i32
  }
  func.func @transform_1(%arg0: i32) -> (i32, i32) {
    %c0_i32 = arith.constant 0 : i32
    %c0_i32_0 = arith.constant 0 : i32
    %c0_i32_1 = arith.constant 0 : i32
    return %c0_i32, %c0_i32_0 : i32, i32
  }
  func.func @transform_2(%arg0: i32) -> (i32, i32) {
    %c0_i32 = arith.constant 0 : i32
    %c0_i32_0 = arith.constant 0 : i32
    %c0_i32_1 = arith.constant 0 : i32
    return %c0_i32, %c0_i32_0 : i32, i32
  }
  func.func @transform_3(%arg0: i32) -> (i32, i32) {
    %c0_i32 = arith.constant 0 : i32
    %c0_i32_0 = arith.constant 0 : i32
    %c0_i32_1 = arith.constant 0 : i32
    return %c0_i32, %c0_i32_0 : i32, i32
  }
  func.func @transform_4(%arg0: i32) -> (i32, i32) {
    %c0_i32 = arith.constant 0 : i32
    %c0_i32_0 = arith.constant 0 : i32
    %c0_i32_1 = arith.constant 0 : i32
    return %c0_i32, %c0_i32_0 : i32, i32
  }
  func.func @transform_5(%arg0: i32) -> (i32, i32, i32) {
    %c0_i32 = arith.constant 0 : i32
    %c0_i32_0 = arith.constant 0 : i32
    %c0_i32_1 = arith.constant 0 : i32
    %c0_i32_2 = arith.constant 0 : i32
    return %c0_i32, %c0_i32_0, %c0_i32_1 : i32, i32, i32
  }
  func.func @transform_6(%arg0: i32) -> (i32, i32, i32) {
    %c0_i32 = arith.constant 0 : i32
    %c0_i32_0 = arith.constant 0 : i32
    %c0_i32_1 = arith.constant 0 : i32
    %c0_i32_2 = arith.constant 0 : i32
    return %c0_i32, %c0_i32_0, %c0_i32_1 : i32, i32, i32
  }
  func.func @transform_7(%arg0: i32) -> (i32, i32, i32) {
    %c0_i32 = arith.constant 0 : i32
    %c0_i32_0 = arith.constant 0 : i32
    %c0_i32_1 = arith.constant 0 : i32
    %c0_i32_2 = arith.constant 0 : i32
    return %c0_i32, %c0_i32_0, %c0_i32_1 : i32, i32, i32
  }
  func.func @transform_8(%arg0: i32) -> (i32, i32) {
    %c0_i32 = arith.constant 0 : i32
    %c0_i32_0 = arith.constant 0 : i32
    %c0_i32_1 = arith.constant 0 : i32
    return %c0_i32, %c0_i32_0 : i32, i32
  }
  func.func @transform_9(%arg0: i32) -> (i32, i32) {
    %c0_i32 = arith.constant 0 : i32
    %c0_i32_0 = arith.constant 0 : i32
    %c0_i32_1 = arith.constant 0 : i32
    return %c0_i32, %c0_i32_0 : i32, i32
  }
  func.func @transform_10(%arg0: i32) -> (i32, i32, i32) {
    %c0_i32 = arith.constant 0 : i32
    %c0_i32_0 = arith.constant 0 : i32
    %c0_i32_1 = arith.constant 0 : i32
    return %arg0, %c0_i32, %c0_i32_0 : i32, i32, i32
  }
}

</mosaic_0001>

<bundles_post_ra>
// kernel: tpu_custom_call.1
= control target key start
LH: loop header
LB: loop body
LE: loop exit
PB: predicated region body
PF: predicated region fallthrough
CT: control target
= control target key end

     0   :  { %6 = vsyncpa [#allocation3], 0  ;;  %s118_s0 = inlined_call_operand.hbm [shape: f32[8,128], index: 0, kind: input, shape index: {}]   ;;  %s119_s1 = inlined_call_operand.hbm [shape: f32[8,128], index: 1, kind: output, shape index: {}]  }
   0x1   :  { %7 = vsyncpa [#allocation4], 0  ;;  %s13_s8 = sshll.u32 %s118_s0, 4  ;;  %s99_s9 = smov [#allocation2]   ;;  %s14_s8 = int_to_ptr.hbm [resolvable:$true] %s13_s8 }
   0x2   :  { %s15_s10 = sshll.u32 %s99_s9, 4  ;;  %s16_s10 = int_to_ptr.vmem [resolvable:$true] %s15_s10 }
   0x3   :  { %18 = dma.hbm_to_vmem [thread:$0]  %s14_s8, 128, %s16_s10, [#allocation3]  }
   0x4   :  { %95 = dma.done.wait [#allocation3], 128  }
   0x5   :  { %96 = vsyncadd [#allocation3], 4294967168  ;;  %v23_v0 = vld [vmem:[#allocation2] sm:$0xff]  ;;  %s100_s11 = smov 1   ;;  %s101_s12 = smov [#allocation5]  }
   0x6   :  { %24 = vrot.lane.b32.xlu0 %v23_v0, %s100_s11  ;;  %s32_s13 = sshll.u32 %s101_s12, 4  ;;  %s34_s16 = sshll.u32 %s119_s1, 4  ;;  %s33_s13 = int_to_ptr.vmem [resolvable:$true] %s32_s13  ;;  %s35_s16 = int_to_ptr.hbm [resolvable:$true] %s34_s16 }
  0x78   :  { %v25_v1 = vpop.permute.xlu0 %24 }
  0x79   :  { %26 = vst [vmem:[#allocation5] sm:$0xff] %v25_v1 }
  0x7a   :  { %37 = dma.vmem_to_hbm [thread:$0]  %s33_s13, 128, %s35_s16, [#allocation4]  }
  0x7b   :  { %97 = dma.done.wait [#allocation4], 128  }
  0x7c   :  { %98 = vsyncadd [#allocation4], 4294967168 }
  0x7d   :  { %42 = vsyncpa [#allocation3], 1 }
  0x7e   :  { %43 = vsyncpa [#allocation4], 1 }

// kernel: tpu_custom_call.1
= control target key start
LH: loop header
LB: loop body
LE: loop exit
PB: predicated region body
PF: predicated region fallthrough
CT: control target
= control target key end

     0   :  { %s3566_s0 = inlined_call_operand.vmem [shape: f32[2,4,256], index: 0, kind: input, shape index: {}]   ;;  %s3567_s1 = inlined_call_operand.hbm [shape: f32[256,256], index: 1, kind: input, shape index: {}]   ;;  %s3568_s2 = inlined_call_operand.hbm [shape: f32[256,256], index: 2, kind: input, shape index: {}]   ;;  %s3569_s3 = inlined_call_operand.hbm [shape: f32[256,256], index: 3, kind: input, shape index: {}]   ;;  %s3570_s4 = inlined_call_operand.hbm [shape: f32[256,256], index: 4, kind: input, shape index: {}]   ;;  %s3571_s5 = inlined_call_operand.hbm [shape: f32[9,4,256], index: 5, kind: input, shape index: {}]   ;;  %s3572_s6 = inlined_call_operand.vmem [shape: bf16[9,4,4], index: 6, kind: input, shape index: {}]   ;;  %s3573_s7 = inlined_call_operand.vmem [shape: bf16[9,4,4], index: 7, kind: input, shape index: {}]   ;;  %s3574_s8 = inlined_call_operand.vmem [shape: bf16[8,8], index: 8, kind: input, shape index: {}]   ;;  %s3575_s9 = inlined_call_operand.vmem [shape: bf16[8,8], index: 9, kind: input, shape index: {}]   ;;  %s3576_s10 = inlined_call_operand.hbm [shape: f32[2,4,256], index: 10, kind: output, shape index: {}]  }
   0x1   :  { %3581 = sst [smem:[#allocation20_spill]] %s3568_s2 }
   0x2   :  { %3582 = sst [smem:[#allocation21_spill]] %s3570_s4 }
   0x3   :  { %15 = vsyncpa [#allocation3], 0 }
   0x4   :  { %16 = vsyncpa [#allocation6], 0 }
   0x5   :  { %17 = vsyncpa [#allocation9], 0 }
   0x6   :  { %18 = vsyncpa [#allocation4], 0 }
   0x7   :  { %20 = vsyncpa [#allocation4 + $0x1], 0  ;;  %s2995_s13 = smov 0   ;;  %s2997_s14 = smov 0  }
   0x8   :  { %s2999_s15 = smov 0   ;;  %s3001_s16 = smov 0  }
   0x9 LB: > { %3583 = sst [smem:[#allocation16_spill]] %s2916_s15  ;;  %s3016_s17 = sadd.s32 4294967295, %s2920_s16   ;;  %s2920_s16 = sphi %s3001_s16, %s3594_s16   ;;  %s2916_s15 = sphi %s2999_s15, %s3596_s15   ;;  %s2912_s14 = sphi %s2997_s14, %s3598_s14   ;;  %s2908_s13 = sphi %s2995_s13, %s3597_s13  }
   0xa   : > { %s2517_s18 = sadd.s32 4294967294, %s2920_s16   ;;  %s3020_s19 = sadd.s32 1, %s2920_s16  }
   0xb   : > { %3584 = sst [smem:[#allocation17_spill]] %s3020_s19  ;;  %s248_s20 = sadd.s32 1, %s2916_s15 }
   0xc   : > { %s245_s21 = ssub.s32 %s2920_s16, %s3020_s19  ;;  %p258_p0 = scmp.ne.s32.totalorder %s2916_s15, %s2912_s14 }
   0xd   : > { %p246_p1 = scmp.eq.s32.totalorder %s245_s21, 0  ;;  %p259_p2 = scmp.eq.s32.totalorder %s3016_s17, 1 }
   0xe   : > { %p264_p3 = scmp.ne.s32.totalorder %s2912_s14, %s2908_s13  ;;  %p265_p4 = scmp.eq.s32.totalorder %s2517_s18, 1 }
   0xf   : > { %s3031_s22 = scalar_select %p246_p1, %s2916_s15, %s248_s20  }
  0x10   : > { %p3033_p5 = por %p259_p2, %p258_p0  ;;  %p3037_p6 = por %p265_p4, %p264_p3 }
  0x11   : > { %3585 = sst [smem:[#allocation18_spill]] %s3031_s22  ;;  %p2518_p7 = scmp.ge.s32.totalorder %s2920_s16, 1 }
  0x12   : > { %s3587_s24 = scalar_select %p3037_p6, 1, 0 }
  0x13   : > { %p272_p8 = scmp.lt.s32.totalorder %s2920_s16, 3  ;;  %p2635_p9 = scmp.eq.s32.totalorder %s3016_s17, 0 }
  0x14   : > { %3588 = sst [smem:[#allocation19_spill]] %s3587_s24  ;;  %s2922_s18 = smov [#allocation5]  }
  0x15   : > { %p3044_p10 = pnand %p2518_p7, %p272_p8  ;;  %s3590_s2 = sld [smem:[#allocation20_spill]] }
  0x16   : > { %s3591_s4 = sld [smem:[#allocation21_spill]]  ;;  %s299_s20 = sshll.u32 %s2922_s18, 4  ;;  %s300_s20 = int_to_ptr.vmem [resolvable:$true] %s299_s20 }
  0x17   : > { %p2615_p11 = pneg %p3044_p10  ;;  %s2923_s21 = smov 256  }
  0x18   : > { %s2924_s26 = smov 16   ;;  %s2925_s27 = smov [#allocation8]  }
  0x19   : > { %p3058_p12 = pnand %p2635_p9, %p2615_p11  ;;  %s311_s15 = sshll.u32 %s3569_s3, 4  ;;  %s312_s15 = int_to_ptr.hbm [resolvable:$true] %s311_s15 }
  0x1a   : > { %s2926_s19 = smov [#allocation2]   ;;  %s339_s30 = sshll.u32 %s3571_s5, 4  ;;  %s340_s30 = int_to_ptr.hbm [resolvable:$true] %s339_s30 }
  0x1b   : > { %s297_s28 = sshll.u32 %s3590_s2, 4  ;;  %s327_s2 = sshll.u32 %s2925_s27, 4  ;;  %s298_s28 = int_to_ptr.hbm [resolvable:$true] %s297_s28  ;;  %s328_s2 = int_to_ptr.vmem [resolvable:$true] %s327_s2 }
  0x1c   : > { %s325_s11 = sshll.u32 %s3591_s4, 4  ;;  %s283_s4 = sshll.u32 %s3567_s1, 4  ;;  %s326_s11 = int_to_ptr.hbm [resolvable:$true] %s325_s11  ;;  %s284_s4 = int_to_ptr.hbm [resolvable:$true] %s283_s4 }
  0x1d   : > { %2621 = dma.hbm_to_vmem [thread:$0]  (!%p3058_p12), %s298_s28, 8192, %s300_s20, [#allocation6], %s2923_s21, %s2923_s21, %s2924_s26  }
  0x1e   : > { %2627 = dma.hbm_to_vmem [thread:$0]  (!%p3058_p12), %s326_s11, 8192, %s328_s2, [#allocation9], %s2923_s21, %s2923_s21, %s2924_s26  }
  0x1f   : > { %s285_s24 = sshll.u32 %s2926_s19, 4  ;;  %s2927_s28 = smov [#allocation7]   ;;  %s286_s24 = int_to_ptr.vmem [resolvable:$true] %s285_s24 }
  0x20   : > { %2618 = dma.hbm_to_vmem [thread:$0]  (!%p3058_p12), %s284_s4, 8192, %s286_s24, [#allocation3], %s2923_s21, %s2923_s21, %s2924_s26  }
  0x21   : > { %s313_s20 = sshll.u32 %s2927_s28, 4  ;;  %s2928_s2 = smov [#allocation10]   ;;  %s314_s20 = int_to_ptr.vmem [resolvable:$true] %s313_s20 }
  0x22   : > { %2624 = dma.hbm_to_vmem [thread:$0]  (!%p3058_p12), %s312_s15, 8192, %s314_s20, [#allocation6], %s2923_s21, %s2923_s21, %s2924_s26  }
  0x23   : > { %s341_s22 = sshll.u32 %s2928_s2, 4  ;;  %s2929_s11 = smov 128   ;;  %s342_s22 = int_to_ptr.vmem [resolvable:$true] %s341_s22 }
  0x24   : > { %s2930_s18 = smov 8   ;;  %377 = sbr.rel (%p3044_p10) target bundleno = 1320 (0x528), region = 60 }
  0x25   : > { %2630 = dma.hbm_to_vmem [thread:$0]  (!%p3058_p12), %s340_s30, 1152, %s342_s22, [#allocation9], %s2929_s11, %s2929_s11, %s2930_s18  }
  0x29   : > { %2891 = dma.done.wait (%p2635_p9), [#allocation3], 8192  }
  0x2a   : > { %2893 = vsyncadd (%p2635_p9), [#allocation3], 4294959104 }
  0x2b   : > { %2895 = dma.done.wait (%p2635_p9), [#allocation6], 16384  }
  0x2c   : > { %2897 = vsyncadd (%p2635_p9), [#allocation6], 4294950912 }
  0x2d   : > { %2899 = dma.done.wait (%p2635_p9), [#allocation9], 9344  }
  0x2e   : > { %2901 = vsyncadd (%p2635_p9), [#allocation9], 4294957952  ;;  %p436_p13 = scmp.lt.s32.totalorder %s3016_s17, 1  ;;  %v3104_v2 = vld [vmem:[#allocation10] sm:$0xff]  ;;  %s2931_s12 = smov 17   ;;  %v3116_v8 = vld [vmem:[#allocation10 + $0x8] sm:$0xff] }
  0x2f   : > { %s2932_s21 = smov 16   ;;  %s2933_s26 = smov 15   ;;  %v3129_v14 = vld [vmem:[#allocation10 + $0x10] sm:$0xff]  ;;  %v3141_v20 = vld [vmem:[#allocation10 + $0x18] sm:$0xff]  ;;  %v3159_v29 = vld [vmem:[#allocation10 + $0x28] sm:$0xff]  ;;  %vm500_vm0 = vcmask 130048  }
  0x30   : > { %s437_s4 = scalar_select %p436_p13, %s3016_s17, 1  ;;  %v3171_v35 = vld [vmem:[#allocation10 + $0x30] sm:$0xff]  ;;  %vm473_vm1 = vcmask 138240   ;;  %vm519_vm2 = vcmask 1041408   ;;  %v3191_v58 = vld [vmem:[#allocation10 + $0x38] sm:$0xff]  ;;  %vm515_vm3 = vcmask 31744  }
  0x31   : > { %s2934_s28 = smov 1   ;;  %s2935_s20 = smov 127   ;;  %vm599_vm4 = vcmask 121856   ;;  %vm663_vm5 = vcmask 7168   ;;  %vm766_vm6 = vcmask 1039360   ;;  %vm830_vm7 = vcmask 924672  }
  0x32   : > { %s2591_s15 = sshll.u32 %s437_s4, 3  ;;  %s2936_s27 = smov 113   ;;  %vm894_vm8 = vcmask 916480   ;;  %vm958_vm9 = vcmask 908288   ;;  %vm2387_vm10 = vcmask 1043456  }
  0x33   : > { %s440_s25 = scalar_lea.vmem %s3566_s0, %s2591_s15  ;;  %s2937_s29 = smov 112  }
  0x34   : > { %v3100_v0 = vld [vmem:[%s440_s25] sm:$0xff]  ;;  %s2938_s18 = smov 111   ;;  %s2592_s30 = sshll.u32 %s3016_s17, 3 }
  0x35   : > { %461 = vst [vmem:[#allocation1] ss:$2 sm:$0xff] %v3100_v0  ;;  %s2403_s11 = scalar_lea.hbm %s3576_s10, %s2592_s30 }
  0x36   : > { %s2407_s15 = sshll.u32 %s2403_s11, 4  ;;  %s2408_s15 = int_to_ptr.hbm [resolvable:$true] %s2407_s15 }
  0x37   : > { %s2860_s24 = sshra.s32 %s2408_s15, 4  ;;  %s2861_s24 = int_to_ptr.hbm [resolvable:$true] %s2860_s24 }
  0x38   : > { %s2862_s25 = scalar_lea.hbm %s2861_s24, 8  ;;  %p2867_p3 = scmp.lt.s32.totalorder %s2861_s24, %s3576_s10 }
  0x39   : > { %p2863_p0 = scmp.ne.s32.totalorder %s2861_s24, %s2862_s25 }
  0x3b   : > { %p2864_p1 = pnand %p2863_p0, %p3033_p5 }
  0x3c   : > { %v462_v1 = vld.sshfl [vmem:[#allocation1 + $0x8] sm:$0xff pattern:$0x75316420] }
  0x3d   : > { %466 = vst [vmem:[#allocation1] ss:$2 sm:$0xff] %v3100_v0  ;;  %p2865_p2 = pneg %p2864_p1 }
  0x44   : > { %v467_v3 = vld.sshfl [vmem:[#allocation1] sm:$0xff pattern:$0x75316420]  ;;  %v468_v4 = vld.sshfl [vmem:[#allocation1 + $0x8] sm:$0xff pattern:$0x75316420] }
  0x45   : > { %479 = vst [vmem:[#allocation1] ss:$2 sm:$0xff] %v3104_v2  ;;  %469 = vrot.lane.b32.xlu2 %v467_v3, %s2931_s12 }
  0x4c   : > { %v3108_v5 = vld.sshfl [vmem:[#allocation1] sm:$0xff pattern:$0x75316420]  ;;  %v3110_v6 = vld.sshfl [vmem:[#allocation1 + $0x8] sm:$0xff pattern:$0x75316420] }
  0x4d   : > { %488 = vst [vmem:[#allocation1] ss:$2 sm:$0xff] %v3100_v0  ;;  %471 = vrot.lane.b32.xlu2 %v468_v4, %s2931_s12  ;;  %v451_v4 = vld [vmem:[%s3572_s6] sm:$0x3] }
  0x54   : > { %v489_v7 = vld.sshfl [vmem:[#allocation1 + $0x8] sm:$0xff pattern:$0x75316420] }
  0x55   : > { %490 = vrot.lane.b32.xlu0 %v489_v7, %s2932_s21  ;;  %493 = vst [vmem:[#allocation1] ss:$2 sm:$0xff] %v3100_v0 }
  0x5c   : > { %v495_v9 = vld.sshfl [vmem:[#allocation1 + $0x8] sm:$0xff pattern:$0x75316420]  ;;  %v494_v10 = vld.sshfl [vmem:[#allocation1] sm:$0xff pattern:$0x75316420] }
  0x5d   : > { %498 = vrot.lane.b32.xlu1 %v495_v9, %s2932_s21  ;;  %496 = vrot.lane.b32.xlu0 %v494_v10, %s2932_s21  ;;  %506 = vst [vmem:[#allocation1] ss:$2 sm:$0xff] %v3116_v8 }
  0x64   : > { %v3121_v11 = vld.sshfl [vmem:[#allocation1] sm:$0xff pattern:$0x75316420]  ;;  %v3123_v12 = vld.sshfl [vmem:[#allocation1 + $0x8] sm:$0xff pattern:$0x75316420] }
  0x65   : > { %463 = vrot.lane.b32.xlu1 %v462_v1, %s2931_s12  ;;  %587 = vst [vmem:[#allocation1] ss:$2 sm:$0xff] %v3100_v0  ;;  %v452_v1 = vld [vmem:[%s3572_s6 + $0x2] sm:$0x3] }
  0x6c   : > { %v588_v13 = vld.sshfl [vmem:[#allocation1 + $0x8] sm:$0xff pattern:$0x75316420] }
  0x6d   : > { %589 = vrot.lane.b32.xlu0 %v588_v13, %s2933_s26  ;;  %592 = vst [vmem:[#allocation1] ss:$2 sm:$0xff] %v3100_v0 }
  0x74   : > { %v593_v15 = vld.sshfl [vmem:[#allocation1] sm:$0xff pattern:$0x75316420]  ;;  %v594_v16 = vld.sshfl [vmem:[#allocation1 + $0x8] sm:$0xff pattern:$0x75316420] }
  0x75   : > { %595 = vrot.lane.b32.xlu1 %v593_v15, %s2933_s26  ;;  %605 = vst [vmem:[#allocation1] ss:$2 sm:$0xff] %v3129_v14  ;;  %597 = vrot.lane.b32.xlu2 %v594_v16, %s2933_s26 }
  0x7c   : > { %v3134_v17 = vld.sshfl [vmem:[#allocation1] sm:$0xff pattern:$0x75316420]  ;;  %v3136_v18 = vld.sshfl [vmem:[#allocation1 + $0x8] sm:$0xff pattern:$0x75316420] }
  0x7d   : > { %651 = vst [vmem:[#allocation1] ss:$2 sm:$0xff] %v3100_v0 }
  0x84   : > { %v652_v19 = vld.sshfl [vmem:[#allocation1 + $0x8] sm:$0xff pattern:$0x75316420] }
  0x85   : > { %653 = vrot.lane.b32.xlu0 %v652_v19, %s2934_s28  ;;  %656 = vst [vmem:[#allocation1] ss:$2 sm:$0xff] %v3100_v0 }
  0x8c   : > { %v657_v21 = vld.sshfl [vmem:[#allocation1] sm:$0xff pattern:$0x75316420]  ;;  %v658_v22 = vld.sshfl [vmem:[#allocation1 + $0x8] sm:$0xff pattern:$0x75316420] }
  0x8d   : > { %659 = vrot.lane.b32.xlu1 %v657_v21, %s2934_s28  ;;  %669 = vst [vmem:[#allocation1] ss:$2 sm:$0xff] %v3141_v20  ;;  %661 = vrot.lane.b32.xlu2 %v658_v22, %s2934_s28 }
  0x94   : > { %v3146_v23 = vld.sshfl [vmem:[#allocation1] sm:$0xff pattern:$0x75316420]  ;;  %v3148_v24 = vld.sshfl [vmem:[#allocation1 + $0x8] sm:$0xff pattern:$0x75316420] }
  0x95   : > { %715 = vst [vmem:[#allocation1] ss:$2 sm:$0xff] %v3100_v0 }
  0x9c   : > { %v3151_v25 = vld.sshfl [vmem:[#allocation1] sm:$0xff pattern:$0x75316420]  ;;  %v3153_v26 = vld.sshfl [vmem:[#allocation1 + $0x8] sm:$0xff pattern:$0x75316420] }
  0x9d   : > { %759 = vst [vmem:[#allocation1] ss:$2 sm:$0xff] %v3100_v0 }
  0x9f   : > { %v470_v40 = vpop.permute.xlu2 %469 }
  0xa4   : > { %v761_v27 = vld.sshfl [vmem:[#allocation1 + $0x8] sm:$0xff pattern:$0x75316420]  ;;  %v760_v28 = vld.sshfl [vmem:[#allocation1] sm:$0xff pattern:$0x75316420] }
  0xa5   : > { %764 = vrot.lane.b32.xlu1 %v761_v27, %s2935_s20  ;;  %762 = vrot.lane.b32.xlu0 %v760_v28, %s2935_s20  ;;  %770 = vst [vmem:[#allocation1] ss:$2 sm:$0xff] %v3100_v0 }
  0xa7   : > { %v472_v45 = vpop.permute.xlu2 %471 }
  0xa8   : > { %v474_v48 = vsel %vm473_vm1, %v470_v40, %v472_v45 }
  0xa9   : > { %v485_v52 = vmul.f32 %v3110_v6, %v474_v48 }
  0xab   : > { %v487_v57 = vpack.c.bf16 %v485_v52, %v485_v52 }
  0xac   : > { %v771_v30 = vld.sshfl [vmem:[#allocation1] sm:$0xff pattern:$0x75316420] }
  0xad   : > { %777 = vst [vmem:[#allocation1] ss:$2 sm:$0xff] %v3159_v29  ;;  %772 = vrot.lane.b32.xlu2 %v771_v30, %s2935_s20  ;;  %v559_v62 = vsel %vm519_vm2, %v487_v57, 0  ;;  %v720_v30 = vpack.c.bf16 %v3151_v25, %v3151_v25 }
  0xae   : > { %581 = vmatpush.bf16.msra.mxu3 %v559_v62 }
  0xb1   : > { %2537 = vmatmul.msk.bf16.vlgmr.msra.gmra.mxu3 %vm515_vm3, %v451_v4 }
  0xb4   : > { %v3163_v31 = vld.sshfl [vmem:[#allocation1] sm:$0xff pattern:$0x75316420]  ;;  %v3165_v32 = vld.sshfl [vmem:[#allocation1 + $0x8] sm:$0xff pattern:$0x75316420] }
  0xb5   : > { %823 = vst [vmem:[#allocation1] ss:$2 sm:$0xff] %v3100_v0 }
  0xbc   : > { %v825_v33 = vld.sshfl [vmem:[#allocation1 + $0x8] sm:$0xff pattern:$0x75316420]  ;;  %v824_v34 = vld.sshfl [vmem:[#allocation1] sm:$0xff pattern:$0x75316420] }
  0xbd   : > { %828 = vrot.lane.b32.xlu1 %v825_v33, %s2936_s27  ;;  %826 = vrot.lane.b32.xlu0 %v824_v34, %s2936_s27  ;;  %834 = vst [vmem:[#allocation1] ss:$2 sm:$0xff] %v3100_v0  ;;  %v721_v33 = vpack.c.bf16 %v3153_v26, %v3153_v26 }
  0xc4   : > { %v835_v36 = vld.sshfl [vmem:[#allocation1] sm:$0xff pattern:$0x75316420] }
  0xc5   : > { %836 = vrot.lane.b32.xlu2 %v835_v36, %s2936_s27  ;;  %841 = vst [vmem:[#allocation1] ss:$2 sm:$0xff] %v3171_v35 }
  0xc7   : > { %v491_v39 = vpop.permute.xlu0 %490 }
  0xcc   : > { %v3175_v37 = vld.sshfl [vmem:[#allocation1] sm:$0xff pattern:$0x75316420]  ;;  %v3177_v38 = vld.sshfl [vmem:[#allocation1 + $0x8] sm:$0xff pattern:$0x75316420] }
  0xcd   : > { %887 = vst [vmem:[#allocation1] ss:$2 sm:$0xff] %v3100_v0 }
  0xcf   : > { %v499_v41 = vpop.permute.xlu1 %498  ;;  %v497_v44 = vpop.permute.xlu0 %496 }
  0xd0   : > { %v501_v46 = vsel %vm500_vm0, %v497_v44, %v499_v41  ;;  %v504_v47 = vsel %vm500_vm0, %v491_v39, %v497_v44  ;;  %v598_v7 = vpop.permute.xlu2 %597  ;;  %v726_v39 = vsel %vm519_vm2, %v720_v30, 0  ;;  %v455_v41 = vld [vmem:[%s3572_s6 + $0x8] sm:$0x3] }
  0xd1   : > { %v511_v50 = vmul.f32 %v3121_v11, %v504_v47  ;;  %v512_v51 = vmul.f32 %v3123_v12, %v501_v46 }
  0xd3   : > { %v513_v54 = vpack.c.bf16 %v511_v50, %v511_v50  ;;  %v514_v55 = vpack.c.bf16 %v512_v51, %v512_v51 }
  0xd4   : > { %v889_v42 = vld.sshfl [vmem:[#allocation1 + $0x8] sm:$0xff pattern:$0x75316420]  ;;  %v888_v43 = vld.sshfl [vmem:[#allocation1] sm:$0xff pattern:$0x75316420] }
  0xd5   : > { %892 = vrot.lane.b32.xlu1 %v889_v42, %s2937_s29  ;;  %890 = vrot.lane.b32.xlu0 %v888_v43, %s2937_s29  ;;  %898 = vst [vmem:[#allocation1] ss:$2 sm:$0xff] %v3100_v0  ;;  %v521_v59 = vsel %vm519_vm2, %v513_v54, 0  ;;  %v524_v60 = vsel %vm519_vm2, %v514_v55, 0 }
  0xd6   : > { %533 = vmatpush.bf16.msra.mxu0 %v521_v59  ;;  %546 = vmatpush.bf16.msra.mxu1 %v524_v60  ;;  %v456_v60 = vld [vmem:[%s3572_s6 + $0xa] sm:$0x3] }
  0xd7   : > { %v464_v49 = vpop.permute.xlu1 %463 }
  0xd8   : > { %v477_v53 = vsel %vm473_vm1, %v464_v49, %v470_v40  ;;  %v729_v40 = vsel %vm519_vm2, %v721_v33, 0  ;;  %v454_v49 = vld [vmem:[%s3572_s6 + $0x6] sm:$0x3] }
  0xd9   : > { %v484_v56 = vmul.f32 %v3108_v5, %v477_v53  ;;  %2535 = vmatmul.msk.bf16.vlgmr.msra.gmra.mxu1 %vm515_vm3, %v452_v1  ;;  %2534 = vmatmul.msk.bf16.vlgmr.msra.gmra.mxu0 %vm515_vm3, %v452_v1 }
  0xdb   : > { %v486_v61 = vpack.c.bf16 %v484_v56, %v484_v56 }
  0xdc   : > { %v899_v63 = vld.sshfl [vmem:[#allocation1] sm:$0xff pattern:$0x75316420] }
  0xdd   : > { %900 = vrot.lane.b32.xlu2 %v899_v63, %s2937_s29  ;;  %905 = vst [vmem:[#allocation1] ss:$2 sm:$0xff] %v3191_v58  ;;  %v556_v3 = vsel %vm519_vm2, %v486_v61, 0 }
  0xde   : > { %568 = vmatpush.bf16.msra.mxu2 %v556_v3 }
  0xdf   : > { %v590_v9 = vpop.permute.xlu0 %589 }
  0xe1   : > { %2536 = vmatmul.msk.bf16.vlgmr.msra.gmra.mxu2 %vm515_vm3, %v451_v4 }
  0xe4   : > { %v3209_v5 = vld.sshfl [vmem:[#allocation1] sm:$0xff pattern:$0x75316420]  ;;  %v3211_v6 = vld.sshfl [vmem:[#allocation1 + $0x8] sm:$0xff pattern:$0x75316420] }
  0xe5   : > { %951 = vst [vmem:[#allocation1] ss:$2 sm:$0xff] %v3100_v0 }
  0xe7   : > { %v596_v10 = vpop.permute.xlu1 %595  ;;  %v662_v36 = vpop.permute.xlu2 %661 }
  0xe8   : > { %v600_v11 = vsel %vm599_vm4, %v596_v10, %v598_v7  ;;  %v603_v12 = vsel %vm599_vm4, %v590_v9, %v596_v10 }
  0xe9   : > { %v610_v13 = vmul.f32 %v3134_v17, %v603_v12  ;;  %v611_v15 = vmul.f32 %v3136_v18, %v600_v11  ;;  %v453_v17 = vld [vmem:[%s3572_s6 + $0x4] sm:$0x3]  ;;  %v457_v11 = vld [vmem:[%s3572_s6 + $0xc] sm:$0x3] }
  0xea   : > { %v3271_v12 = vld [vmem:[#allocation10 + $0x40] sm:$0xff] }
  0xeb   : > { %v612_v16 = vpack.c.bf16 %v610_v13, %v610_v13  ;;  %v613_v19 = vpack.c.bf16 %v611_v15, %v611_v15 }
  0xec   : > { %v953_v21 = vld.sshfl [vmem:[#allocation1 + $0x8] sm:$0xff pattern:$0x75316420]  ;;  %v952_v22 = vld.sshfl [vmem:[#allocation1] sm:$0xff pattern:$0x75316420] }
  0xed   : > { %956 = vrot.lane.b32.xlu1 %v953_v21, %s2938_s18  ;;  %954 = vrot.lane.b32.xlu0 %v952_v22, %s2938_s18  ;;  %962 = vst [vmem:[#allocation1] ss:$2 sm:$0xff] %v3100_v0  ;;  %v618_v27 = vsel %vm519_vm2, %v612_v16, 0  ;;  %v621_v28 = vsel %vm519_vm2, %v613_v19, 0 }
  0xee   : > { %630 = vmatpush.bf16.msrb.mxu0 %v618_v27  ;;  %643 = vmatpush.bf16.msrb.mxu1 %v621_v28 }
  0xf1   : > { %2538 = vmatmul.msk.bf16.vlgmr.msrb.gmra.mxu0 %vm515_vm3, %v453_v17  ;;  %2539 = vmatmul.msk.bf16.vlgmr.msrb.gmra.mxu1 %vm515_vm3, %v453_v17 }
  0xf2   : > { %738 = vmatpush.bf16.msra.mxu0 %v726_v39  ;;  %751 = vmatpush.bf16.msra.mxu1 %v729_v40 }
  0xf4   : > { %v963_v18 = vld.sshfl [vmem:[#allocation1] sm:$0xff pattern:$0x75316420] }
  0xf5   : > { %964 = vrot.lane.b32.xlu2 %v963_v18, %s2938_s18  ;;  %969 = vst [vmem:[#allocation1] ss:$2 sm:$0xff] %v3271_v12 }
  0xf7   : > { %v654_v34 = vpop.permute.xlu0 %653 }
  0xff   : > { %v660_v42 = vpop.permute.xlu1 %659 }
 0x100   : > { %v664_v43 = vsel %vm663_vm5, %v660_v42, %v662_v36  ;;  %v667_v25 = vsel %vm663_vm5, %v654_v34, %v660_v42 }
 0x101   : > { %v674_v26 = vmul.f32 %v3146_v23, %v667_v25  ;;  %v675_v44 = vmul.f32 %v3148_v24, %v664_v43  ;;  %2542 = vmatmul.msk.bf16.vlgmr.msra.gmra.mxu0 %vm515_vm3, %v455_v41  ;;  %2543 = vmatmul.msk.bf16.vlgmr.msra.gmra.mxu1 %vm515_vm3, %v455_v41 }
 0x103   : > { %v676_v45 = vpack.c.bf16 %v674_v26, %v674_v26  ;;  %v677_v46 = vpack.c.bf16 %v675_v44, %v675_v44 }
 0x105   : > { %v682_v47 = vsel %vm519_vm2, %v676_v45, 0  ;;  %v685_v48 = vsel %vm519_vm2, %v677_v46, 0 }
 0x106   : > { %694 = vmatpush.bf16.msrb.mxu2 %v682_v47  ;;  %707 = vmatpush.bf16.msrb.mxu3 %v685_v48 }
 0x107   : > { %v773_v23 = vpop.permute.xlu2 %772 }
 0x109   : > { %2540 = vmatmul.msk.bf16.vlgmr.msrb.gmra.mxu2 %vm515_vm3, %v454_v49  ;;  %2541 = vmatmul.msk.bf16.vlgmr.msrb.gmra.mxu3 %vm515_vm3, %v454_v49 }
 0x117   : > { %v765_v24 = vpop.permute.xlu1 %764  ;;  %v763_v50 = vpop.permute.xlu0 %762 }
 0x118   : > { %v767_v51 = vsel %vm766_vm6, %v763_v50, %v765_v24  ;;  %v775_v52 = vsel %vm766_vm6, %v765_v24, %v773_v23  ;;  %v459_v23 = vld [vmem:[%s3572_s6 + $0x10] sm:$0x3] }
 0x119   : > { %v782_v53 = vmul.f32 %v3163_v31, %v767_v51  ;;  %v783_v54 = vmul.f32 %v3165_v32, %v775_v52 }
 0x11b   : > { %v784_v55 = vpack.c.bf16 %v782_v53, %v782_v53  ;;  %v785_v56 = vpack.c.bf16 %v783_v54, %v783_v54 }
 0x11d   : > { %v790_v57 = vsel %vm519_vm2, %v784_v55, 0  ;;  %v793_v59 = vsel %vm519_vm2, %v785_v56, 0 }
 0x11e   : > { %802 = vmatpush.bf16.msra.mxu2 %v790_v57  ;;  %815 = vmatpush.bf16.msra.mxu3 %v793_v59 }
 0x11f   : > { %v837_v31 = vpop.permute.xlu2 %836 }
 0x121   : > { %2544 = vmatmul.msk.bf16.vlgmr.msra.gmra.mxu2 %vm515_vm3, %v456_v60  ;;  %2545 = vmatmul.msk.bf16.vlgmr.msra.gmra.mxu3 %vm515_vm3, %v456_v60 }
 0x12f   : > { %v829_v61 = vpop.permute.xlu1 %828  ;;  %v827_v32 = vpop.permute.xlu0 %826 }
 0x130   : > { %v831_v62 = vsel %vm830_vm7, %v827_v32, %v829_v61  ;;  %v839_v63 = vsel %vm830_vm7, %v829_v61, %v837_v31 }
 0x131   : > { %v846_v1 = vmul.f32 %v3175_v37, %v831_v62  ;;  %v847_v3 = vmul.f32 %v3177_v38, %v839_v63  ;;  %v970_v37 = vld.sshfl [vmem:[#allocation1] sm:$0xff pattern:$0x75316420]  ;;  %v971_v38 = vld.sshfl [vmem:[#allocation1 + $0x8] sm:$0xff pattern:$0x75316420] }
 0x132   : > { %1037 = vst [vmem:[#allocation1] ss:$2 sm:$0xff] %v3104_v2  ;;  %v458_v2 = vld [vmem:[%s3572_s6 + $0xe] sm:$0x3] }
 0x133   : > { %v848_v4 = vpack.c.bf16 %v846_v1, %v846_v1  ;;  %v849_v7 = vpack.c.bf16 %v847_v3, %v847_v3 }
 0x134   : > { %v583_v26 = vpop.f32.mrf.mxu3 }
 0x135   : > { %v854_v9 = vsel %vm519_vm2, %v848_v4, 0  ;;  %v857_v10 = vsel %vm519_vm2, %v849_v7, 0 }
 0x136   : > { %866 = vmatpush.bf16.msrb.mxu0 %v854_v9  ;;  %879 = vmatpush.bf16.msrb.mxu1 %v857_v10 }
 0x137   : > { %v901_v13 = vpop.permute.xlu2 %900 }
 0x139   : > { %2546 = vmatmul.msk.bf16.vlgmr.msrb.gmra.mxu0 %vm515_vm3, %v457_v11  ;;  %2547 = vmatmul.msk.bf16.vlgmr.msrb.gmra.mxu1 %vm515_vm3, %v457_v11 }
 0x13c   : > { %v585_v50 = vpop.f32.mrf.mxu3 }
 0x147   : > { %v893_v15 = vpop.permute.xlu1 %892  ;;  %v891_v16 = vpop.permute.xlu0 %890 }
 0x148   : > { %v895_v19 = vsel %vm894_vm8, %v891_v16, %v893_v15  ;;  %v903_v21 = vsel %vm894_vm8, %v893_v15, %v901_v13 }
 0x149   : > { %v910_v22 = vmul.f32 %v3209_v5, %v895_v19  ;;  %v911_v27 = vmul.f32 %v3211_v6, %v903_v21 }
 0x14b   : > { %v912_v28 = vpack.c.bf16 %v910_v22, %v910_v22  ;;  %v913_v17 = vpack.c.bf16 %v911_v27, %v911_v27 }
 0x14d   : > { %v918_v18 = vsel %vm519_vm2, %v912_v28, 0  ;;  %v921_v30 = vsel %vm519_vm2, %v913_v17, 0 }
 0x14e   : > { %930 = vmatpush.bf16.msrb.mxu2 %v918_v18  ;;  %943 = vmatpush.bf16.msrb.mxu3 %v921_v30 }
 0x14f   : > { %v965_v6 = vpop.permute.xlu2 %964 }
 0x151   : > { %2548 = vmatmul.msk.bf16.vlgmr.msrb.gmra.mxu2 %vm515_vm3, %v458_v2  ;;  %2549 = vmatmul.msk.bf16.vlgmr.msrb.gmra.mxu3 %vm515_vm3, %v458_v2 }
 0x156   : > { %v535_v33 = vpop.f32.mrf.mxu0  ;;  %v548_v5 = vpop.f32.mrf.mxu1 }
 0x157   : > { %v584_v46 = vadd.f32 %v583_v26, %v548_v5  ;;  %v1039_v26 = vld.sshfl [vmem:[#allocation1 + $0x8] sm:$0xff pattern:$0x75316420] }
 0x15e   : > { %v537_v44 = vpop.f32.mrf.mxu0  ;;  %v550_v45 = vpop.f32.mrf.mxu1 }
 0x15f   : > { %v957_v34 = vpop.permute.xlu1 %956  ;;  %v955_v36 = vpop.permute.xlu0 %954 }
 0x160   : > { %v959_v39 = vsel %vm958_vm9, %v955_v36, %v957_v34  ;;  %v967_v40 = vsel %vm958_vm9, %v957_v34, %v965_v6 }
 0x161   : > { %v974_v41 = vmul.f32 %v970_v37, %v959_v39  ;;  %v975_v42 = vmul.f32 %v971_v38, %v967_v40 }
 0x163   : > { %v976_v43 = vpack.c.bf16 %v974_v41, %v974_v41  ;;  %v977_v25 = vpack.c.bf16 %v975_v42, %v975_v42 }
 0x164   : > { %v570_v49 = vpop.f32.mrf.mxu2 }
 0x165   : > { %v982_v47 = vsel %vm519_vm2, %v976_v43, 0  ;;  %v985_v48 = vsel %vm519_vm2, %v977_v25, 0  ;;  %v571_v24 = vadd.f32 %v570_v49, %v535_v33  ;;  %v1038_v25 = vld.sshfl [vmem:[#allocation1] sm:$0xff pattern:$0x75316420] }
 0x166   : > { %994 = vmatpush.bf16.msra.mxu0 %v982_v47  ;;  %1007 = vmatpush.bf16.msra.mxu1 %v985_v48  ;;  %1055 = vst [vmem:[#allocation1] ss:$2 sm:$0xff] %v3116_v8 }
 0x169   : > { %2550 = vmatmul.msk.bf16.vlgmr.msra.gmra.mxu0 %vm515_vm3, %v459_v23  ;;  %2551 = vmatmul.msk.bf16.vlgmr.msra.gmra.mxu1 %vm515_vm3, %v459_v23 }
 0x16c   : > { %v572_v51 = vpop.f32.mrf.mxu2 }
 0x16d   : > { %v1056_v44 = vld.sshfl [vmem:[#allocation1] sm:$0xff pattern:$0x75316420]  ;;  %v1057_v45 = vld.sshfl [vmem:[#allocation1 + $0x8] sm:$0xff pattern:$0x75316420] }
 0x16e   : > { %v632_v52 = vpop.f32.mrf.mxu0  ;;  %v645_v53 = vpop.f32.mrf.mxu1  ;;  %1143 = vst [vmem:[#allocation1] ss:$2 sm:$0xff] %v3129_v14 }
 0x16f   : > { %v649_v54 = vadd.f32 %v632_v52, %v571_v24  ;;  %v650_v55 = vadd.f32 %v645_v53, %v584_v46 }
 0x175   : > { %v1144_v46 = vld.sshfl [vmem:[#allocation1] sm:$0xff pattern:$0x75316420]  ;;  %v1145_v47 = vld.sshfl [vmem:[#allocation1 + $0x8] sm:$0xff pattern:$0x75316420] }
 0x176   : > { %v634_v56 = vpop.f32.mrf.mxu0  ;;  %v647_v57 = vpop.f32.mrf.mxu1  ;;  %1198 = vst [vmem:[#allocation1] ss:$2 sm:$0xff] %v3141_v20 }
 0x17d   : > { %v3336_v48 = vld.sshfl [vmem:[#allocation1] sm:$0xff pattern:$0x75316420]  ;;  %v3338_v49 = vld.sshfl [vmem:[#allocation1 + $0x8] sm:$0xff pattern:$0x75316420] }
 0x17e   : > { %v740_v59 = vpop.f32.mrf.mxu0  ;;  %v753_v60 = vpop.f32.mrf.mxu1  ;;  %1292 = vst [vmem:[#allocation1] ss:$2 sm:$0xff] %v3159_v29 }
 0x185   : > { %v3341_v23 = vld.sshfl [vmem:[#allocation1] sm:$0xff pattern:$0x75316420]  ;;  %v3343_v24 = vld.sshfl [vmem:[#allocation1 + $0x8] sm:$0xff pattern:$0x75316420] }
 0x186   : > { %v742_v31 = vpop.f32.mrf.mxu0  ;;  %v755_v61 = vpop.f32.mrf.mxu1  ;;  %1347 = vst [vmem:[#allocation1] ss:$2 sm:$0xff] %v3171_v35 }
 0x18c   : > { %v696_v32 = vpop.f32.mrf.mxu2  ;;  %v709_v62 = vpop.f32.mrf.mxu3 }
 0x18d   : > { %v713_v63 = vadd.f32 %v696_v32, %v649_v54  ;;  %v714_v1 = vadd.f32 %v709_v62, %v650_v55  ;;  %v3346_v8 = vld.sshfl [vmem:[#allocation1] sm:$0xff pattern:$0x75316420]  ;;  %v3348_v50 = vld.sshfl [vmem:[#allocation1 + $0x8] sm:$0xff pattern:$0x75316420] }
 0x18e   : > { %1402 = vst [vmem:[#allocation1] ss:$2 sm:$0xff] %v3191_v58  ;;  %v1018_v32 = vld [vmem:[%s3573_s7 + $0x2] sm:$0x3] }
 0x18f   : > { %v757_v27 = vadd.f32 %v740_v59, %v713_v63  ;;  %v758_v28 = vadd.f32 %v753_v60, %v714_v1 }
 0x194   : > { %v698_v3 = vpop.f32.mrf.mxu2  ;;  %v711_v4 = vpop.f32.mrf.mxu3 }
 0x195   : > { %v3351_v20 = vld.sshfl [vmem:[#allocation1] sm:$0xff pattern:$0x75316420]  ;;  %v3353_v51 = vld.sshfl [vmem:[#allocation1 + $0x8] sm:$0xff pattern:$0x75316420] }
 0x196   : > { %1457 = vst [vmem:[#allocation1] ss:$2 sm:$0xff] %v3271_v12 }
 0x19d   : > { %v3358_v56 = vld.sshfl [vmem:[#allocation1] sm:$0xff pattern:$0x75316420]  ;;  %v3360_v57 = vld.sshfl [vmem:[#allocation1 + $0x8] sm:$0xff pattern:$0x75316420] }
 0x19e   : > { %1567 = vst [vmem:[#allocation1] ss:$2 sm:$0xff] %v3100_v0 }
 0x1a4   : > { %v804_v7 = vpop.f32.mrf.mxu2  ;;  %v817_v9 = vpop.f32.mrf.mxu3 }
 0x1a5   : > { %v821_v17 = vadd.f32 %v804_v7, %v757_v27  ;;  %v822_v18 = vadd.f32 %v817_v9, %v758_v28 }
 0x1ac   : > { %v806_v10 = vpop.f32.mrf.mxu2  ;;  %v819_v11 = vpop.f32.mrf.mxu3 }
 0x1b6   : > { %v868_v37 = vpop.f32.mrf.mxu0  ;;  %v881_v38 = vpop.f32.mrf.mxu1 }
 0x1b7   : > { %v885_v30 = vadd.f32 %v868_v37, %v821_v17  ;;  %v886_v2 = vadd.f32 %v881_v38, %v822_v18 }
 0x1be   : > { %v870_v13 = vpop.f32.mrf.mxu0  ;;  %v883_v15 = vpop.f32.mrf.mxu1 }
 0x1d4   : > { %v932_v16 = vpop.f32.mrf.mxu2  ;;  %v945_v19 = vpop.f32.mrf.mxu3 }
 0x1d5   : > { %v949_v33 = vadd.f32 %v932_v16, %v885_v30  ;;  %v950_v5 = vadd.f32 %v945_v19, %v886_v2 }
 0x1dc   : > { %v934_v21 = vpop.f32.mrf.mxu2  ;;  %v947_v22 = vpop.f32.mrf.mxu3 }
 0x1e6   : > { %v996_v6 = vpop.f32.mrf.mxu0  ;;  %v1009_v34 = vpop.f32.mrf.mxu1 }
 0x1e7   : > { %v1013_v36 = vadd.f32 %v996_v6, %v949_v33  ;;  %v1014_v39 = vadd.f32 %v1009_v34, %v950_v5  ;;  %v1017_v33 = vld [vmem:[%s3573_s7] sm:$0x3] }
 0x1e9   : > { %v3297_v40 = vmax.f32 %v1013_v36, 0.0  ;;  %v3299_v41 = vmax.f32 %v1014_v39, 0.0 }
 0x1eb   : > { %1134 = vrot.lane.b32.xlu2 %v3299_v41, %s2933_s26  ;;  %1046 = vrot.lane.b32.xlu0 %v3299_v41, %s2932_s21  ;;  %v1245_v13 = vpack.c.bf16 %v3299_v41, %v3299_v41  ;;  %v1244_v15 = vpack.c.bf16 %v3297_v40, %v3297_v40 }
 0x1ec   : > { %1049 = vrot.lane.b32.xlu1 %v3297_v40, %s2932_s21 }
 0x1ed   : > { %v1253_v30 = vsel %vm519_vm2, %v1245_v13, 0  ;;  %v1250_v2 = vsel %vm519_vm2, %v1244_v15, 0 }
 0x1ee   : > { %v998_v42 = vpop.f32.mrf.mxu0  ;;  %v1011_v43 = vpop.f32.mrf.mxu1 }
 0x1f3   : > { %1031 = vrot.lane.b32.xlu2 %v3297_v40, %s2931_s12  ;;  %1137 = vrot.lane.b32.xlu0 %v3297_v40, %s2933_s26  ;;  %s2866_s26 = scalar_lea.hbm %s3576_s10, 16 }
 0x1f4   : > { %1027 = vrot.lane.b32.xlu1 %v3299_v41, %s2931_s12  ;;  %p2868_p4 = scmp.lt.s32.totalorder %s2866_s26, %s2862_s25 }
 0x1f6   : > { %p2869_p7 = por %p2868_p4, %p2867_p3 }
 0x1f8   : > { %p2870_p8 = pnand %p2869_p7, %p2865_p2 }
 0x1fb   : > { %1338 = vrot.lane.b32.xlu2 %v3297_v40, %s2936_s27  ;;  %1189 = vrot.lane.b32.xlu0 %v3299_v41, %s2934_s28 }
 0x1fc   : > { %1192 = vrot.lane.b32.xlu1 %v3297_v40, %s2934_s28  ;;  %s2939_s28 = smov 124  }
 0x203   : > { %1285 = vrot.lane.b32.xlu2 %v3299_v41, %s2935_s20  ;;  %1340 = vrot.lane.b32.xlu0 %v3299_v41, %s2936_s27 }
 0x204   : > { %1283 = vrot.lane.b32.xlu1 %v3297_v40, %s2935_s20 }
 0x20b   : > { %1393 = vrot.lane.b32.xlu2 %v3297_v40, %s2937_s29  ;;  %1448 = vrot.lane.b32.xlu0 %v3297_v40, %s2938_s18 }
 0x20c   : > { %1450 = vrot.lane.b32.xlu1 %v3299_v41, %s2938_s18 }
 0x213   : > { %1395 = vrot.lane.b32.xlu0 %v3299_v41, %s2937_s29  ;;  %s433_s29 = sand.u32 1, %s2912_s14  }
 0x214   : > { %s2531_s18 = sshll.u32 %s433_s29, 3  ;;  %s2392_s19 = scalar_lea.sflag [#allocation4], %s433_s29 }
 0x215   : > { %s435_s17 = scalar_lea.vmem [#allocation11], %s2531_s18 }
 0x216   : > { %s2405_s4 = sshll.u32 %s435_s17, 4  ;;  %s2406_s4 = int_to_ptr.vmem [resolvable:$true] %s2405_s4 }
 0x245   : > { %v1135_v14 = vpop.permute.xlu2 %1134 }
 0x24d   : > { %v1032_v58 = vpop.permute.xlu2 %1031 }
 0x255   : > { %v1339_v27 = vpop.permute.xlu2 %1338 }
 0x25d   : > { %v1047_v29 = vpop.permute.xlu0 %1046 }
 0x25e   : > { %v1050_v52 = vpop.permute.xlu1 %1049 }
 0x25f   : > { %v1051_v53 = vsel %vm500_vm0, %v1050_v52, %v1047_v29  ;;  %v1054_v54 = vsel %vm500_vm0, %v1047_v29, %v1050_v52 }
 0x260   : > { %v1060_v35 = vmul.f32 %v1056_v44, %v1054_v54  ;;  %v1061_v55 = vmul.f32 %v1057_v45, %v1051_v53  ;;  %v1286_v44 = vpop.permute.xlu2 %1285 }
 0x262   : > { %v1062_v59 = vpack.c.bf16 %v1060_v35, %v1060_v35  ;;  %v1063_v60 = vpack.c.bf16 %v1061_v55, %v1061_v55 }
 0x264   : > { %v1068_v31 = vsel %vm519_vm2, %v1062_v59, 0  ;;  %v1071_v12 = vsel %vm519_vm2, %v1063_v60, 0 }
 0x265   : > { %1080 = vmatpush.bf16.msra.mxu2 %v1068_v31  ;;  %1093 = vmatpush.bf16.msra.mxu3 %v1071_v12  ;;  %v1138_v61 = vpop.permute.xlu0 %1137 }
 0x266   : > { %v1139_v62 = vsel %vm599_vm4, %v1138_v61, %v1135_v14  ;;  %v1142_v63 = vsel %vm599_vm4, %v1135_v14, %v1138_v61  ;;  %v1028_v1 = vpop.permute.xlu1 %1027 }
 0x267   : > { %v1148_v3 = vmul.f32 %v1144_v46, %v1142_v63  ;;  %v1149_v4 = vmul.f32 %v1145_v47, %v1139_v62  ;;  %v1033_v7 = vsel %vm473_vm1, %v1032_v58, %v1028_v1  ;;  %v1036_v9 = vsel %vm473_vm1, %v1028_v1, %v1032_v58 }
 0x268   : > { %v1042_v10 = vmul.f32 %v1038_v25, %v1036_v9  ;;  %v1043_v11 = vmul.f32 %v1039_v26, %v1033_v7  ;;  %2552 = vmatmul.msk.bf16.vlgmr.msra.gmra.mxu2 %vm515_vm3, %v1018_v32  ;;  %2553 = vmatmul.msk.bf16.vlgmr.msra.gmra.mxu3 %vm515_vm3, %v1018_v32  ;;  %v1019_v26 = vld [vmem:[%s3573_s7 + $0x4] sm:$0x3]  ;;  %v1021_v7 = vld [vmem:[%s3573_s7 + $0x8] sm:$0x3] }
 0x269   : > { %v1150_v37 = vpack.c.bf16 %v1148_v3, %v1148_v3  ;;  %v1151_v38 = vpack.c.bf16 %v1149_v4, %v1149_v4  ;;  %v1394_v3 = vpop.permute.xlu2 %1393 }
 0x26a   : > { %v1044_v16 = vpack.c.bf16 %v1042_v10, %v1042_v10  ;;  %v1045_v19 = vpack.c.bf16 %v1043_v11, %v1043_v11 }
 0x26b   : > { %v1156_v21 = vsel %vm519_vm2, %v1150_v37, 0  ;;  %v1159_v22 = vsel %vm519_vm2, %v1151_v38, 0 }
 0x26c   : > { %v1103_v28 = vsel %vm519_vm2, %v1044_v16, 0  ;;  %v1106_v17 = vsel %vm519_vm2, %v1045_v19, 0  ;;  %1168 = vmatpush.bf16.msrb.mxu2 %v1156_v21  ;;  %1181 = vmatpush.bf16.msrb.mxu3 %v1159_v22  ;;  %v1565_v19 = vld [vmem:[#allocation2 + $0x1f0] sm:$0xff]  ;;  %v1531_v21 = vld [vmem:[#allocation2 + $0xe0] sm:$0xff] }
 0x26d   : > { %1115 = vmatpush.bf16.msrb.mxu0 %v1103_v28  ;;  %1128 = vmatpush.bf16.msrb.mxu1 %v1106_v17  ;;  %v1190_v18 = vpop.permute.xlu0 %1189  ;;  %v1563_v22 = vld [vmem:[#allocation2 + $0x1e0] sm:$0xff]  ;;  %v1561_v28 = vld [vmem:[#allocation2 + $0x1d0] sm:$0xff] }
 0x26e   : > { %v1193_v5 = vpop.permute.xlu1 %1192  ;;  %v1527_v17 = vld [vmem:[#allocation2 + $0xc0] sm:$0xff] }
 0x26f   : > { %v1194_v6 = vsel %vm663_vm5, %v1193_v5, %v1190_v18  ;;  %v1197_v34 = vsel %vm663_vm5, %v1190_v18, %v1193_v5  ;;  %v1559_v18 = vld [vmem:[#allocation2 + $0x1c0] sm:$0xff]  ;;  %v1525_v5 = vld [vmem:[#allocation2 + $0xb0] sm:$0xff] }
 0x270   : > { %1275 = vmatpush.bf16.msra.mxu3 %v1253_v30  ;;  %1262 = vmatpush.bf16.msra.mxu2 %v1250_v2  ;;  %v1203_v36 = vmul.f32 %v3336_v48, %v1197_v34  ;;  %v1204_v39 = vmul.f32 %v3338_v49, %v1194_v6  ;;  %v1023_v30 = vld [vmem:[%s3573_s7 + $0xc] sm:$0x3]  ;;  %v1534_v2 = vld [vmem:[#allocation2 + $0xf8] sm:$0xff]  ;;  %v1557_v6 = vld [vmem:[#allocation2 + $0x1b0] sm:$0xff] }
 0x271   : > { %2554 = vmatmul.msk.bf16.vlgmr.msrb.gmra.mxu0 %vm515_vm3, %v1017_v33  ;;  %2555 = vmatmul.msk.bf16.vlgmr.msrb.gmra.mxu1 %vm515_vm3, %v1017_v33  ;;  %v1566_v33 = vld [vmem:[#allocation2 + $0x1f8] sm:$0xff]  ;;  %v1532_v34 = vld [vmem:[#allocation2 + $0xe8] sm:$0xff] }
 0x272   : > { %v1205_v40 = vpack.c.bf16 %v1203_v36, %v1203_v36  ;;  %v1206_v41 = vpack.c.bf16 %v1204_v39, %v1204_v39  ;;  %v1564_v36 = vld [vmem:[#allocation2 + $0x1e8] sm:$0xff]  ;;  %v1523_v39 = vld [vmem:[#allocation2 + $0xa0] sm:$0xff] }
 0x274   : > { %v1211_v42 = vsel %vm519_vm2, %v1205_v40, 0  ;;  %v1214_v43 = vsel %vm519_vm2, %v1206_v41, 0  ;;  %v1555_v40 = vld [vmem:[#allocation2 + $0x1a0] sm:$0xff]  ;;  %v1530_v41 = vld [vmem:[#allocation2 + $0xd8] sm:$0xff] }
 0x275   : > { %1223 = vmatpush.bf16.msra.mxu0 %v1211_v42  ;;  %1236 = vmatpush.bf16.msra.mxu1 %v1214_v43  ;;  %v1341_v25 = vpop.permute.xlu0 %1340  ;;  %v1562_v42 = vld [vmem:[#allocation2 + $0x1d8] sm:$0xff]  ;;  %v1521_v43 = vld [vmem:[#allocation2 + $0x90] sm:$0xff] }
 0x276   : > { %v1342_v45 = vsel %vm830_vm7, %v1339_v27, %v1341_v25  ;;  %v1346_v46 = vsel %vm830_vm7, %v1341_v25, %v1339_v27  ;;  %v1284_v47 = vpop.permute.xlu1 %1283  ;;  %v1529_v27 = vld [vmem:[#allocation2 + $0xd0] sm:$0xff] }
 0x277   : > { %v1352_v48 = vmul.f32 %v3346_v8, %v1342_v45  ;;  %v1353_v49 = vmul.f32 %v3348_v50, %v1346_v46  ;;  %v1287_v14 = vsel %vm766_vm6, %v1284_v47, %v1286_v44  ;;  %v1291_v29 = vsel %vm766_vm6, %v1286_v44, %v1284_v47  ;;  %v1553_v25 = vld [vmem:[#allocation2 + $0x190] sm:$0xff]  ;;  %v1560_v44 = vld [vmem:[#allocation2 + $0x1c8] sm:$0xff]  ;;  %v1519_v45 = vld [vmem:[#allocation2 + $0x80] sm:$0xff] }
 0x278   : > { %v1297_v52 = vmul.f32 %v3341_v23, %v1287_v14  ;;  %v1298_v53 = vmul.f32 %v3343_v24, %v1291_v29  ;;  %2556 = vmatmul.msk.bf16.vlgmr.msrb.gmra.mxu2 %vm515_vm3, %v1019_v26  ;;  %2557 = vmatmul.msk.bf16.vlgmr.msrb.gmra.mxu3 %vm515_vm3, %v1019_v26  ;;  %v1020_v24 = vld [vmem:[%s3573_s7 + $0x6] sm:$0x3]  ;;  %v1528_v26 = vld [vmem:[#allocation2 + $0xc8] sm:$0xff]  ;;  %v1551_v46 = vld [vmem:[#allocation2 + $0x180] sm:$0xff] }
 0x279   : > { %v1354_v54 = vpack.c.bf16 %v1352_v48, %v1352_v48  ;;  %v1355_v35 = vpack.c.bf16 %v1353_v49, %v1353_v49  ;;  %v1024_v47 = vld [vmem:[%s3573_s7 + $0xe] sm:$0x3]  ;;  %v1526_v48 = vld [vmem:[#allocation2 + $0xb8] sm:$0xff]  ;;  %v1517_v14 = vld [vmem:[#allocation2 + $0x70] sm:$0xff] }
 0x27a   : > { %v1299_v55 = vpack.c.bf16 %v1297_v52, %v1297_v52  ;;  %v1300_v58 = vpack.c.bf16 %v1298_v53, %v1298_v53  ;;  %v1558_v49 = vld [vmem:[#allocation2 + $0x1b8] sm:$0xff]  ;;  %v1549_v29 = vld [vmem:[#allocation2 + $0x170] sm:$0xff]  ;;  %v1524_v52 = vld [vmem:[#allocation2 + $0xa8] sm:$0xff] }
 0x27b   : > { %v1360_v8 = vsel %vm519_vm2, %v1354_v54, 0  ;;  %v1363_v50 = vsel %vm519_vm2, %v1355_v35, 0  ;;  %v1556_v53 = vld [vmem:[#allocation2 + $0x1a8] sm:$0xff]  ;;  %v1515_v54 = vld [vmem:[#allocation2 + $0x60] sm:$0xff] }
 0x27c   : > { %v1305_v59 = vsel %vm519_vm2, %v1299_v55, 0  ;;  %v1308_v60 = vsel %vm519_vm2, %v1300_v58, 0  ;;  %1372 = vmatpush.bf16.msrb.mxu2 %v1360_v8  ;;  %1385 = vmatpush.bf16.msrb.mxu3 %v1363_v50  ;;  %v1547_v35 = vld [vmem:[#allocation2 + $0x160] sm:$0xff]  ;;  %v1522_v55 = vld [vmem:[#allocation2 + $0x98] sm:$0xff]  ;;  %v1513_v8 = vld [vmem:[#allocation2 + $0x50] sm:$0xff] }
 0x27d   : > { %1317 = vmatpush.bf16.msrb.mxu0 %v1305_v59  ;;  %1330 = vmatpush.bf16.msrb.mxu1 %v1308_v60  ;;  %v1449_v23 = vpop.permute.xlu0 %1448  ;;  %v1554_v58 = vld [vmem:[#allocation2 + $0x198] sm:$0xff]  ;;  %v1545_v50 = vld [vmem:[#allocation2 + $0x150] sm:$0xff]  ;;  %v1520_v59 = vld [vmem:[#allocation2 + $0x88] sm:$0xff] }
 0x27e   : > { %v1451_v31 = vpop.permute.xlu1 %1450  ;;  %v1552_v60 = vld [vmem:[#allocation2 + $0x188] sm:$0xff] }
 0x27f   : > { %v1452_v12 = vsel %vm958_vm9, %v1449_v23, %v1451_v31  ;;  %v1456_v61 = vsel %vm958_vm9, %v1451_v31, %v1449_v23  ;;  %v1511_v23 = vld [vmem:[#allocation2 + $0x40] sm:$0xff]  ;;  %v1025_v31 = vld [vmem:[%s3573_s7 + $0x10] sm:$0x3] }
 0x280   : > { %v1462_v32 = vmul.f32 %v3358_v56, %v1452_v12  ;;  %v1463_v62 = vmul.f32 %v3360_v57, %v1456_v61  ;;  %v1518_v12 = vld [vmem:[#allocation2 + $0x78] sm:$0xff] }
 0x281   : > { %2558 = vmatmul.msk.bf16.vlgmr.msra.gmra.mxu0 %vm515_vm3, %v1020_v24  ;;  %2559 = vmatmul.msk.bf16.vlgmr.msra.gmra.mxu1 %vm515_vm3, %v1020_v24  ;;  %v1543_v24 = vld [vmem:[#allocation2 + $0x140] sm:$0xff]  ;;  %v1550_v61 = vld [vmem:[#allocation2 + $0x178] sm:$0xff] }
 0x282   : > { %v1464_v63 = vpack.c.bf16 %v1462_v32, %v1462_v32  ;;  %v1465_v1 = vpack.c.bf16 %v1463_v62, %v1463_v62  ;;  %v1509_v32 = vld [vmem:[#allocation2 + $0x30] sm:$0xff] }
 0x283   : > { %v1541_v62 = vld [vmem:[#allocation2 + $0x130] sm:$0xff] }
 0x284   : > { %v1470_v11 = vsel %vm519_vm2, %v1464_v63, 0  ;;  %v1473_v37 = vsel %vm519_vm2, %v1465_v1, 0  ;;  %v1516_v63 = vld [vmem:[#allocation2 + $0x68] sm:$0xff] }
 0x285   : > { %v1396_v4 = vpop.permute.xlu0 %1395  ;;  %v1548_v1 = vld [vmem:[#allocation2 + $0x168] sm:$0xff] }
 0x286   : > { %v1397_v9 = vsel %vm894_vm8, %v1394_v3, %v1396_v4  ;;  %v1401_v10 = vsel %vm894_vm8, %v1396_v4, %v1394_v3  ;;  %v3454_v3 = vld.sshfl [vmem:[#allocation1] sm:$0xff pattern:$0x75316420]  ;;  %v3456_v4 = vld.sshfl [vmem:[#allocation1 + $0x8] sm:$0xff pattern:$0x75316420] }
 0x287   : > { %v1407_v56 = vmul.f32 %v3351_v20, %v1397_v9  ;;  %v1408_v57 = vmul.f32 %v3353_v51, %v1401_v10  ;;  %v1022_v20 = vld [vmem:[%s3573_s7 + $0xa] sm:$0x3]  ;;  %v1533_v51 = vld [vmem:[#allocation2 + $0xf0] sm:$0xff]  ;;  %1716 = vst [vmem:[#allocation1] ss:$2 sm:$0xff] %v3100_v0  ;;  %v1514_v10 = vld [vmem:[#allocation2 + $0x58] sm:$0xff] }
 0x288   : > { %2560 = vmatmul.msk.bf16.vlgmr.msra.gmra.mxu2 %vm515_vm3, %v1021_v7  ;;  %2561 = vmatmul.msk.bf16.vlgmr.msra.gmra.mxu3 %vm515_vm3, %v1021_v7  ;;  %v1507_v7 = vld [vmem:[#allocation2 + $0x20] sm:$0xff] }
 0x289   : > { %v1409_v38 = vpack.c.bf16 %v1407_v56, %v1407_v56  ;;  %v1410_v13 = vpack.c.bf16 %v1408_v57, %v1408_v57  ;;  %1482 = vmatpush.bf16.msra.mxu2 %v1470_v11  ;;  %1495 = vmatpush.bf16.msra.mxu3 %v1473_v37  ;;  %v1539_v9 = vld [vmem:[#allocation2 + $0x120] sm:$0xff]  ;;  %v1546_v56 = vld [vmem:[#allocation2 + $0x158] sm:$0xff]  ;;  %v1505_v57 = vld [vmem:[#allocation2 + $0x10] sm:$0xff] }
 0x28a   : > { %v1537_v11 = vld [vmem:[#allocation2 + $0x110] sm:$0xff]  ;;  %v1512_v37 = vld [vmem:[#allocation2 + $0x48] sm:$0xff] }
 0x28b   : > { %v1415_v15 = vsel %vm519_vm2, %v1409_v38, 0  ;;  %v1418_v16 = vsel %vm519_vm2, %v1410_v13, 0  ;;  %v1544_v38 = vld [vmem:[#allocation2 + $0x148] sm:$0xff]  ;;  %v1503_v13 = vld [vmem:[#allocation2] sm:$0xff] }
 0x28c   : > { %1427 = vmatpush.bf16.msra.mxu0 %v1415_v15  ;;  %1440 = vmatpush.bf16.msra.mxu1 %v1418_v16  ;;  %v1535_v15 = vld [vmem:[#allocation2 + $0x100] sm:$0xff]  ;;  %v1510_v16 = vld [vmem:[#allocation2 + $0x38] sm:$0xff] }
 0x291   : > { %2562 = vmatmul.msk.bf16.vlgmr.msrb.gmra.mxu0 %vm515_vm3, %v1022_v20  ;;  %2563 = vmatmul.msk.bf16.vlgmr.msrb.gmra.mxu1 %vm515_vm3, %v1022_v20  ;;  %v1542_v20 = vld [vmem:[#allocation2 + $0x138] sm:$0xff] }
 0x292   : > { %1572 = vmatpush.msrb.mxu0 %v1533_v51  ;;  %1592 = vmatpush.msrb.mxu1 %v1565_v19  ;;  %v1682_v51 = vld [vmem:[#allocation5 + $0xf0] sm:$0xff] }
 0x293   : > { %v1714_v19 = vld [vmem:[#allocation5 + $0x1f0] sm:$0xff] }
 0x294   : > { %1573 = vmatpush.msrb.mxu0 %v1531_v21  ;;  %1593 = vmatpush.msrb.mxu1 %v1563_v22  ;;  %v1508_v21 = vld [vmem:[#allocation2 + $0x28] sm:$0xff] }
 0x295   : > { %v1540_v22 = vld [vmem:[#allocation2 + $0x128] sm:$0xff] }
 0x296   : > { %1574 = vmatpush.msrb.mxu0 %v1529_v27  ;;  %1594 = vmatpush.msrb.mxu1 %v1561_v28  ;;  %v1680_v27 = vld [vmem:[#allocation5 + $0xe0] sm:$0xff] }
 0x297   : > { %v1712_v28 = vld [vmem:[#allocation5 + $0x1e0] sm:$0xff] }
 0x298   : > { %1575 = vmatpush.msrb.mxu0 %v1527_v17  ;;  %1595 = vmatpush.msrb.mxu1 %v1559_v18  ;;  %v1506_v17 = vld [vmem:[#allocation2 + $0x18] sm:$0xff] }
 0x299   : > { %2564 = vmatmul.msk.bf16.vlgmr.msrb.gmra.mxu2 %vm515_vm3, %v1023_v30  ;;  %2565 = vmatmul.msk.bf16.vlgmr.msrb.gmra.mxu3 %vm515_vm3, %v1023_v30  ;;  %v1538_v18 = vld [vmem:[#allocation2 + $0x118] sm:$0xff] }
 0x29a   : > { %1612 = vmatpush.msrb.mxu2 %v1534_v2  ;;  %1632 = vmatpush.msrb.mxu3 %v1566_v33  ;;  %v3459_v30 = vld.sshfl [vmem:[#allocation1] sm:$0xff pattern:$0x75316420]  ;;  %v3461_v2 = vld.sshfl [vmem:[#allocation1 + $0x8] sm:$0xff pattern:$0x75316420] }
 0x29b   : > { %1576 = vmatpush.msrb.mxu0 %v1525_v5  ;;  %1596 = vmatpush.msrb.mxu1 %v1557_v6  ;;  %v1678_v33 = vld [vmem:[#allocation5 + $0xd0] sm:$0xff]  ;;  %2375 = vst [vmem:[#allocation1] ss:$2 sm:$0xff] %v3100_v0  ;;  %v1504_v6 = vld [vmem:[#allocation2 + $0x8] sm:$0xff] }
 0x29c   : > { %1613 = vmatpush.msrb.mxu2 %v1532_v34  ;;  %1633 = vmatpush.msrb.mxu3 %v1564_v36  ;;  %v1710_v5 = vld [vmem:[#allocation5 + $0x1d0] sm:$0xff]  ;;  %v1536_v34 = vld [vmem:[#allocation2 + $0x108] sm:$0xff]  ;;  %v1676_v36 = vld [vmem:[#allocation5 + $0xc0] sm:$0xff] }
 0x29d   : > { %1577 = vmatpush.msrb.mxu0 %v1523_v39  ;;  %1597 = vmatpush.msrb.mxu1 %v1555_v40  ;;  %v1708_v39 = vld [vmem:[#allocation5 + $0x1c0] sm:$0xff]  ;;  %v1683_v40 = vld [vmem:[#allocation5 + $0xf8] sm:$0xff]  ;;  %v1713_v0 = vld [vmem:[#allocation5 + $0x1e8] sm:$0xff] }
 0x29e   : > { %1614 = vmatpush.msrb.mxu2 %v1530_v41  ;;  %1634 = vmatpush.msrb.mxu3 %v1562_v42  ;;  %v1715_v41 = vld [vmem:[#allocation5 + $0x1f8] sm:$0xff]  ;;  %v1674_v42 = vld [vmem:[#allocation5 + $0xb0] sm:$0xff] }
 0x29f   : > { %1578 = vmatpush.msrb.mxu0 %v1521_v43  ;;  %1598 = vmatpush.msrb.mxu1 %v1553_v25  ;;  %v1706_v43 = vld [vmem:[#allocation5 + $0x1b0] sm:$0xff]  ;;  %v1681_v25 = vld [vmem:[#allocation5 + $0xe8] sm:$0xff] }
 0x2a0   : > { %1615 = vmatpush.msrb.mxu2 %v1528_v26  ;;  %1635 = vmatpush.msrb.mxu3 %v1560_v44  ;;  %v1672_v26 = vld [vmem:[#allocation5 + $0xa0] sm:$0xff] }
 0x2a1   : > { %1579 = vmatpush.msrb.mxu0 %v1519_v45  ;;  %1599 = vmatpush.msrb.mxu1 %v1551_v46  ;;  %v1704_v44 = vld [vmem:[#allocation5 + $0x1a0] sm:$0xff]  ;;  %v1679_v45 = vld [vmem:[#allocation5 + $0xd8] sm:$0xff] }
 0x2a2   : > { %2566 = vmatmul.msk.bf16.vlgmr.msra.gmra.mxu0 %vm515_vm3, %v1024_v47  ;;  %2567 = vmatmul.msk.bf16.vlgmr.msra.gmra.mxu1 %vm515_vm3, %v1024_v47  ;;  %v1711_v46 = vld [vmem:[#allocation5 + $0x1d8] sm:$0xff]  ;;  %v1670_v47 = vld [vmem:[#allocation5 + $0x90] sm:$0xff] }
 0x2a3   : > { %1616 = vmatpush.msrb.mxu2 %v1526_v48  ;;  %1636 = vmatpush.msrb.mxu3 %v1558_v49  ;;  %v1702_v48 = vld [vmem:[#allocation5 + $0x190] sm:$0xff]  ;;  %v1677_v49 = vld [vmem:[#allocation5 + $0xc8] sm:$0xff] }
 0x2a4   : > { %1580 = vmatpush.msrb.mxu0 %v1517_v14  ;;  %1600 = vmatpush.msrb.mxu1 %v1549_v29  ;;  %v1709_v14 = vld [vmem:[#allocation5 + $0x1c8] sm:$0xff]  ;;  %v1668_v29 = vld [vmem:[#allocation5 + $0x80] sm:$0xff] }
 0x2a5   : > { %1617 = vmatpush.msrb.mxu2 %v1524_v52  ;;  %1637 = vmatpush.msrb.mxu3 %v1556_v53  ;;  %v1700_v52 = vld [vmem:[#allocation5 + $0x180] sm:$0xff]  ;;  %v1675_v53 = vld [vmem:[#allocation5 + $0xb8] sm:$0xff] }
 0x2a6   : > { %1581 = vmatpush.msrb.mxu0 %v1515_v54  ;;  %1601 = vmatpush.msrb.mxu1 %v1547_v35  ;;  %v1707_v54 = vld [vmem:[#allocation5 + $0x1b8] sm:$0xff]  ;;  %v1666_v35 = vld [vmem:[#allocation5 + $0x70] sm:$0xff] }
 0x2a7   : > { %1618 = vmatpush.msrb.mxu2 %v1522_v55  ;;  %1638 = vmatpush.msrb.mxu3 %v1554_v58  ;;  %v1698_v55 = vld [vmem:[#allocation5 + $0x170] sm:$0xff]  ;;  %v1673_v58 = vld [vmem:[#allocation5 + $0xa8] sm:$0xff] }
 0x2a8   : > { %1582 = vmatpush.msrb.mxu0 %v1513_v8  ;;  %1602 = vmatpush.msrb.mxu1 %v1545_v50  ;;  %v1705_v8 = vld [vmem:[#allocation5 + $0x1a8] sm:$0xff]  ;;  %v1664_v50 = vld [vmem:[#allocation5 + $0x60] sm:$0xff] }
 0x2a9   : > { %1619 = vmatpush.msrb.mxu2 %v1520_v59  ;;  %1639 = vmatpush.msrb.mxu3 %v1552_v60  ;;  %v1696_v59 = vld [vmem:[#allocation5 + $0x160] sm:$0xff]  ;;  %v1671_v60 = vld [vmem:[#allocation5 + $0x98] sm:$0xff] }
 0x2aa   : > { %1583 = vmatpush.msrb.mxu0 %v1511_v23  ;;  %1603 = vmatpush.msrb.mxu1 %v1543_v24  ;;  %v1703_v23 = vld [vmem:[#allocation5 + $0x198] sm:$0xff]  ;;  %v1662_v24 = vld [vmem:[#allocation5 + $0x50] sm:$0xff] }
 0x2ab   : > { %2568 = vmatmul.msk.bf16.vlgmr.msra.gmra.mxu2 %vm515_vm3, %v1025_v31  ;;  %2569 = vmatmul.msk.bf16.vlgmr.msra.gmra.mxu3 %vm515_vm3, %v1025_v31  ;;  %v1694_v31 = vld [vmem:[#allocation5 + $0x150] sm:$0xff] }
 0x2ac   : > { %1620 = vmatpush.msrb.mxu2 %v1518_v12  ;;  %1640 = vmatpush.msrb.mxu3 %v1550_v61  ;;  %v1669_v12 = vld [vmem:[#allocation5 + $0x88] sm:$0xff] }
 0x2ad   : > { %1584 = vmatpush.msrb.mxu0 %v1509_v32  ;;  %1604 = vmatpush.msrb.mxu1 %v1541_v62  ;;  %v1701_v61 = vld [vmem:[#allocation5 + $0x188] sm:$0xff]  ;;  %v1660_v32 = vld [vmem:[#allocation5 + $0x40] sm:$0xff] }
 0x2ae   : > { %1621 = vmatpush.msrb.mxu2 %v1516_v63  ;;  %1641 = vmatpush.msrb.mxu3 %v1548_v1  ;;  %v1692_v62 = vld [vmem:[#allocation5 + $0x140] sm:$0xff]  ;;  %v1667_v63 = vld [vmem:[#allocation5 + $0x78] sm:$0xff] }
 0x2af   : > { %1585 = vmatpush.msrb.mxu0 %v1507_v7  ;;  %1605 = vmatpush.msrb.mxu1 %v1539_v9  ;;  %v1699_v1 = vld [vmem:[#allocation5 + $0x178] sm:$0xff]  ;;  %v1658_v7 = vld [vmem:[#allocation5 + $0x30] sm:$0xff] }
 0x2b0   : > { %1622 = vmatpush.msrb.mxu2 %v1514_v10  ;;  %1642 = vmatpush.msrb.mxu3 %v1546_v56  ;;  %v1690_v9 = vld [vmem:[#allocation5 + $0x130] sm:$0xff]  ;;  %v1665_v10 = vld [vmem:[#allocation5 + $0x68] sm:$0xff] }
 0x2b1   : > { %1586 = vmatpush.msrb.mxu0 %v1505_v57  ;;  %1606 = vmatpush.msrb.mxu1 %v1537_v11  ;;  %v1697_v56 = vld [vmem:[#allocation5 + $0x168] sm:$0xff]  ;;  %v3469_v57 = vld [vmem:[%s3574_s8] sm:$0xf]  ;;  %v1656_v11 = vld [vmem:[#allocation5 + $0x20] sm:$0xff] }
 0x2b2   : > { %1623 = vmatpush.msrb.mxu2 %v1512_v37  ;;  %1643 = vmatpush.msrb.mxu3 %v1544_v38  ;;  %v1688_v37 = vld [vmem:[#allocation5 + $0x120] sm:$0xff]  ;;  %v1663_v38 = vld [vmem:[#allocation5 + $0x58] sm:$0xff] }
 0x2b3   : > { %1587 = vmatpush.msrb.mxu0 %v1503_v13  ;;  %1607 = vmatpush.msrb.mxu1 %v1535_v15  ;;  %v1695_v13 = vld [vmem:[#allocation5 + $0x158] sm:$0xff]  ;;  %v1654_v15 = vld [vmem:[#allocation5 + $0x10] sm:$0xff] }
 0x2b4   : > { %1624 = vmatpush.msrb.mxu2 %v1510_v16  ;;  %1644 = vmatpush.msrb.mxu3 %v1542_v20  ;;  %v1686_v16 = vld [vmem:[#allocation5 + $0x110] sm:$0xff]  ;;  %v1808_v20 = vunpack.c.l.b16 %v3469_v57 }
 0x2b5   : > { %1721 = vmatpush.msra.mxu0 %v1682_v51  ;;  %1741 = vmatpush.msra.mxu1 %v1714_v19  ;;  %v1661_v51 = vld [vmem:[#allocation5 + $0x48] sm:$0xff] }
 0x2b6   : > { %1625 = vmatpush.msrb.mxu2 %v1508_v21  ;;  %1645 = vmatpush.msrb.mxu3 %v1540_v22  ;;  %v1693_v19 = vld [vmem:[#allocation5 + $0x148] sm:$0xff]  ;;  %v1659_v21 = vld [vmem:[#allocation5 + $0x38] sm:$0xff] }
 0x2b7   : > { %1722 = vmatpush.msra.mxu0 %v1680_v27  ;;  %1742 = vmatpush.msra.mxu1 %v1712_v28  ;;  %v1691_v22 = vld [vmem:[#allocation5 + $0x138] sm:$0xff]  ;;  %v1809_v27 = vpack.c.b16 %v1808_v20, %v1808_v20  ;;  %v1657_v28 = vld [vmem:[#allocation5 + $0x28] sm:$0xff] }
 0x2b8   : > { %1626 = vmatpush.msrb.mxu2 %v1506_v17  ;;  %1646 = vmatpush.msrb.mxu3 %v1538_v18  ;;  %v1689_v17 = vld [vmem:[#allocation5 + $0x128] sm:$0xff]  ;;  %v1655_v18 = vld [vmem:[#allocation5 + $0x18] sm:$0xff] }
 0x2b9   : > { %1723 = vmatpush.msra.mxu0 %v1678_v33  ;;  %1743 = vmatpush.msra.mxu1 %v1710_v5  ;;  %v1687_v33 = vld [vmem:[#allocation5 + $0x118] sm:$0xff]  ;;  %v1653_v5 = vld [vmem:[#allocation5 + $0x8] sm:$0xff] }
 0x2ba   : > { %1627 = vmatpush.msrb.mxu2 %v1504_v6  ;;  %1647 = vmatpush.msrb.mxu3 %v1536_v34  ;;  %v1685_v6 = vld [vmem:[#allocation5 + $0x108] sm:$0xff]  ;;  %v3479_v34 = vrot.slane %v1809_v27, 2 }
 0x2bb   : > { %1724 = vmatpush.msra.mxu0 %v1676_v36  ;;  %1744 = vmatpush.msra.mxu1 %v1708_v39 }
 0x2bc   : > { %1761 = vmatpush.msra.mxu2 %v1683_v40  ;;  %1781 = vmatpush.msra.mxu3 %v1715_v41 }
 0x2bd   : > { %1725 = vmatpush.msra.mxu0 %v1674_v42  ;;  %1745 = vmatpush.msra.mxu1 %v1706_v43 }
 0x2be   : > { %1762 = vmatpush.msra.mxu2 %v1681_v25  ;;  %1782 = vmatpush.msra.mxu3 %v1713_v0 }
 0x2bf   : > { %1726 = vmatpush.msra.mxu0 %v1672_v26  ;;  %1746 = vmatpush.msra.mxu1 %v1704_v44 }
 0x2c0   : > { %1763 = vmatpush.msra.mxu2 %v1679_v45  ;;  %1783 = vmatpush.msra.mxu3 %v1711_v46 }
 0x2c1   : > { %1727 = vmatpush.msra.mxu0 %v1670_v47  ;;  %1747 = vmatpush.msra.mxu1 %v1702_v48 }
 0x2c2   : > { %1764 = vmatpush.msra.mxu2 %v1677_v49  ;;  %1784 = vmatpush.msra.mxu3 %v1709_v14 }
 0x2c3   : > { %1728 = vmatpush.msra.mxu0 %v1668_v29  ;;  %1748 = vmatpush.msra.mxu1 %v1700_v52 }
 0x2c4   : > { %1765 = vmatpush.msra.mxu2 %v1675_v53  ;;  %1785 = vmatpush.msra.mxu3 %v1707_v54 }
 0x2c5   : > { %1729 = vmatpush.msra.mxu0 %v1666_v35  ;;  %1749 = vmatpush.msra.mxu1 %v1698_v55 }
 0x2c6   : > { %1766 = vmatpush.msra.mxu2 %v1673_v58  ;;  %1786 = vmatpush.msra.mxu3 %v1705_v8 }
 0x2c7   : > { %1730 = vmatpush.msra.mxu0 %v1664_v50  ;;  %1750 = vmatpush.msra.mxu1 %v1696_v59 }
 0x2c8   : > { %1767 = vmatpush.msra.mxu2 %v1671_v60  ;;  %1787 = vmatpush.msra.mxu3 %v1703_v23 }
 0x2c9   : > { %1731 = vmatpush.msra.mxu0 %v1662_v24  ;;  %1751 = vmatpush.msra.mxu1 %v1694_v31 }
 0x2ca   : > { %1768 = vmatpush.msra.mxu2 %v1669_v12  ;;  %1788 = vmatpush.msra.mxu3 %v1701_v61 }
 0x2cb   : > { %1732 = vmatpush.msra.mxu0 %v1660_v32  ;;  %1752 = vmatpush.msra.mxu1 %v1692_v62 }
 0x2cc   : > { %1588 = vmatmul.f32.vlgmr.msrb.gmra.mxu0 %v3454_v3  ;;  %1608 = vmatmul.f32.vlgmr.msrb.gmra.mxu1 %v3456_v4 }
 0x2cd   : > { %1769 = vmatpush.msra.mxu2 %v1667_v63  ;;  %1789 = vmatpush.msra.mxu3 %v1699_v1 }
 0x2ce   : > { %1628 = vmatmul.f32.vlgmr.msrb.gmra.mxu2 %v3454_v3  ;;  %1648 = vmatmul.f32.vlgmr.msrb.gmra.mxu3 %v3456_v4  ;;  %v1652_v3 = vld [vmem:[#allocation5] sm:$0xff] }
 0x2cf   : > { %1733 = vmatpush.msra.mxu0 %v1658_v7  ;;  %1753 = vmatpush.msra.mxu1 %v1690_v9  ;;  %v1684_v4 = vld [vmem:[#allocation5 + $0x100] sm:$0xff] }
 0x2d0   : > { %1770 = vmatpush.msra.mxu2 %v1665_v10  ;;  %1790 = vmatpush.msra.mxu3 %v1697_v56 }
 0x2d1   : > { %1734 = vmatpush.msra.mxu0 %v1656_v11  ;;  %1754 = vmatpush.msra.mxu1 %v1688_v37 }
 0x2d2   : > { %1771 = vmatpush.msra.mxu2 %v1663_v38  ;;  %1791 = vmatpush.msra.mxu3 %v1695_v13 }
 0x2d3   : > { %1735 = vmatpush.msra.mxu0 %v1654_v15  ;;  %1755 = vmatpush.msra.mxu1 %v1686_v16 }
 0x2d4   : > { %1772 = vmatpush.msra.mxu2 %v1661_v51  ;;  %1792 = vmatpush.msra.mxu3 %v1693_v19 }
 0x2d5   : > { %1736 = vmatpush.msra.mxu0 %v1652_v3  ;;  %1756 = vmatpush.msra.mxu1 %v1684_v4 }
 0x2d6   : > { %1737 = vmatmul.f32.vlgmr.msra.gmra.mxu0 %v3459_v30  ;;  %1757 = vmatmul.f32.vlgmr.msra.gmra.mxu1 %v3461_v2 }
 0x2d7   : > { %1773 = vmatpush.msra.mxu2 %v1659_v21  ;;  %1793 = vmatpush.msra.mxu3 %v1691_v22 }
 0x2d8   : > { %1810 = vrot.lane.b32.xlu1 %v1809_v27, %s2939_s28  ;;  %1883 = vrot.lane.b32.xlu2 %v3479_v34, %s2939_s28 }
 0x2d9   : > { %1774 = vmatpush.msra.mxu2 %v1657_v28  ;;  %1794 = vmatpush.msra.mxu3 %v1689_v17 }
 0x2db   : > { %1775 = vmatpush.msra.mxu2 %v1655_v18  ;;  %1795 = vmatpush.msra.mxu3 %v1687_v33 }
 0x2dd   : > { %1776 = vmatpush.msra.mxu2 %v1653_v5  ;;  %1796 = vmatpush.msra.mxu3 %v1685_v6 }
 0x2de   : > { %1777 = vmatmul.f32.vlgmr.msra.gmra.mxu2 %v3459_v30  ;;  %1797 = vmatmul.f32.vlgmr.msra.gmra.mxu3 %v3461_v2 }
 0x2eb   : > { %v1082_v36 = vpop.f32.mrf.mxu2  ;;  %v1095_v39 = vpop.f32.mrf.mxu3 }
 0x2ee   : > { %v1117_v40 = vpop.f32.mrf.mxu0  ;;  %v1130_v41 = vpop.f32.mrf.mxu1 }
 0x2ef   : > { %v1118_v42 = vadd.f32 %v1117_v40, %v1082_v36  ;;  %v1131_v43 = vadd.f32 %v1130_v41, %v1095_v39 }
 0x2f3   : > { %v1084_v25 = vpop.f32.mrf.mxu2  ;;  %v1097_v0 = vpop.f32.mrf.mxu3 }
 0x2f4   : > { %v1802_v25 = vld [vmem:[%s3575_s9] sm:$0xf] }
 0x2f5   : > { %v1952_v0 = vunpack.c.l.b16 %v1802_v25 }
 0x2f6   : > { %v1119_v26 = vpop.f32.mrf.mxu0  ;;  %v1132_v44 = vpop.f32.mrf.mxu1 }
 0x2f7   : > { %v1953_v26 = vpack.c.b16 %v1952_v0, %v1952_v0  ;;  %v2167_v0 = vld [vmem:[#allocation8 + $0x80] sm:$0xff] }
 0x2f9   : > { %1954 = vrot.lane.b32.xlu0 %v1953_v26, %s2939_s28  ;;  %v3499_v44 = vrot.slane %v1953_v26, 2 }
 0x2fb   : > { %v1170_v45 = vpop.f32.mrf.mxu2  ;;  %v1183_v46 = vpop.f32.mrf.mxu3  ;;  %2027 = vrot.lane.b32.xlu1 %v3499_v44, %s2939_s28 }
 0x2fc   : > { %v1187_v30 = vadd.f32 %v1170_v45, %v1118_v42  ;;  %v1188_v47 = vadd.f32 %v1183_v46, %v1131_v43 }
 0x2fe   : > { %v1225_v2 = vpop.f32.mrf.mxu0  ;;  %v1238_v48 = vpop.f32.mrf.mxu1 }
 0x2ff   : > { %v1242_v49 = vadd.f32 %v1225_v2, %v1187_v30  ;;  %v1243_v14 = vadd.f32 %v1238_v48, %v1188_v47 }
 0x303   : > { %v1172_v29 = vpop.f32.mrf.mxu2  ;;  %v1185_v52 = vpop.f32.mrf.mxu3 }
 0x306   : > { %v1227_v53 = vpop.f32.mrf.mxu0  ;;  %v1240_v54 = vpop.f32.mrf.mxu1 }
 0x30b   : > { %v1264_v35 = vpop.f32.mrf.mxu2  ;;  %v1277_v55 = vpop.f32.mrf.mxu3 }
 0x30c   : > { %v1281_v58 = vadd.f32 %v1264_v35, %v1242_v49  ;;  %v1282_v8 = vadd.f32 %v1277_v55, %v1243_v14 }
 0x30e   : > { %v1319_v50 = vpop.f32.mrf.mxu0  ;;  %v1332_v59 = vpop.f32.mrf.mxu1 }
 0x30f   : > { %v1336_v60 = vadd.f32 %v1319_v50, %v1281_v58  ;;  %v1337_v23 = vadd.f32 %v1332_v59, %v1282_v8 }
 0x313   : > { %v1266_v24 = vpop.f32.mrf.mxu2  ;;  %v1279_v31 = vpop.f32.mrf.mxu3 }
 0x316   : > { %v1321_v12 = vpop.f32.mrf.mxu0  ;;  %v1334_v61 = vpop.f32.mrf.mxu1 }
 0x31c   : > { %v1374_v32 = vpop.f32.mrf.mxu2  ;;  %v1387_v62 = vpop.f32.mrf.mxu3 }
 0x31d   : > { %v1391_v63 = vadd.f32 %v1374_v32, %v1336_v60  ;;  %v1392_v1 = vadd.f32 %v1387_v62, %v1337_v23 }
 0x31f   : > { %v1429_v7 = vpop.f32.mrf.mxu0  ;;  %v1442_v9 = vpop.f32.mrf.mxu1 }
 0x320   : > { %v1446_v10 = vadd.f32 %v1429_v7, %v1391_v63  ;;  %v1447_v56 = vadd.f32 %v1442_v9, %v1392_v1 }
 0x324   : > { %v1376_v11 = vpop.f32.mrf.mxu2  ;;  %v1389_v37 = vpop.f32.mrf.mxu3 }
 0x325   : > { %v2180_v11 = vld [vmem:[#allocation8 + $0xe8] sm:$0xff]  ;;  %v2179_v37 = vld [vmem:[#allocation8 + $0xe0] sm:$0xff] }
 0x327   : > { %v1431_v38 = vpop.f32.mrf.mxu0  ;;  %v1444_v13 = vpop.f32.mrf.mxu1 }
 0x328   : > { %v2178_v38 = vld [vmem:[#allocation8 + $0xd8] sm:$0xff] }
 0x32e   : > { %v1484_v15 = vpop.f32.mrf.mxu2  ;;  %v1497_v16 = vpop.f32.mrf.mxu3 }
 0x32f   : > { %v3483_v20 = vadd.f32 %v1484_v15, %v1446_v10  ;;  %v3485_v51 = vadd.f32 %v1497_v16, %v1447_v56  ;;  %v2181_v10 = vld [vmem:[#allocation8 + $0xf0] sm:$0xff]  ;;  %v2182_v56 = vld [vmem:[#allocation8 + $0xf8] sm:$0xff]  ;;  %v2176_v16 = vld [vmem:[#allocation8 + $0xc8] sm:$0xff] }
 0x330   : > { %v2177_v15 = vld [vmem:[#allocation8 + $0xd0] sm:$0xff] }
 0x332   : > { %v1884_v2 = vpop.permute.xlu2 %1883 }
 0x336   : > { %v1486_v19 = vpop.f32.mrf.mxu2  ;;  %v1499_v3 = vpop.f32.mrf.mxu3 }
 0x337   : > { %v2214_v3 = vld [vmem:[#allocation8 + $0x1f8] sm:$0xff] }
 0x349   : > { %v1589_v4 = vpop.f32.mrf.mxu0  ;;  %v1609_v21 = vpop.f32.mrf.mxu1 }
 0x34a   : > { %v1610_v22 = vadd.f32 %v1609_v21, %v1589_v4  ;;  %v1811_v43 = vpop.permute.xlu1 %1810  ;;  %v2175_v21 = vld [vmem:[#allocation8 + $0xc0] sm:$0xff] }
 0x34c   : > { %v1803_v27 = vpack.c.bf16 %v1610_v22, %v1610_v22  ;;  %v2174_v22 = vld [vmem:[#allocation8 + $0xb8] sm:$0xff] }
 0x34e   : > { %v1851_v28 = vsel %vm519_vm2, %v1803_v27, 0  ;;  %v2212_v27 = vld [vmem:[#allocation8 + $0x1e8] sm:$0xff] }
 0x34f   : > { %1863 = vmatpush.bf16.msrb.mxu2 %v1851_v28 }
 0x351   : > { %v1629_v17 = vpop.f32.mrf.mxu2  ;;  %v1649_v18 = vpop.f32.mrf.mxu3 }
 0x352   : > { %v1650_v33 = vadd.f32 %v1649_v18, %v1629_v17  ;;  %2572 = vmatmul.msk.bf16.vlgmr.msrb.gmra.mxu2 %vm515_vm3, %v3469_v57  ;;  %v2173_v18 = vld [vmem:[#allocation8 + $0xb0] sm:$0xff] }
 0x353   : > { %1924 = vmatpush.bf16.msra.mxu2 %v1851_v28  ;;  %v1738_v5 = vpop.f32.mrf.mxu0  ;;  %v1758_v6 = vpop.f32.mrf.mxu1  ;;  %v2210_v28 = vld [vmem:[#allocation8 + $0x1d8] sm:$0xff] }
 0x354   : > { %v1804_v36 = vpack.c.bf16 %v1650_v33, %v1650_v33  ;;  %v1759_v39 = vadd.f32 %v1758_v6, %v1738_v5  ;;  %v2172_v33 = vld [vmem:[#allocation8 + $0xa8] sm:$0xff] }
 0x355   : > { %v2208_v5 = vld [vmem:[#allocation8 + $0x1c8] sm:$0xff] }
 0x356   : > { %v1854_v40 = vsel %vm519_vm2, %v1804_v36, 0  ;;  %v1805_v41 = vpack.c.bf16 %v1759_v39, %v1759_v39  ;;  %v2171_v36 = vld [vmem:[#allocation8 + $0xa0] sm:$0xff]  ;;  %v2170_v39 = vld [vmem:[#allocation8 + $0x98] sm:$0xff] }
 0x357   : > { %1876 = vmatpush.bf16.msrb.mxu3 %v1854_v40 }
 0x358   : > { %v1816_v42 = vsel %vm519_vm2, %v1805_v41, 0  ;;  %v2169_v41 = vld [vmem:[#allocation8 + $0x90] sm:$0xff] }
 0x359   : > { %1828 = vmatpush.bf16.msrb.mxu0 %v1816_v42 }
 0x35a   : > { %2573 = vmatmul.msk.bf16.vlgmr.msrb.gmra.mxu3 %vm515_vm3, %v3469_v57 }
 0x35b   : > { %1937 = vmatpush.bf16.msra.mxu3 %v1854_v40 }
 0x35c   : > { %2570 = vmatmul.msk.bf16.vlgmr.msrb.gmra.mxu0 %vm515_vm3, %v1811_v43 }
 0x35d   : > { %1895 = vmatpush.bf16.msra.mxu0 %v1816_v42  ;;  %v2206_v42 = vld [vmem:[#allocation8 + $0x1b8] sm:$0xff] }
 0x361   : > { %v1778_v45 = vpop.f32.mrf.mxu2  ;;  %v1798_v46 = vpop.f32.mrf.mxu3 }
 0x362   : > { %v1799_v30 = vadd.f32 %v1798_v46, %v1778_v45  ;;  %2576 = vmatmul.msk.bf16.vlgmr.msra.gmra.mxu2 %vm515_vm3, %v3479_v34  ;;  %v2168_v45 = vld [vmem:[#allocation8 + $0x88] sm:$0xff]  ;;  %v2211_v46 = vld [vmem:[#allocation8 + $0x1e0] sm:$0xff] }
 0x364   : > { %v1806_v57 = vpack.c.bf16 %v1799_v30, %v1799_v30  ;;  %v2165_v30 = vld [vmem:[#allocation8 + $0x70] sm:$0xff] }
 0x366   : > { %v1819_v47 = vsel %vm519_vm2, %v1806_v57, 0  ;;  %v2166_v57 = vld [vmem:[#allocation8 + $0x78] sm:$0xff] }
 0x367   : > { %1841 = vmatpush.bf16.msrb.mxu1 %v1819_v47 }
 0x36a   : > { %2571 = vmatmul.msk.bf16.vlgmr.msrb.gmra.mxu1 %vm515_vm3, %v1811_v43  ;;  %2577 = vmatmul.msk.bf16.vlgmr.msra.gmra.mxu3 %vm515_vm3, %v3479_v34 }
 0x36b   : > { %1908 = vmatpush.bf16.msra.mxu1 %v1819_v47  ;;  %v1955_v7 = vpop.permute.xlu0 %1954  ;;  %v2204_v47 = vld [vmem:[#allocation8 + $0x1a8] sm:$0xff] }
 0x36c   : > { %2574 = vmatmul.msk.bf16.vlgmr.msra.gmra.mxu0 %vm515_vm3, %v1884_v2 }
 0x36d   : > { %v3520_v26 = vpop.permute.xlu1 %2027 }
 0x37a   : > { %2575 = vmatmul.msk.bf16.vlgmr.msra.gmra.mxu1 %vm515_vm3, %v1884_v2  ;;  %v2209_v2 = vld [vmem:[#allocation8 + $0x1d0] sm:$0xff] }
 0x3d5   : > { %v1865_v48 = vpop.f32.mrf.mxu2 }
 0x3d9   : > { %v1830_v49 = vpop.f32.mrf.mxu0 }
 0x3da   : > { %v1866_v14 = vadd.f32 %v1865_v48, %v1830_v49  ;;  %v2163_v48 = vld [vmem:[#allocation8 + $0x60] sm:$0xff]  ;;  %v2164_v49 = vld [vmem:[#allocation8 + $0x68] sm:$0xff] }
 0x3dc   : > { %v1943_v29 = vmax.f32 %v1866_v14, 0.0  ;;  %v2202_v14 = vld [vmem:[#allocation8 + $0x198] sm:$0xff] }
 0x3dd   : > { %v1878_v52 = vpop.f32.mrf.mxu3  ;;  %v1867_v53 = vpop.f32.mrf.mxu2 }
 0x3de   : > { %v1947_v54 = vpack.c.bf16 %v1943_v29, %v1943_v29  ;;  %v2207_v29 = vld [vmem:[#allocation8 + $0x1c0] sm:$0xff]  ;;  %v2200_v53 = vld [vmem:[#allocation8 + $0x188] sm:$0xff] }
 0x3e0   : > { %v1995_v35 = vsel %vm519_vm2, %v1947_v54, 0  ;;  %v2205_v54 = vld [vmem:[#allocation8 + $0x1b0] sm:$0xff] }
 0x3e1   : > { %v1832_v55 = vpop.f32.mrf.mxu0  ;;  %2007 = vmatpush.bf16.msrb.mxu2 %v1995_v35 }
 0x3e2   : > { %v2160_v55 = vld [vmem:[#allocation8 + $0x48] sm:$0xff] }
 0x3e4   : > { %2580 = vmatmul.msk.bf16.vlgmr.msrb.gmra.mxu2 %vm515_vm3, %v1802_v25 }
 0x3e5   : > { %2068 = vmatpush.bf16.msra.mxu2 %v1995_v35  ;;  %v1880_v58 = vpop.f32.mrf.mxu3  ;;  %v1926_v34 = vpop.f32.mrf.mxu2  ;;  %v2159_v35 = vld [vmem:[#allocation8 + $0x40] sm:$0xff] }
 0x3e6   : > { %v2198_v58 = vld [vmem:[#allocation8 + $0x178] sm:$0xff] }
 0x3e7   : > { %v1843_v8 = vpop.f32.mrf.mxu1 }
 0x3e8   : > { %v1879_v50 = vadd.f32 %v1878_v52, %v1843_v8  ;;  %v2161_v52 = vld [vmem:[#allocation8 + $0x50] sm:$0xff] }
 0x3e9   : > { %v1897_v59 = vpop.f32.mrf.mxu0  ;;  %2255 = vmatpush.msrb.mxu2 %v2182_v56  ;;  %v2157_v8 = vld [vmem:[#allocation8 + $0x30] sm:$0xff]  ;;  %v2115_v56 = vld [vmem:[#allocation7 + $0xe0] sm:$0xff] }
 0x3ea   : > { %v1944_v60 = vmax.f32 %v1879_v50, 0.0  ;;  %v1927_v23 = vadd.f32 %v1926_v34, %v1897_v59  ;;  %v2203_v34 = vld [vmem:[#allocation8 + $0x1a0] sm:$0xff]  ;;  %v2158_v50 = vld [vmem:[#allocation8 + $0x38] sm:$0xff]  ;;  %v2196_v59 = vld [vmem:[#allocation8 + $0x168] sm:$0xff] }
 0x3eb   : > { %2256 = vmatpush.msrb.mxu2 %v2180_v11  ;;  %v2193_v11 = vld [vmem:[#allocation8 + $0x150] sm:$0xff] }
 0x3ec   : > { %v1948_v24 = vpack.c.bf16 %v1944_v60, %v1944_v60  ;;  %v1945_v31 = vmax.f32 %v1927_v23, 0.0  ;;  %v2201_v60 = vld [vmem:[#allocation8 + $0x190] sm:$0xff]  ;;  %v2155_v23 = vld [vmem:[#allocation8 + $0x20] sm:$0xff] }
 0x3ed   : > { %v1939_v12 = vpop.f32.mrf.mxu3  ;;  %v1928_v61 = vpop.f32.mrf.mxu2  ;;  %2257 = vmatpush.msrb.mxu2 %v2178_v38  ;;  %v2113_v38 = vld [vmem:[#allocation7 + $0xd0] sm:$0xff] }
 0x3ee   : > { %v1949_v32 = vpack.c.bf16 %v1945_v31, %v1945_v31  ;;  %v1998_v62 = vsel %vm519_vm2, %v1948_v24, 0  ;;  %v2156_v24 = vld [vmem:[#allocation8 + $0x28] sm:$0xff]  ;;  %v2194_v31 = vld [vmem:[#allocation8 + $0x158] sm:$0xff]  ;;  %v2153_v61 = vld [vmem:[#allocation8 + $0x10] sm:$0xff] }
 0x3ef   : > { %v1845_v63 = vpop.f32.mrf.mxu1  ;;  %2020 = vmatpush.bf16.msrb.mxu3 %v1998_v62  ;;  %2258 = vmatpush.msrb.mxu2 %v2176_v16  ;;  %v2192_v16 = vld [vmem:[#allocation8 + $0x148] sm:$0xff] }
 0x3f0   : > { %v1960_v1 = vsel %vm519_vm2, %v1949_v32, 0  ;;  %v2154_v32 = vld [vmem:[#allocation8 + $0x18] sm:$0xff]  ;;  %v2151_v63 = vld [vmem:[#allocation8] sm:$0xff] }
 0x3f1   : > { %1972 = vmatpush.bf16.msrb.mxu0 %v1960_v1  ;;  %v1899_v9 = vpop.f32.mrf.mxu0  ;;  %2259 = vmatpush.msrb.mxu2 %v2174_v22  ;;  %v2187_v22 = vld [vmem:[#allocation8 + $0x120] sm:$0xff] }
 0x3f2   : > { %2581 = vmatmul.msk.bf16.vlgmr.msrb.gmra.mxu3 %vm515_vm3, %v1802_v25  ;;  %v2213_v25 = vld [vmem:[#allocation8 + $0x1f0] sm:$0xff]  ;;  %v2195_v9 = vld [vmem:[#allocation8 + $0x160] sm:$0xff] }
 0x3f3   : > { %2081 = vmatpush.bf16.msra.mxu3 %v1998_v62  ;;  %2260 = vmatpush.msrb.mxu2 %v2172_v33  ;;  %v2197_v62 = vld [vmem:[#allocation8 + $0x170] sm:$0xff]  ;;  %v2186_v33 = vld [vmem:[#allocation8 + $0x118] sm:$0xff] }
 0x3f4   : > { %2578 = vmatmul.msk.bf16.vlgmr.msrb.gmra.mxu0 %vm515_vm3, %v1955_v7  ;;  %2584 = vmatmul.msk.bf16.vlgmr.msra.gmra.mxu2 %vm515_vm3, %v3499_v44 }
 0x3f5   : > { %2039 = vmatpush.bf16.msra.mxu0 %v1960_v1  ;;  %v1941_v13 = vpop.f32.mrf.mxu3  ;;  %2261 = vmatpush.msrb.mxu2 %v2170_v39  ;;  %v2152_v1 = vld [vmem:[#allocation8 + $0x8] sm:$0xff]  ;;  %v2106_v39 = vld [vmem:[#allocation7 + $0x98] sm:$0xff] }
 0x3f6   : > { %v2114_v13 = vld [vmem:[#allocation7 + $0xd8] sm:$0xff] }
 0x3f7   : > { %v1910_v19 = vpop.f32.mrf.mxu1  ;;  %2275 = vmatpush.msrb.mxu3 %v2214_v3  ;;  %2262 = vmatpush.msrb.mxu2 %v2168_v45  ;;  %v2190_v3 = vld [vmem:[#allocation8 + $0x138] sm:$0xff]  ;;  %v2148_v45 = vld [vmem:[#allocation7 + $0x1e8] sm:$0xff] }
 0x3f8   : > { %v1940_v4 = vadd.f32 %v1939_v12, %v1910_v19  ;;  %v2199_v12 = vld [vmem:[#allocation8 + $0x180] sm:$0xff]  ;;  %v2189_v19 = vld [vmem:[#allocation8 + $0x130] sm:$0xff] }
 0x3f9   : > { %2215 = vmatpush.msrb.mxu0 %v2181_v10  ;;  %2276 = vmatpush.msrb.mxu3 %v2212_v27  ;;  %v2118_v10 = vld [vmem:[#allocation7 + $0xf8] sm:$0xff]  ;;  %v2188_v27 = vld [vmem:[#allocation8 + $0x128] sm:$0xff] }
 0x3fa   : > { %v1946_v17 = vmax.f32 %v1940_v4, 0.0  ;;  %2263 = vmatpush.msrb.mxu2 %v2166_v57  ;;  %v2111_v4 = vld [vmem:[#allocation7 + $0xc0] sm:$0xff]  ;;  %v2145_v57 = vld [vmem:[#allocation7 + $0x1d0] sm:$0xff] }
 0x3fb   : > { %2216 = vmatpush.msrb.mxu0 %v2179_v37  ;;  %2277 = vmatpush.msrb.mxu3 %v2210_v28  ;;  %v2116_v37 = vld [vmem:[#allocation7 + $0xe8] sm:$0xff]  ;;  %v2109_v28 = vld [vmem:[#allocation7 + $0xb0] sm:$0xff] }
 0x3fc   : > { %v1950_v6 = vpack.c.bf16 %v1946_v17, %v1946_v17  ;;  %2264 = vmatpush.msrb.mxu2 %v2164_v49  ;;  %v2110_v17 = vld [vmem:[#allocation7 + $0xb8] sm:$0xff]  ;;  %v2143_v49 = vld [vmem:[#allocation7 + $0x1c0] sm:$0xff] }
 0x3fd   : > { %2217 = vmatpush.msrb.mxu0 %v2177_v15  ;;  %2278 = vmatpush.msrb.mxu3 %v2208_v5  ;;  %v2191_v15 = vld [vmem:[#allocation8 + $0x140] sm:$0xff] }
 0x3fe   : > { %v1963_v40 = vsel %vm519_vm2, %v1950_v6, 0  ;;  %v2107_v5 = vld [vmem:[#allocation7 + $0xa0] sm:$0xff]  ;;  %v2108_v6 = vld [vmem:[#allocation7 + $0xa8] sm:$0xff] }
 0x3ff   : > { %2218 = vmatpush.msrb.mxu0 %v2175_v21  ;;  %v1912_v43 = vpop.f32.mrf.mxu1  ;;  %1985 = vmatpush.bf16.msrb.mxu1 %v1963_v40  ;;  %v2112_v21 = vld [vmem:[#allocation7 + $0xc8] sm:$0xff] }
 0x400   : > { %2279 = vmatpush.msrb.mxu3 %v2206_v42  ;;  %v2149_v42 = vld [vmem:[#allocation7 + $0x1f0] sm:$0xff]  ;;  %v2150_v43 = vld [vmem:[#allocation7 + $0x1f8] sm:$0xff] }
 0x401   : > { %2219 = vmatpush.msrb.mxu0 %v2173_v18  ;;  %v2185_v18 = vld [vmem:[#allocation8 + $0x110] sm:$0xff] }
 0x402   : > { %2579 = vmatmul.msk.bf16.vlgmr.msrb.gmra.mxu1 %vm515_vm3, %v1955_v7  ;;  %2585 = vmatmul.msk.bf16.vlgmr.msra.gmra.mxu3 %vm515_vm3, %v3499_v44  ;;  %v2162_v44 = vld [vmem:[#allocation8 + $0x58] sm:$0xff]  ;;  %v2117_v7 = vld [vmem:[#allocation7 + $0xf0] sm:$0xff] }
 0x403   : > { %2220 = vmatpush.msrb.mxu0 %v2171_v36  ;;  %2052 = vmatpush.bf16.msra.mxu1 %v1963_v40  ;;  %v2105_v36 = vld [vmem:[#allocation7 + $0x90] sm:$0xff]  ;;  %v2183_v40 = vld [vmem:[#allocation8 + $0x100] sm:$0xff] }
 0x404   : > { %2582 = vmatmul.msk.bf16.vlgmr.msra.gmra.mxu0 %vm515_vm3, %v3520_v26  ;;  %2280 = vmatpush.msrb.mxu3 %v2204_v47  ;;  %v2146_v47 = vld [vmem:[#allocation7 + $0x1d8] sm:$0xff] }
 0x405   : > { %2221 = vmatpush.msrb.mxu0 %v2169_v41  ;;  %2265 = vmatpush.msrb.mxu2 %v2162_v44  ;;  %v2184_v41 = vld [vmem:[#allocation8 + $0x108] sm:$0xff]  ;;  %v2141_v44 = vld [vmem:[#allocation7 + $0x1b0] sm:$0xff] }
 0x406   : > { %2281 = vmatpush.msrb.mxu3 %v2202_v14  ;;  %v2144_v14 = vld [vmem:[#allocation7 + $0x1c8] sm:$0xff] }
 0x407   : > { %2235 = vmatpush.msrb.mxu1 %v2213_v25  ;;  %2222 = vmatpush.msrb.mxu0 %v2167_v0  ;;  %v2103_v25 = vld [vmem:[#allocation7 + $0x80] sm:$0xff]  ;;  %v2104_v0 = vld [vmem:[#allocation7 + $0x88] sm:$0xff] }
 0x408   : > { %2282 = vmatpush.msrb.mxu3 %v2200_v53  ;;  %2266 = vmatpush.msrb.mxu2 %v2160_v55  ;;  %v2142_v53 = vld [vmem:[#allocation7 + $0x1b8] sm:$0xff]  ;;  %v2139_v55 = vld [vmem:[#allocation7 + $0x1a0] sm:$0xff] }
 0x409   : > { %2236 = vmatpush.msrb.mxu1 %v2211_v46  ;;  %2223 = vmatpush.msrb.mxu0 %v2165_v30  ;;  %v2101_v46 = vld [vmem:[#allocation7 + $0x70] sm:$0xff]  ;;  %v2102_v30 = vld [vmem:[#allocation7 + $0x78] sm:$0xff] }
 0x40a   : > { %2283 = vmatpush.msrb.mxu3 %v2198_v58  ;;  %2267 = vmatpush.msrb.mxu2 %v2158_v50  ;;  %v2140_v58 = vld [vmem:[#allocation7 + $0x1a8] sm:$0xff]  ;;  %v2137_v50 = vld [vmem:[#allocation7 + $0x190] sm:$0xff] }
 0x40b   : > { %2237 = vmatpush.msrb.mxu1 %v2209_v2  ;;  %2224 = vmatpush.msrb.mxu0 %v2163_v48  ;;  %v2099_v2 = vld [vmem:[#allocation7 + $0x60] sm:$0xff]  ;;  %v2100_v48 = vld [vmem:[#allocation7 + $0x68] sm:$0xff] }
 0x40c   : > { %2284 = vmatpush.msrb.mxu3 %v2196_v59  ;;  %2268 = vmatpush.msrb.mxu2 %v2156_v24  ;;  %v2138_v59 = vld [vmem:[#allocation7 + $0x198] sm:$0xff]  ;;  %v2092_v24 = vld [vmem:[#allocation7 + $0x28] sm:$0xff] }
 0x40d   : > { %2238 = vmatpush.msrb.mxu1 %v2207_v29  ;;  %2225 = vmatpush.msrb.mxu0 %v2161_v52  ;;  %v2097_v29 = vld [vmem:[#allocation7 + $0x50] sm:$0xff]  ;;  %v2098_v52 = vld [vmem:[#allocation7 + $0x58] sm:$0xff] }
 0x40e   : > { %2285 = vmatpush.msrb.mxu3 %v2194_v31  ;;  %2269 = vmatpush.msrb.mxu2 %v2154_v32  ;;  %v2135_v31 = vld [vmem:[#allocation7 + $0x180] sm:$0xff]  ;;  %v2090_v32 = vld [vmem:[#allocation7 + $0x18] sm:$0xff] }
 0x40f   : > { %2239 = vmatpush.msrb.mxu1 %v2205_v54  ;;  %2226 = vmatpush.msrb.mxu0 %v2159_v35  ;;  %v2095_v54 = vld [vmem:[#allocation7 + $0x40] sm:$0xff]  ;;  %v2096_v35 = vld [vmem:[#allocation7 + $0x48] sm:$0xff] }
 0x410   : > { %2270 = vmatpush.msrb.mxu2 %v2152_v1  ;;  %2286 = vmatpush.msrb.mxu3 %v2192_v16  ;;  %v2087_v1 = vld [vmem:[#allocation7] sm:$0xff]  ;;  %v2125_v16 = vld [vmem:[#allocation7 + $0x130] sm:$0xff] }
 0x411   : > { %2240 = vmatpush.msrb.mxu1 %v2203_v34  ;;  %2227 = vmatpush.msrb.mxu0 %v2157_v8  ;;  %v2093_v34 = vld [vmem:[#allocation7 + $0x30] sm:$0xff]  ;;  %v2094_v8 = vld [vmem:[#allocation7 + $0x38] sm:$0xff] }
 0x412   : > { %2583 = vmatmul.msk.bf16.vlgmr.msra.gmra.mxu1 %vm515_vm3, %v3520_v26  ;;  %2335 = vmatpush.msra.mxu2 %v2118_v10  ;;  %v2147_v26 = vld [vmem:[#allocation7 + $0x1e0] sm:$0xff]  ;;  %v2132_v10 = vld [vmem:[#allocation7 + $0x168] sm:$0xff] }
 0x413   : > { %2241 = vmatpush.msrb.mxu1 %v2201_v60  ;;  %2228 = vmatpush.msrb.mxu0 %v2155_v23  ;;  %v2091_v60 = vld [vmem:[#allocation7 + $0x20] sm:$0xff] }
 0x414   : > { %2336 = vmatpush.msra.mxu2 %v2116_v37  ;;  %2287 = vmatpush.msrb.mxu3 %v2190_v3  ;;  %v2123_v3 = vld [vmem:[#allocation7 + $0x120] sm:$0xff] }
 0x415   : > { %2242 = vmatpush.msrb.mxu1 %v2199_v12  ;;  %2229 = vmatpush.msrb.mxu0 %v2153_v61  ;;  %v2136_v12 = vld [vmem:[#allocation7 + $0x188] sm:$0xff]  ;;  %v2089_v61 = vld [vmem:[#allocation7 + $0x10] sm:$0xff] }
 0x416   : > { %2337 = vmatpush.msra.mxu2 %v2114_v13  ;;  %2288 = vmatpush.msrb.mxu3 %v2188_v27  ;;  %v2128_v13 = vld [vmem:[#allocation7 + $0x148] sm:$0xff]  ;;  %v2122_v27 = vld [vmem:[#allocation7 + $0x118] sm:$0xff] }
 0x417   : > { %2243 = vmatpush.msrb.mxu1 %v2197_v62  ;;  %2230 = vmatpush.msrb.mxu0 %v2151_v63  ;;  %v2133_v62 = vld [vmem:[#allocation7 + $0x170] sm:$0xff]  ;;  %v2134_v63 = vld [vmem:[#allocation7 + $0x178] sm:$0xff] }
 0x418   : > { %2338 = vmatpush.msra.mxu2 %v2112_v21  ;;  %2289 = vmatpush.msrb.mxu3 %v2186_v33  ;;  %v2121_v21 = vld [vmem:[#allocation7 + $0x110] sm:$0xff] }
 0x419   : > { %2295 = vmatpush.msra.mxu0 %v2117_v7  ;;  %2244 = vmatpush.msrb.mxu1 %v2195_v9  ;;  %v2088_v7 = vld [vmem:[#allocation7 + $0x8] sm:$0xff]  ;;  %v2131_v9 = vld [vmem:[#allocation7 + $0x160] sm:$0xff] }
 0x41a   : > { %2339 = vmatpush.msra.mxu2 %v2110_v17  ;;  %2290 = vmatpush.msrb.mxu3 %v2184_v41 }
 0x41b   : > { %2296 = vmatpush.msra.mxu0 %v2115_v56  ;;  %2245 = vmatpush.msrb.mxu1 %v2193_v11  ;;  %v2129_v56 = vld [vmem:[#allocation7 + $0x150] sm:$0xff]  ;;  %v2130_v11 = vld [vmem:[#allocation7 + $0x158] sm:$0xff] }
 0x41c   : > { %2340 = vmatpush.msra.mxu2 %v2108_v6  ;;  %2355 = vmatpush.msra.mxu3 %v2150_v43 }
 0x41d   : > { %2297 = vmatpush.msra.mxu0 %v2113_v38  ;;  %2246 = vmatpush.msrb.mxu1 %v2191_v15  ;;  %v2127_v38 = vld [vmem:[#allocation7 + $0x140] sm:$0xff] }
 0x41e   : > { %2341 = vmatpush.msra.mxu2 %v2106_v39  ;;  %2356 = vmatpush.msra.mxu3 %v2148_v45 }
 0x41f   : > { %2298 = vmatpush.msra.mxu0 %v2111_v4  ;;  %2247 = vmatpush.msrb.mxu1 %v2189_v19  ;;  %v2126_v19 = vld [vmem:[#allocation7 + $0x138] sm:$0xff]  ;;  %v2124_v4 = vld [vmem:[#allocation7 + $0x128] sm:$0xff] }
 0x420   : > { %2342 = vmatpush.msra.mxu2 %v2104_v0  ;;  %2357 = vmatpush.msra.mxu3 %v2146_v47 }
 0x421   : > { %2299 = vmatpush.msra.mxu0 %v2109_v28  ;;  %2248 = vmatpush.msrb.mxu1 %v2187_v22  ;;  %v2119_v28 = vld [vmem:[#allocation7 + $0x100] sm:$0xff] }
 0x422   : > { %2343 = vmatpush.msra.mxu2 %v2102_v30  ;;  %2358 = vmatpush.msra.mxu3 %v2144_v14 }
 0x423   : > { %2300 = vmatpush.msra.mxu0 %v2107_v5  ;;  %2249 = vmatpush.msrb.mxu1 %v2185_v18  ;;  %v2120_v18 = vld [vmem:[#allocation7 + $0x108] sm:$0xff] }
 0x424   : > { %2344 = vmatpush.msra.mxu2 %v2100_v48  ;;  %2359 = vmatpush.msra.mxu3 %v2142_v53 }
 0x425   : > { %2301 = vmatpush.msra.mxu0 %v2105_v36  ;;  %2250 = vmatpush.msrb.mxu1 %v2183_v40 }
 0x426   : > { %2345 = vmatpush.msra.mxu2 %v2098_v52  ;;  %2360 = vmatpush.msra.mxu3 %v2140_v58  ;;  %v2377_v52 = vld.sshfl [vmem:[#allocation1 + $0x8] sm:$0xff pattern:$0x75316420] }
 0x427   : > { %2315 = vmatpush.msra.mxu1 %v2149_v42  ;;  %2302 = vmatpush.msra.mxu0 %v2103_v25 }
 0x428   : > { %2346 = vmatpush.msra.mxu2 %v2096_v35  ;;  %2361 = vmatpush.msra.mxu3 %v2138_v59 }
 0x429   : > { %2316 = vmatpush.msra.mxu1 %v2147_v26  ;;  %2303 = vmatpush.msra.mxu0 %v2101_v46 }
 0x42a   : > { %2347 = vmatpush.msra.mxu2 %v2094_v8  ;;  %2362 = vmatpush.msra.mxu3 %v2136_v12 }
 0x42b   : > { %2317 = vmatpush.msra.mxu1 %v2145_v57  ;;  %2304 = vmatpush.msra.mxu0 %v2099_v2 }
 0x42c   : > { %2348 = vmatpush.msra.mxu2 %v2092_v24  ;;  %2363 = vmatpush.msra.mxu3 %v2134_v63 }
 0x42d   : > { %2318 = vmatpush.msra.mxu1 %v2143_v49  ;;  %2305 = vmatpush.msra.mxu0 %v2097_v29 }
 0x42e   : > { %2349 = vmatpush.msra.mxu2 %v2090_v32  ;;  %2364 = vmatpush.msra.mxu3 %v2132_v10 }
 0x42f   : > { %2319 = vmatpush.msra.mxu1 %v2141_v44  ;;  %2306 = vmatpush.msra.mxu0 %v2095_v54 }
 0x430   : > { %2350 = vmatpush.msra.mxu2 %v2088_v7  ;;  %2365 = vmatpush.msra.mxu3 %v2130_v11 }
 0x431   : > { %2320 = vmatpush.msra.mxu1 %v2139_v55  ;;  %2307 = vmatpush.msra.mxu0 %v2093_v34  ;;  %v2376_v55 = vld.sshfl [vmem:[#allocation1] sm:$0xff pattern:$0x75316420]  ;;  %v2381_v34 = vadd.f32 %v2377_v52, %v3485_v51 }
 0x432   : > { %2366 = vmatpush.msra.mxu3 %v2128_v13  ;;  %v2380_v59 = vadd.f32 %v2376_v55, %v3483_v20 }
 0x433   : > { %2321 = vmatpush.msra.mxu1 %v2137_v50  ;;  %2308 = vmatpush.msra.mxu0 %v2091_v60 }
 0x434   : > { %2367 = vmatpush.msra.mxu3 %v2126_v19 }
 0x435   : > { %2322 = vmatpush.msra.mxu1 %v2135_v31  ;;  %2309 = vmatpush.msra.mxu0 %v2089_v61 }
 0x436   : > { %2368 = vmatpush.msra.mxu3 %v2124_v4 }
 0x437   : > { %2323 = vmatpush.msra.mxu1 %v2133_v62  ;;  %2310 = vmatpush.msra.mxu0 %v2087_v1 }
 0x438   : > { %2369 = vmatpush.msra.mxu3 %v2122_v27 }
 0x439   : > { %2324 = vmatpush.msra.mxu1 %v2131_v9 }
 0x43a   : > { %2370 = vmatpush.msra.mxu3 %v2120_v18 }
 0x43b   : > { %2325 = vmatpush.msra.mxu1 %v2129_v56 }
 0x43d   : > { %2326 = vmatpush.msra.mxu1 %v2127_v38 }
 0x43f   : > { %2327 = vmatpush.msra.mxu1 %v2125_v16 }
 0x441   : > { %2328 = vmatpush.msra.mxu1 %v2123_v3 }
 0x443   : > { %2329 = vmatpush.msra.mxu1 %v2121_v21 }
 0x445   : > { %2330 = vmatpush.msra.mxu1 %v2119_v28 }
 0x467   : > { %v3529_v23 = vpop.f32.mrf.mxu2 }
 0x46f   : > { %v2011_v37 = vpop.f32.mrf.mxu2 }
 0x471   : > { %v1974_v15 = vpop.f32.mrf.mxu0 }
 0x472   : > { %v2010_v25 = vadd.f32 %v3529_v23, %v1974_v15 }
 0x475   : > { %v2022_v22 = vpop.f32.mrf.mxu3 }
 0x477   : > { %v2070_v17 = vpop.f32.mrf.mxu2 }
 0x479   : > { %v1976_v33 = vpop.f32.mrf.mxu0 }
 0x47d   : > { %v2024_v5 = vpop.f32.mrf.mxu3 }
 0x47f   : > { %v1987_v6 = vpop.f32.mrf.mxu1  ;;  %v2072_v36 = vpop.f32.mrf.mxu2 }
 0x480   : > { %v2023_v30 = vadd.f32 %v2022_v22, %v1987_v6 }
 0x481   : > { %v2041_v39 = vpop.f32.mrf.mxu0 }
 0x482   : > { %v2071_v40 = vadd.f32 %v2070_v17, %v2041_v39 }
 0x484   : > { %2231 = vmatmul.f32.vlgmr.msrb.gmra.mxu0 %v2071_v40  ;;  %2271 = vmatmul.f32.vlgmr.msrb.gmra.mxu2 %v2071_v40 }
 0x485   : > { %v2083_v41 = vpop.f32.mrf.mxu3 }
 0x487   : > { %v1989_v42 = vpop.f32.mrf.mxu1 }
 0x489   : > { %v2043_v43 = vpop.f32.mrf.mxu0 }
 0x48c   : > { %2311 = vmatmul.f32.vlgmr.msra.gmra.mxu0 %v2010_v25  ;;  %2351 = vmatmul.f32.vlgmr.msra.gmra.mxu2 %v2010_v25 }
 0x48d   : > { %v2085_v0 = vpop.f32.mrf.mxu3 }
 0x48f   : > { %v2054_v26 = vpop.f32.mrf.mxu1 }
 0x490   : > { %v2084_v45 = vadd.f32 %v2083_v41, %v2054_v26 }
 0x492   : > { %2251 = vmatmul.f32.vlgmr.msrb.gmra.mxu1 %v2084_v45  ;;  %2291 = vmatmul.f32.vlgmr.msrb.gmra.mxu3 %v2084_v45 }
 0x497   : > { %v2056_v46 = vpop.f32.mrf.mxu1 }
 0x49a   : > { %2331 = vmatmul.f32.vlgmr.msra.gmra.mxu1 %v2023_v30  ;;  %2371 = vmatmul.f32.vlgmr.msra.gmra.mxu3 %v2023_v30 }
 0x501   : > { %v2232_v57 = vpop.f32.mrf.mxu0 }
 0x507   : > { %v2272_v47 = vpop.f32.mrf.mxu2 }
 0x509   : > { %v2312_v29 = vpop.f32.mrf.mxu0 }
 0x50f   : > { %v2252_v2 = vpop.f32.mrf.mxu1  ;;  %v2352_v44 = vpop.f32.mrf.mxu2 }
 0x510   : > { %v2253_v49 = vadd.f32 %v2252_v2, %v2232_v57 }
 0x512   : > { %v2313_v54 = vadd.f32 %v2312_v29, %v2253_v49 }
 0x515   : > { %v2292_v48 = vpop.f32.mrf.mxu3 }
 0x516   : > { %v2293_v14 = vadd.f32 %v2292_v48, %v2272_v47 }
 0x517   : > { %v2332_v53 = vpop.f32.mrf.mxu1 }
 0x518   : > { %v2353_v35 = vadd.f32 %v2352_v44, %v2293_v14  ;;  %v2333_v8 = vadd.f32 %v2332_v53, %v2313_v54 }
 0x51a   : > { %v2382_v23 = vadd.f32 %v2380_v59, %v2333_v8 }
 0x51d   : > { %v2372_v58 = vpop.f32.mrf.mxu3 }
 0x51e   : > { %v2373_v50 = vadd.f32 %v2372_v58, %v2353_v35 }
 0x520   : > { %v2383_v60 = vadd.f32 %v2381_v34, %v2373_v50 }
 0x522   : > { %v2386_v24 = vrot.slane %v2383_v60, 4 }
 0x524   : > { %v2388_v31 = vsel %vm2387_vm10, %v2382_v23, %v2386_v24 }
 0x525   : > { %2390 = vst [vmem:[%s435_s17] sm:$0xff] %v2388_v31 }
 0x526   : > { %2873 = shalt.err (!%p2870_p8)
}
 0x527   : > { %2613 = dma.vmem_to_hbm [thread:$0]  (%p3033_p5), %s2406_s4, 128, %s2408_s15, %s2392_s19  }
 0x528 PF: > { %p2645_p9 = scmp.ge.s32.totalorder %s2920_s16, 2  ;;  %s2419_s29 = sand.u32 1, %s2908_s13  }
 0x529   : > { %s2420_s18 = scalar_lea.sflag [#allocation4], %s2419_s29 }
 0x52a   : > { %p2632_p10 = pnand %p2645_p9, %p3037_p6 }
 0x52c   : > { %p2633_p11 = pneg %p2632_p10 }
 0x52e   : > { %2903 = dma.done.wait (%p2633_p11), %s2420_s18, 128  }
 0x52f   : > { %2905 = vsyncadd (%p2633_p11), %s2420_s18, 4294967168  ;;  %s3594_s16 = sld [smem:[#allocation17_spill]]  ;;  %s3597_s13 = smov %s2912_s14 }
 0x530   : > { %s3595_s30 = sld [smem:[#allocation16_spill]] }
 0x531   : > { %s3596_s15 = sld [smem:[#allocation18_spill]] }
 0x535   : > { %p23_p12 = scmp.ge.s32.totalorder %s3594_s16, 4  }
 0x536   : > { %s3598_s14 = smov %s3595_s30 }
 0x537   :  { %25 = sbr.rel (!%p23_p12) target bundleno = 9 (0x9), region = 116 }
 0x53c   :  { %2426 = vsyncpa [#allocation3], 1 }
 0x53d   :  { %2428 = vsyncpa [#allocation3 + $0x1], 1 }
 0x53e   :  { %2429 = vsyncpa [#allocation6], 1 }
 0x53f   :  { %2430 = vsyncpa [#allocation9], 1 }
 0x540   :  { %2431 = vsyncpa [#allocation4], 1 }
 0x541   :  { %2433 = vsyncpa [#allocation4 + $0x1], 1 }

// kernel: tpu_custom_call.1
= control target key start
LH: loop header
LB: loop body
LE: loop exit
PB: predicated region body
PF: predicated region fallthrough
CT: control target
= control target key end

     0   :  { %s3566_s0 = inlined_call_operand.vmem [shape: f32[2,4,256], index: 0, kind: input, shape index: {}]   ;;  %s3567_s1 = inlined_call_operand.hbm [shape: f32[256,256], index: 1, kind: input, shape index: {}]   ;;  %s3568_s2 = inlined_call_operand.hbm [shape: f32[256,256], index: 2, kind: input, shape index: {}]   ;;  %s3569_s3 = inlined_call_operand.hbm [shape: f32[256,256], index: 3, kind: input, shape index: {}]   ;;  %s3570_s4 = inlined_call_operand.hbm [shape: f32[256,256], index: 4, kind: input, shape index: {}]   ;;  %s3571_s5 = inlined_call_operand.hbm [shape: f32[9,4,256], index: 5, kind: input, shape index: {}]   ;;  %s3572_s6 = inlined_call_operand.vmem [shape: bf16[9,4,4], index: 6, kind: input, shape index: {}]   ;;  %s3573_s7 = inlined_call_operand.vmem [shape: bf16[9,4,4], index: 7, kind: input, shape index: {}]   ;;  %s3574_s8 = inlined_call_operand.vmem [shape: bf16[8,8], index: 8, kind: input, shape index: {}]   ;;  %s3575_s9 = inlined_call_operand.vmem [shape: bf16[8,8], index: 9, kind: input, shape index: {}]   ;;  %s3576_s10 = inlined_call_operand.hbm [shape: f32[2,4,256], index: 10, kind: output, shape index: {}]  }
   0x1   :  { %3581 = sst [smem:[#allocation20_spill]] %s3568_s2 }
   0x2   :  { %3582 = sst [smem:[#allocation21_spill]] %s3570_s4 }
   0x3   :  { %15 = vsyncpa [#allocation3], 0 }
   0x4   :  { %16 = vsyncpa [#allocation6], 0 }
   0x5   :  { %17 = vsyncpa [#allocation9], 0 }
   0x6   :  { %18 = vsyncpa [#allocation4], 0 }
   0x7   :  { %20 = vsyncpa [#allocation4 + $0x1], 0  ;;  %s2995_s13 = smov 0   ;;  %s2997_s14 = smov 0  }
   0x8   :  { %s2999_s15 = smov 0   ;;  %s3001_s16 = smov 0  }
   0x9 LB: > { %3583 = sst [smem:[#allocation16_spill]] %s2916_s15  ;;  %s3016_s17 = sadd.s32 4294967295, %s2920_s16   ;;  %s2920_s16 = sphi %s3001_s16, %s3594_s16   ;;  %s2916_s15 = sphi %s2999_s15, %s3596_s15   ;;  %s2912_s14 = sphi %s2997_s14, %s3598_s14   ;;  %s2908_s13 = sphi %s2995_s13, %s3597_s13  }
   0xa   : > { %s2517_s18 = sadd.s32 4294967294, %s2920_s16   ;;  %s3020_s19 = sadd.s32 1, %s2920_s16  }
   0xb   : > { %3584 = sst [smem:[#allocation17_spill]] %s3020_s19  ;;  %s248_s20 = sadd.s32 1, %s2916_s15 }
   0xc   : > { %s245_s21 = ssub.s32 %s2920_s16, %s3020_s19  ;;  %p258_p0 = scmp.ne.s32.totalorder %s2916_s15, %s2912_s14 }
   0xd   : > { %p246_p1 = scmp.eq.s32.totalorder %s245_s21, 0  ;;  %p259_p2 = scmp.eq.s32.totalorder %s3016_s17, 1 }
   0xe   : > { %p264_p3 = scmp.ne.s32.totalorder %s2912_s14, %s2908_s13  ;;  %p265_p4 = scmp.eq.s32.totalorder %s2517_s18, 1 }
   0xf   : > { %s3031_s22 = scalar_select %p246_p1, %s2916_s15, %s248_s20  }
  0x10   : > { %p3033_p5 = por %p259_p2, %p258_p0  ;;  %p3037_p6 = por %p265_p4, %p264_p3 }
  0x11   : > { %3585 = sst [smem:[#allocation18_spill]] %s3031_s22  ;;  %p2518_p7 = scmp.ge.s32.totalorder %s2920_s16, 1 }
  0x12   : > { %s3587_s24 = scalar_select %p3037_p6, 1, 0 }
  0x13   : > { %p272_p8 = scmp.lt.s32.totalorder %s2920_s16, 3  ;;  %p2635_p9 = scmp.eq.s32.totalorder %s3016_s17, 0 }
  0x14   : > { %3588 = sst [smem:[#allocation19_spill]] %s3587_s24  ;;  %s2922_s18 = smov [#allocation5]  }
  0x15   : > { %p3044_p10 = pnand %p2518_p7, %p272_p8  ;;  %s3590_s2 = sld [smem:[#allocation20_spill]] }
  0x16   : > { %s3591_s4 = sld [smem:[#allocation21_spill]]  ;;  %s299_s20 = sshll.u32 %s2922_s18, 4  ;;  %s300_s20 = int_to_ptr.vmem [resolvable:$true] %s299_s20 }
  0x17   : > { %p2615_p11 = pneg %p3044_p10  ;;  %s2923_s21 = smov 256  }
  0x18   : > { %s2924_s26 = smov 16   ;;  %s2925_s27 = smov [#allocation8]  }
  0x19   : > { %p3058_p12 = pnand %p2635_p9, %p2615_p11  ;;  %s311_s15 = sshll.u32 %s3569_s3, 4  ;;  %s312_s15 = int_to_ptr.hbm [resolvable:$true] %s311_s15 }
  0x1a   : > { %s2926_s19 = smov [#allocation2]   ;;  %s339_s30 = sshll.u32 %s3571_s5, 4  ;;  %s340_s30 = int_to_ptr.hbm [resolvable:$true] %s339_s30 }
  0x1b   : > { %s297_s28 = sshll.u32 %s3590_s2, 4  ;;  %s327_s2 = sshll.u32 %s2925_s27, 4  ;;  %s298_s28 = int_to_ptr.hbm [resolvable:$true] %s297_s28  ;;  %s328_s2 = int_to_ptr.vmem [resolvable:$true] %s327_s2 }
  0x1c   : > { %s325_s11 = sshll.u32 %s3591_s4, 4  ;;  %s283_s4 = sshll.u32 %s3567_s1, 4  ;;  %s326_s11 = int_to_ptr.hbm [resolvable:$true] %s325_s11  ;;  %s284_s4 = int_to_ptr.hbm [resolvable:$true] %s283_s4 }
  0x1d   : > { %2621 = dma.hbm_to_vmem [thread:$0]  (!%p3058_p12), %s298_s28, 8192, %s300_s20, [#allocation6], %s2923_s21, %s2923_s21, %s2924_s26  }
  0x1e   : > { %2627 = dma.hbm_to_vmem [thread:$0]  (!%p3058_p12), %s326_s11, 8192, %s328_s2, [#allocation9], %s2923_s21, %s2923_s21, %s2924_s26  }
  0x1f   : > { %s285_s24 = sshll.u32 %s2926_s19, 4  ;;  %s2927_s28 = smov [#allocation7]   ;;  %s286_s24 = int_to_ptr.vmem [resolvable:$true] %s285_s24 }
  0x20   : > { %2618 = dma.hbm_to_vmem [thread:$0]  (!%p3058_p12), %s284_s4, 8192, %s286_s24, [#allocation3], %s2923_s21, %s2923_s21, %s2924_s26  }
  0x21   : > { %s313_s20 = sshll.u32 %s2927_s28, 4  ;;  %s2928_s2 = smov [#allocation10]   ;;  %s314_s20 = int_to_ptr.vmem [resolvable:$true] %s313_s20 }
  0x22   : > { %2624 = dma.hbm_to_vmem [thread:$0]  (!%p3058_p12), %s312_s15, 8192, %s314_s20, [#allocation6], %s2923_s21, %s2923_s21, %s2924_s26  }
  0x23   : > { %s341_s22 = sshll.u32 %s2928_s2, 4  ;;  %s2929_s11 = smov 128   ;;  %s342_s22 = int_to_ptr.vmem [resolvable:$true] %s341_s22 }
  0x24   : > { %s2930_s18 = smov 8   ;;  %377 = sbr.rel (%p3044_p10) target bundleno = 1320 (0x528), region = 60 }
  0x25   : > { %2630 = dma.hbm_to_vmem [thread:$0]  (!%p3058_p12), %s340_s30, 1152, %s342_s22, [#allocation9], %s2929_s11, %s2929_s11, %s2930_s18  }
  0x29   : > { %2891 = dma.done.wait (%p2635_p9), [#allocation3], 8192  }
  0x2a   : > { %2893 = vsyncadd (%p2635_p9), [#allocation3], 4294959104 }
  0x2b   : > { %2895 = dma.done.wait (%p2635_p9), [#allocation6], 16384  }
  0x2c   : > { %2897 = vsyncadd (%p2635_p9), [#allocation6], 4294950912 }
  0x2d   : > { %2899 = dma.done.wait (%p2635_p9), [#allocation9], 9344  }
  0x2e   : > { %2901 = vsyncadd (%p2635_p9), [#allocation9], 4294957952  ;;  %p436_p13 = scmp.lt.s32.totalorder %s3016_s17, 1  ;;  %v3104_v2 = vld [vmem:[#allocation10] sm:$0xff]  ;;  %s2931_s12 = smov 17   ;;  %v3116_v8 = vld [vmem:[#allocation10 + $0x8] sm:$0xff] }
  0x2f   : > { %s2932_s21 = smov 16   ;;  %s2933_s26 = smov 15   ;;  %v3129_v14 = vld [vmem:[#allocation10 + $0x10] sm:$0xff]  ;;  %v3141_v20 = vld [vmem:[#allocation10 + $0x18] sm:$0xff]  ;;  %v3159_v29 = vld [vmem:[#allocation10 + $0x28] sm:$0xff]  ;;  %vm500_vm0 = vcmask 130048  }
  0x30   : > { %s437_s4 = scalar_select %p436_p13, %s3016_s17, 1  ;;  %v3171_v35 = vld [vmem:[#allocation10 + $0x30] sm:$0xff]  ;;  %vm473_vm1 = vcmask 138240   ;;  %vm519_vm2 = vcmask 1041408   ;;  %v3191_v58 = vld [vmem:[#allocation10 + $0x38] sm:$0xff]  ;;  %vm515_vm3 = vcmask 31744  }
  0x31   : > { %s2934_s28 = smov 1   ;;  %s2935_s20 = smov 127   ;;  %vm599_vm4 = vcmask 121856   ;;  %vm663_vm5 = vcmask 7168   ;;  %vm766_vm6 = vcmask 1039360   ;;  %vm830_vm7 = vcmask 924672  }
  0x32   : > { %s2591_s15 = sshll.u32 %s437_s4, 3  ;;  %s2936_s27 = smov 113   ;;  %vm894_vm8 = vcmask 916480   ;;  %vm958_vm9 = vcmask 908288   ;;  %vm2387_vm10 = vcmask 1043456  }
  0x33   : > { %s440_s25 = scalar_lea.vmem %s3566_s0, %s2591_s15  ;;  %s2937_s29 = smov 112  }
  0x34   : > { %v3100_v0 = vld [vmem:[%s440_s25] sm:$0xff]  ;;  %s2938_s18 = smov 111   ;;  %s2592_s30 = sshll.u32 %s3016_s17, 3 }
  0x35   : > { %461 = vst [vmem:[#allocation1] ss:$2 sm:$0xff] %v3100_v0  ;;  %s2403_s11 = scalar_lea.hbm %s3576_s10, %s2592_s30 }
  0x36   : > { %s2407_s15 = sshll.u32 %s2403_s11, 4  ;;  %s2408_s15 = int_to_ptr.hbm [resolvable:$true] %s2407_s15 }
  0x37   : > { %s2860_s24 = sshra.s32 %s2408_s15, 4  ;;  %s2861_s24 = int_to_ptr.hbm [resolvable:$true] %s2860_s24 }
  0x38   : > { %s2862_s25 = scalar_lea.hbm %s2861_s24, 8  ;;  %p2867_p3 = scmp.lt.s32.totalorder %s2861_s24, %s3576_s10 }
  0x39   : > { %p2863_p0 = scmp.ne.s32.totalorder %s2861_s24, %s2862_s25 }
  0x3b   : > { %p2864_p1 = pnand %p2863_p0, %p3033_p5 }
  0x3c   : > { %v462_v1 = vld.sshfl [vmem:[#allocation1 + $0x8] sm:$0xff pattern:$0x75316420] }
  0x3d   : > { %466 = vst [vmem:[#allocation1] ss:$2 sm:$0xff] %v3100_v0  ;;  %p2865_p2 = pneg %p2864_p1 }
  0x44   : > { %v467_v3 = vld.sshfl [vmem:[#allocation1] sm:$0xff pattern:$0x75316420]  ;;  %v468_v4 = vld.sshfl [vmem:[#allocation1 + $0x8] sm:$0xff pattern:$0x75316420] }
  0x45   : > { %479 = vst [vmem:[#allocation1] ss:$2 sm:$0xff] %v3104_v2  ;;  %469 = vrot.lane.b32.xlu2 %v467_v3, %s2931_s12 }
  0x4c   : > { %v3108_v5 = vld.sshfl [vmem:[#allocation1] sm:$0xff pattern:$0x75316420]  ;;  %v3110_v6 = vld.sshfl [vmem:[#allocation1 + $0x8] sm:$0xff pattern:$0x75316420] }
  0x4d   : > { %488 = vst [vmem:[#allocation1] ss:$2 sm:$0xff] %v3100_v0  ;;  %471 = vrot.lane.b32.xlu2 %v468_v4, %s2931_s12  ;;  %v451_v4 = vld [vmem:[%s3572_s6] sm:$0x3] }
  0x54   : > { %v489_v7 = vld.sshfl [vmem:[#allocation1 + $0x8] sm:$0xff pattern:$0x75316420] }
  0x55   : > { %490 = vrot.lane.b32.xlu0 %v489_v7, %s2932_s21  ;;  %493 = vst [vmem:[#allocation1] ss:$2 sm:$0xff] %v3100_v0 }
  0x5c   : > { %v495_v9 = vld.sshfl [vmem:[#allocation1 + $0x8] sm:$0xff pattern:$0x75316420]  ;;  %v494_v10 = vld.sshfl [vmem:[#allocation1] sm:$0xff pattern:$0x75316420] }
  0x5d   : > { %498 = vrot.lane.b32.xlu1 %v495_v9, %s2932_s21  ;;  %496 = vrot.lane.b32.xlu0 %v494_v10, %s2932_s21  ;;  %506 = vst [vmem:[#allocation1] ss:$2 sm:$0xff] %v3116_v8 }
  0x64   : > { %v3121_v11 = vld.sshfl [vmem:[#allocation1] sm:$0xff pattern:$0x75316420]  ;;  %v3123_v12 = vld.sshfl [vmem:[#allocation1 + $0x8] sm:$0xff pattern:$0x75316420] }
  0x65   : > { %463 = vrot.lane.b32.xlu1 %v462_v1, %s2931_s12  ;;  %587 = vst [vmem:[#allocation1] ss:$2 sm:$0xff] %v3100_v0  ;;  %v452_v1 = vld [vmem:[%s3572_s6 + $0x2] sm:$0x3] }
  0x6c   : > { %v588_v13 = vld.sshfl [vmem:[#allocation1 + $0x8] sm:$0xff pattern:$0x75316420] }
  0x6d   : > { %589 = vrot.lane.b32.xlu0 %v588_v13, %s2933_s26  ;;  %592 = vst [vmem:[#allocation1] ss:$2 sm:$0xff] %v3100_v0 }
  0x74   : > { %v593_v15 = vld.sshfl [vmem:[#allocation1] sm:$0xff pattern:$0x75316420]  ;;  %v594_v16 = vld.sshfl [vmem:[#allocation1 + $0x8] sm:$0xff pattern:$0x75316420] }
  0x75   : > { %595 = vrot.lane.b32.xlu1 %v593_v15, %s2933_s26  ;;  %605 = vst [vmem:[#allocation1] ss:$2 sm:$0xff] %v3129_v14  ;;  %597 = vrot.lane.b32.xlu2 %v594_v16, %s2933_s26 }
  0x7c   : > { %v3134_v17 = vld.sshfl [vmem:[#allocation1] sm:$0xff pattern:$0x75316420]  ;;  %v3136_v18 = vld.sshfl [vmem:[#allocation1 + $0x8] sm:$0xff pattern:$0x75316420] }
  0x7d   : > { %651 = vst [vmem:[#allocation1] ss:$2 sm:$0xff] %v3100_v0 }
  0x84   : > { %v652_v19 = vld.sshfl [vmem:[#allocation1 + $0x8] sm:$0xff pattern:$0x75316420] }
  0x85   : > { %653 = vrot.lane.b32.xlu0 %v652_v19, %s2934_s28  ;;  %656 = vst [vmem:[#allocation1] ss:$2 sm:$0xff] %v3100_v0 }
  0x8c   : > { %v657_v21 = vld.sshfl [vmem:[#allocation1] sm:$0xff pattern:$0x75316420]  ;;  %v658_v22 = vld.sshfl [vmem:[#allocation1 + $0x8] sm:$0xff pattern:$0x75316420] }
  0x8d   : > { %659 = vrot.lane.b32.xlu1 %v657_v21, %s2934_s28  ;;  %669 = vst [vmem:[#allocation1] ss:$2 sm:$0xff] %v3141_v20  ;;  %661 = vrot.lane.b32.xlu2 %v658_v22, %s2934_s28 }
  0x94   : > { %v3146_v23 = vld.sshfl [vmem:[#allocation1] sm:$0xff pattern:$0x75316420]  ;;  %v3148_v24 = vld.sshfl [vmem:[#allocation1 + $0x8] sm:$0xff pattern:$0x75316420] }
  0x95   : > { %715 = vst [vmem:[#allocation1] ss:$2 sm:$0xff] %v3100_v0 }
  0x9c   : > { %v3151_v25 = vld.sshfl [vmem:[#allocation1] sm:$0xff pattern:$0x75316420]  ;;  %v3153_v26 = vld.sshfl [vmem:[#allocation1 + $0x8] sm:$0xff pattern:$0x75316420] }
  0x9d   : > { %759 = vst [vmem:[#allocation1] ss:$2 sm:$0xff] %v3100_v0 }
  0x9f   : > { %v470_v40 = vpop.permute.xlu2 %469 }
  0xa4   : > { %v761_v27 = vld.sshfl [vmem:[#allocation1 + $0x8] sm:$0xff pattern:$0x75316420]  ;;  %v760_v28 = vld.sshfl [vmem:[#allocation1] sm:$0xff pattern:$0x75316420] }
  0xa5   : > { %764 = vrot.lane.b32.xlu1 %v761_v27, %s2935_s20  ;;  %762 = vrot.lane.b32.xlu0 %v760_v28, %s2935_s20  ;;  %770 = vst [vmem:[#allocation1] ss:$2 sm:$0xff] %v3100_v0 }
  0xa7   : > { %v472_v45 = vpop.permute.xlu2 %471 }
  0xa8   : > { %v474_v48 = vsel %vm473_vm1, %v470_v40, %v472_v45 }
  0xa9   : > { %v485_v52 = vmul.f32 %v3110_v6, %v474_v48 }
  0xab   : > { %v487_v57 = vpack.c.bf16 %v485_v52, %v485_v52 }
  0xac   : > { %v771_v30 = vld.sshfl [vmem:[#allocation1] sm:$0xff pattern:$0x75316420] }
  0xad   : > { %777 = vst [vmem:[#allocation1] ss:$2 sm:$0xff] %v3159_v29  ;;  %772 = vrot.lane.b32.xlu2 %v771_v30, %s2935_s20  ;;  %v559_v62 = vsel %vm519_vm2, %v487_v57, 0  ;;  %v720_v30 = vpack.c.bf16 %v3151_v25, %v3151_v25 }
  0xae   : > { %581 = vmatpush.bf16.msra.mxu3 %v559_v62 }
  0xb1   : > { %2537 = vmatmul.msk.bf16.vlgmr.msra.gmra.mxu3 %vm515_vm3, %v451_v4 }
  0xb4   : > { %v3163_v31 = vld.sshfl [vmem:[#allocation1] sm:$0xff pattern:$0x75316420]  ;;  %v3165_v32 = vld.sshfl [vmem:[#allocation1 + $0x8] sm:$0xff pattern:$0x75316420] }
  0xb5   : > { %823 = vst [vmem:[#allocation1] ss:$2 sm:$0xff] %v3100_v0 }
  0xbc   : > { %v825_v33 = vld.sshfl [vmem:[#allocation1 + $0x8] sm:$0xff pattern:$0x75316420]  ;;  %v824_v34 = vld.sshfl [vmem:[#allocation1] sm:$0xff pattern:$0x75316420] }
  0xbd   : > { %828 = vrot.lane.b32.xlu1 %v825_v33, %s2936_s27  ;;  %826 = vrot.lane.b32.xlu0 %v824_v34, %s2936_s27  ;;  %834 = vst [vmem:[#allocation1] ss:$2 sm:$0xff] %v3100_v0  ;;  %v721_v33 = vpack.c.bf16 %v3153_v26, %v3153_v26 }
  0xc4   : > { %v835_v36 = vld.sshfl [vmem:[#allocation1] sm:$0xff pattern:$0x75316420] }
  0xc5   : > { %836 = vrot.lane.b32.xlu2 %v835_v36, %s2936_s27  ;;  %841 = vst [vmem:[#allocation1] ss:$2 sm:$0xff] %v3171_v35 }
  0xc7   : > { %v491_v39 = vpop.permute.xlu0 %490 }
  0xcc   : > { %v3175_v37 = vld.sshfl [vmem:[#allocation1] sm:$0xff pattern:$0x75316420]  ;;  %v3177_v38 = vld.sshfl [vmem:[#allocation1 + $0x8] sm:$0xff pattern:$0x75316420] }
  0xcd   : > { %887 = vst [vmem:[#allocation1] ss:$2 sm:$0xff] %v3100_v0 }
  0xcf   : > { %v499_v41 = vpop.permute.xlu1 %498  ;;  %v497_v44 = vpop.permute.xlu0 %496 }
  0xd0   : > { %v501_v46 = vsel %vm500_vm0, %v497_v44, %v499_v41  ;;  %v504_v47 = vsel %vm500_vm0, %v491_v39, %v497_v44  ;;  %v598_v7 = vpop.permute.xlu2 %597  ;;  %v726_v39 = vsel %vm519_vm2, %v720_v30, 0  ;;  %v455_v41 = vld [vmem:[%s3572_s6 + $0x8] sm:$0x3] }
  0xd1   : > { %v511_v50 = vmul.f32 %v3121_v11, %v504_v47  ;;  %v512_v51 = vmul.f32 %v3123_v12, %v501_v46 }
  0xd3   : > { %v513_v54 = vpack.c.bf16 %v511_v50, %v511_v50  ;;  %v514_v55 = vpack.c.bf16 %v512_v51, %v512_v51 }
  0xd4   : > { %v889_v42 = vld.sshfl [vmem:[#allocation1 + $0x8] sm:$0xff pattern:$0x75316420]  ;;  %v888_v43 = vld.sshfl [vmem:[#allocation1] sm:$0xff pattern:$0x75316420] }
  0xd5   : > { %892 = vrot.lane.b32.xlu1 %v889_v42, %s2937_s29  ;;  %890 = vrot.lane.b32.xlu0 %v888_v43, %s2937_s29  ;;  %898 = vst [vmem:[#allocation1] ss:$2 sm:$0xff] %v3100_v0  ;;  %v521_v59 = vsel %vm519_vm2, %v513_v54, 0  ;;  %v524_v60 = vsel %vm519_vm2, %v514_v55, 0 }
  0xd6   : > { %533 = vmatpush.bf16.msra.mxu0 %v521_v59  ;;  %546 = vmatpush.bf16.msra.mxu1 %v524_v60  ;;  %v456_v60 = vld [vmem:[%s3572_s6 + $0xa] sm:$0x3] }
  0xd7   : > { %v464_v49 = vpop.permute.xlu1 %463 }
  0xd8   : > { %v477_v53 = vsel %vm473_vm1, %v464_v49, %v470_v40  ;;  %v729_v40 = vsel %vm519_vm2, %v721_v33, 0  ;;  %v454_v49 = vld [vmem:[%s3572_s6 + $0x6] sm:$0x3] }
  0xd9   : > { %v484_v56 = vmul.f32 %v3108_v5, %v477_v53  ;;  %2535 = vmatmul.msk.bf16.vlgmr.msra.gmra.mxu1 %vm515_vm3, %v452_v1  ;;  %2534 = vmatmul.msk.bf16.vlgmr.msra.gmra.mxu0 %vm515_vm3, %v452_v1 }
  0xdb   : > { %v486_v61 = vpack.c.bf16 %v484_v56, %v484_v56 }
  0xdc   : > { %v899_v63 = vld.sshfl [vmem:[#allocation1] sm:$0xff pattern:$0x75316420] }
  0xdd   : > { %900 = vrot.lane.b32.xlu2 %v899_v63, %s2937_s29  ;;  %905 = vst [vmem:[#allocation1] ss:$2 sm:$0xff] %v3191_v58  ;;  %v556_v3 = vsel %vm519_vm2, %v486_v61, 0 }
  0xde   : > { %568 = vmatpush.bf16.msra.mxu2 %v556_v3 }
  0xdf   : > { %v590_v9 = vpop.permute.xlu0 %589 }
  0xe1   : > { %2536 = vmatmul.msk.bf16.vlgmr.msra.gmra.mxu2 %vm515_vm3, %v451_v4 }
  0xe4   : > { %v3209_v5 = vld.sshfl [vmem:[#allocation1] sm:$0xff pattern:$0x75316420]  ;;  %v3211_v6 = vld.sshfl [vmem:[#allocation1 + $0x8] sm:$0xff pattern:$0x75316420] }
  0xe5   : > { %951 = vst [vmem:[#allocation1] ss:$2 sm:$0xff] %v3100_v0 }
  0xe7   : > { %v596_v10 = vpop.permute.xlu1 %595  ;;  %v662_v36 = vpop.permute.xlu2 %661 }
  0xe8   : > { %v600_v11 = vsel %vm599_vm4, %v596_v10, %v598_v7  ;;  %v603_v12 = vsel %vm599_vm4, %v590_v9, %v596_v10 }
  0xe9   : > { %v610_v13 = vmul.f32 %v3134_v17, %v603_v12  ;;  %v611_v15 = vmul.f32 %v3136_v18, %v600_v11  ;;  %v453_v17 = vld [vmem:[%s3572_s6 + $0x4] sm:$0x3]  ;;  %v457_v11 = vld [vmem:[%s3572_s6 + $0xc] sm:$0x3] }
  0xea   : > { %v3271_v12 = vld [vmem:[#allocation10 + $0x40] sm:$0xff] }
  0xeb   : > { %v612_v16 = vpack.c.bf16 %v610_v13, %v610_v13  ;;  %v613_v19 = vpack.c.bf16 %v611_v15, %v611_v15 }
  0xec   : > { %v953_v21 = vld.sshfl [vmem:[#allocation1 + $0x8] sm:$0xff pattern:$0x75316420]  ;;  %v952_v22 = vld.sshfl [vmem:[#allocation1] sm:$0xff pattern:$0x75316420] }
  0xed   : > { %956 = vrot.lane.b32.xlu1 %v953_v21, %s2938_s18  ;;  %954 = vrot.lane.b32.xlu0 %v952_v22, %s2938_s18  ;;  %962 = vst [vmem:[#allocation1] ss:$2 sm:$0xff] %v3100_v0  ;;  %v618_v27 = vsel %vm519_vm2, %v612_v16, 0  ;;  %v621_v28 = vsel %vm519_vm2, %v613_v19, 0 }
  0xee   : > { %630 = vmatpush.bf16.msrb.mxu0 %v618_v27  ;;  %643 = vmatpush.bf16.msrb.mxu1 %v621_v28 }
  0xf1   : > { %2538 = vmatmul.msk.bf16.vlgmr.msrb.gmra.mxu0 %vm515_vm3, %v453_v17  ;;  %2539 = vmatmul.msk.bf16.vlgmr.msrb.gmra.mxu1 %vm515_vm3, %v453_v17 }
  0xf2   : > { %738 = vmatpush.bf16.msra.mxu0 %v726_v39  ;;  %751 = vmatpush.bf16.msra.mxu1 %v729_v40 }
  0xf4   : > { %v963_v18 = vld.sshfl [vmem:[#allocation1] sm:$0xff pattern:$0x75316420] }
  0xf5   : > { %964 = vrot.lane.b32.xlu2 %v963_v18, %s2938_s18  ;;  %969 = vst [vmem:[#allocation1] ss:$2 sm:$0xff] %v3271_v12 }
  0xf7   : > { %v654_v34 = vpop.permute.xlu0 %653 }
  0xff   : > { %v660_v42 = vpop.permute.xlu1 %659 }
 0x100   : > { %v664_v43 = vsel %vm663_vm5, %v660_v42, %v662_v36  ;;  %v667_v25 = vsel %vm663_vm5, %v654_v34, %v660_v42 }
 0x101   : > { %v674_v26 = vmul.f32 %v3146_v23, %v667_v25  ;;  %v675_v44 = vmul.f32 %v3148_v24, %v664_v43  ;;  %2542 = vmatmul.msk.bf16.vlgmr.msra.gmra.mxu0 %vm515_vm3, %v455_v41  ;;  %2543 = vmatmul.msk.bf16.vlgmr.msra.gmra.mxu1 %vm515_vm3, %v455_v41 }
 0x103   : > { %v676_v45 = vpack.c.bf16 %v674_v26, %v674_v26  ;;  %v677_v46 = vpack.c.bf16 %v675_v44, %v675_v44 }
 0x105   : > { %v682_v47 = vsel %vm519_vm2, %v676_v45, 0  ;;  %v685_v48 = vsel %vm519_vm2, %v677_v46, 0 }
 0x106   : > { %694 = vmatpush.bf16.msrb.mxu2 %v682_v47  ;;  %707 = vmatpush.bf16.msrb.mxu3 %v685_v48 }
 0x107   : > { %v773_v23 = vpop.permute.xlu2 %772 }
 0x109   : > { %2540 = vmatmul.msk.bf16.vlgmr.msrb.gmra.mxu2 %vm515_vm3, %v454_v49  ;;  %2541 = vmatmul.msk.bf16.vlgmr.msrb.gmra.mxu3 %vm515_vm3, %v454_v49 }
 0x117   : > { %v765_v24 = vpop.permute.xlu1 %764  ;;  %v763_v50 = vpop.permute.xlu0 %762 }
 0x118   : > { %v767_v51 = vsel %vm766_vm6, %v763_v50, %v765_v24  ;;  %v775_v52 = vsel %vm766_vm6, %v765_v24, %v773_v23  ;;  %v459_v23 = vld [vmem:[%s3572_s6 + $0x10] sm:$0x3] }
 0x119   : > { %v782_v53 = vmul.f32 %v3163_v31, %v767_v51  ;;  %v783_v54 = vmul.f32 %v3165_v32, %v775_v52 }
 0x11b   : > { %v784_v55 = vpack.c.bf16 %v782_v53, %v782_v53  ;;  %v785_v56 = vpack.c.bf16 %v783_v54, %v783_v54 }
 0x11d   : > { %v790_v57 = vsel %vm519_vm2, %v784_v55, 0  ;;  %v793_v59 = vsel %vm519_vm2, %v785_v56, 0 }
 0x11e   : > { %802 = vmatpush.bf16.msra.mxu2 %v790_v57  ;;  %815 = vmatpush.bf16.msra.mxu3 %v793_v59 }
 0x11f   : > { %v837_v31 = vpop.permute.xlu2 %836 }
 0x121   : > { %2544 = vmatmul.msk.bf16.vlgmr.msra.gmra.mxu2 %vm515_vm3, %v456_v60  ;;  %2545 = vmatmul.msk.bf16.vlgmr.msra.gmra.mxu3 %vm515_vm3, %v456_v60 }
 0x12f   : > { %v829_v61 = vpop.permute.xlu1 %828  ;;  %v827_v32 = vpop.permute.xlu0 %826 }
 0x130   : > { %v831_v62 = vsel %vm830_vm7, %v827_v32, %v829_v61  ;;  %v839_v63 = vsel %vm830_vm7, %v829_v61, %v837_v31 }
 0x131   : > { %v846_v1 = vmul.f32 %v3175_v37, %v831_v62  ;;  %v847_v3 = vmul.f32 %v3177_v38, %v839_v63  ;;  %v970_v37 = vld.sshfl [vmem:[#allocation1] sm:$0xff pattern:$0x75316420]  ;;  %v971_v38 = vld.sshfl [vmem:[#allocation1 + $0x8] sm:$0xff pattern:$0x75316420] }
 0x132   : > { %1037 = vst [vmem:[#allocation1] ss:$2 sm:$0xff] %v3104_v2  ;;  %v458_v2 = vld [vmem:[%s3572_s6 + $0xe] sm:$0x3] }
 0x133   : > { %v848_v4 = vpack.c.bf16 %v846_v1, %v846_v1  ;;  %v849_v7 = vpack.c.bf16 %v847_v3, %v847_v3 }
 0x134   : > { %v583_v26 = vpop.f32.mrf.mxu3 }
 0x135   : > { %v854_v9 = vsel %vm519_vm2, %v848_v4, 0  ;;  %v857_v10 = vsel %vm519_vm2, %v849_v7, 0 }
 0x136   : > { %866 = vmatpush.bf16.msrb.mxu0 %v854_v9  ;;  %879 = vmatpush.bf16.msrb.mxu1 %v857_v10 }
 0x137   : > { %v901_v13 = vpop.permute.xlu2 %900 }
 0x139   : > { %2546 = vmatmul.msk.bf16.vlgmr.msrb.gmra.mxu0 %vm515_vm3, %v457_v11  ;;  %2547 = vmatmul.msk.bf16.vlgmr.msrb.gmra.mxu1 %vm515_vm3, %v457_v11 }
 0x13c   : > { %v585_v50 = vpop.f32.mrf.mxu3 }
 0x147   : > { %v893_v15 = vpop.permute.xlu1 %892  ;;  %v891_v16 = vpop.permute.xlu0 %890 }
 0x148   : > { %v895_v19 = vsel %vm894_vm8, %v891_v16, %v893_v15  ;;  %v903_v21 = vsel %vm894_vm8, %v893_v15, %v901_v13 }
 0x149   : > { %v910_v22 = vmul.f32 %v3209_v5, %v895_v19  ;;  %v911_v27 = vmul.f32 %v3211_v6, %v903_v21 }
 0x14b   : > { %v912_v28 = vpack.c.bf16 %v910_v22, %v910_v22  ;;  %v913_v17 = vpack.c.bf16 %v911_v27, %v911_v27 }
 0x14d   : > { %v918_v18 = vsel %vm519_vm2, %v912_v28, 0  ;;  %v921_v30 = vsel %vm519_vm2, %v913_v17, 0 }
 0x14e   : > { %930 = vmatpush.bf16.msrb.mxu2 %v918_v18  ;;  %943 = vmatpush.bf16.msrb.mxu3 %v921_v30 }
 0x14f   : > { %v965_v6 = vpop.permute.xlu2 %964 }
 0x151   : > { %2548 = vmatmul.msk.bf16.vlgmr.msrb.gmra.mxu2 %vm515_vm3, %v458_v2  ;;  %2549 = vmatmul.msk.bf16.vlgmr.msrb.gmra.mxu3 %vm515_vm3, %v458_v2 }
 0x156   : > { %v535_v33 = vpop.f32.mrf.mxu0  ;;  %v548_v5 = vpop.f32.mrf.mxu1 }
 0x157   : > { %v584_v46 = vadd.f32 %v583_v26, %v548_v5  ;;  %v1039_v26 = vld.sshfl [vmem:[#allocation1 + $0x8] sm:$0xff pattern:$0x75316420] }
 0x15e   : > { %v537_v44 = vpop.f32.mrf.mxu0  ;;  %v550_v45 = vpop.f32.mrf.mxu1 }
 0x15f   : > { %v957_v34 = vpop.permute.xlu1 %956  ;;  %v955_v36 = vpop.permute.xlu0 %954 }
 0x160   : > { %v959_v39 = vsel %vm958_vm9, %v955_v36, %v957_v34  ;;  %v967_v40 = vsel %vm958_vm9, %v957_v34, %v965_v6 }
 0x161   : > { %v974_v41 = vmul.f32 %v970_v37, %v959_v39  ;;  %v975_v42 = vmul.f32 %v971_v38, %v967_v40 }
 0x163   : > { %v976_v43 = vpack.c.bf16 %v974_v41, %v974_v41  ;;  %v977_v25 = vpack.c.bf16 %v975_v42, %v975_v42 }
 0x164   : > { %v570_v49 = vpop.f32.mrf.mxu2 }
 0x165   : > { %v982_v47 = vsel %vm519_vm2, %v976_v43, 0  ;;  %v985_v48 = vsel %vm519_vm2, %v977_v25, 0  ;;  %v571_v24 = vadd.f32 %v570_v49, %v535_v33  ;;  %v1038_v25 = vld.sshfl [vmem:[#allocation1] sm:$0xff pattern:$0x75316420] }
 0x166   : > { %994 = vmatpush.bf16.msra.mxu0 %v982_v47  ;;  %1007 = vmatpush.bf16.msra.mxu1 %v985_v48  ;;  %1055 = vst [vmem:[#allocation1] ss:$2 sm:$0xff] %v3116_v8 }
 0x169   : > { %2550 = vmatmul.msk.bf16.vlgmr.msra.gmra.mxu0 %vm515_vm3, %v459_v23  ;;  %2551 = vmatmul.msk.bf16.vlgmr.msra.gmra.mxu1 %vm515_vm3, %v459_v23 }
 0x16c   : > { %v572_v51 = vpop.f32.mrf.mxu2 }
 0x16d   : > { %v1056_v44 = vld.sshfl [vmem:[#allocation1] sm:$0xff pattern:$0x75316420]  ;;  %v1057_v45 = vld.sshfl [vmem:[#allocation1 + $0x8] sm:$0xff pattern:$0x75316420] }
 0x16e   : > { %v632_v52 = vpop.f32.mrf.mxu0  ;;  %v645_v53 = vpop.f32.mrf.mxu1  ;;  %1143 = vst [vmem:[#allocation1] ss:$2 sm:$0xff] %v3129_v14 }
 0x16f   : > { %v649_v54 = vadd.f32 %v632_v52, %v571_v24  ;;  %v650_v55 = vadd.f32 %v645_v53, %v584_v46 }
 0x175   : > { %v1144_v46 = vld.sshfl [vmem:[#allocation1] sm:$0xff pattern:$0x75316420]  ;;  %v1145_v47 = vld.sshfl [vmem:[#allocation1 + $0x8] sm:$0xff pattern:$0x75316420] }
 0x176   : > { %v634_v56 = vpop.f32.mrf.mxu0  ;;  %v647_v57 = vpop.f32.mrf.mxu1  ;;  %1198 = vst [vmem:[#allocation1] ss:$2 sm:$0xff] %v3141_v20 }
 0x17d   : > { %v3336_v48 = vld.sshfl [vmem:[#allocation1] sm:$0xff pattern:$0x75316420]  ;;  %v3338_v49 = vld.sshfl [vmem:[#allocation1 + $0x8] sm:$0xff pattern:$0x75316420] }
 0x17e   : > { %v740_v59 = vpop.f32.mrf.mxu0  ;;  %v753_v60 = vpop.f32.mrf.mxu1  ;;  %1292 = vst [vmem:[#allocation1] ss:$2 sm:$0xff] %v3159_v29 }
 0x185   : > { %v3341_v23 = vld.sshfl [vmem:[#allocation1] sm:$0xff pattern:$0x75316420]  ;;  %v3343_v24 = vld.sshfl [vmem:[#allocation1 + $0x8] sm:$0xff pattern:$0x75316420] }
 0x186   : > { %v742_v31 = vpop.f32.mrf.mxu0  ;;  %v755_v61 = vpop.f32.mrf.mxu1  ;;  %1347 = vst [vmem:[#allocation1] ss:$2 sm:$0xff] %v3171_v35 }
 0x18c   : > { %v696_v32 = vpop.f32.mrf.mxu2  ;;  %v709_v62 = vpop.f32.mrf.mxu3 }
 0x18d   : > { %v713_v63 = vadd.f32 %v696_v32, %v649_v54  ;;  %v714_v1 = vadd.f32 %v709_v62, %v650_v55  ;;  %v3346_v8 = vld.sshfl [vmem:[#allocation1] sm:$0xff pattern:$0x75316420]  ;;  %v3348_v50 = vld.sshfl [vmem:[#allocation1 + $0x8] sm:$0xff pattern:$0x75316420] }
 0x18e   : > { %1402 = vst [vmem:[#allocation1] ss:$2 sm:$0xff] %v3191_v58  ;;  %v1018_v32 = vld [vmem:[%s3573_s7 + $0x2] sm:$0x3] }
 0x18f   : > { %v757_v27 = vadd.f32 %v740_v59, %v713_v63  ;;  %v758_v28 = vadd.f32 %v753_v60, %v714_v1 }
 0x194   : > { %v698_v3 = vpop.f32.mrf.mxu2  ;;  %v711_v4 = vpop.f32.mrf.mxu3 }
 0x195   : > { %v3351_v20 = vld.sshfl [vmem:[#allocation1] sm:$0xff pattern:$0x75316420]  ;;  %v3353_v51 = vld.sshfl [vmem:[#allocation1 + $0x8] sm:$0xff pattern:$0x75316420] }
 0x196   : > { %1457 = vst [vmem:[#allocation1] ss:$2 sm:$0xff] %v3271_v12 }
 0x19d   : > { %v3358_v56 = vld.sshfl [vmem:[#allocation1] sm:$0xff pattern:$0x75316420]  ;;  %v3360_v57 = vld.sshfl [vmem:[#allocation1 + $0x8] sm:$0xff pattern:$0x75316420] }
 0x19e   : > { %1567 = vst [vmem:[#allocation1] ss:$2 sm:$0xff] %v3100_v0 }
 0x1a4   : > { %v804_v7 = vpop.f32.mrf.mxu2  ;;  %v817_v9 = vpop.f32.mrf.mxu3 }
 0x1a5   : > { %v821_v17 = vadd.f32 %v804_v7, %v757_v27  ;;  %v822_v18 = vadd.f32 %v817_v9, %v758_v28 }
 0x1ac   : > { %v806_v10 = vpop.f32.mrf.mxu2  ;;  %v819_v11 = vpop.f32.mrf.mxu3 }
 0x1b6   : > { %v868_v37 = vpop.f32.mrf.mxu0  ;;  %v881_v38 = vpop.f32.mrf.mxu1 }
 0x1b7   : > { %v885_v30 = vadd.f32 %v868_v37, %v821_v17  ;;  %v886_v2 = vadd.f32 %v881_v38, %v822_v18 }
 0x1be   : > { %v870_v13 = vpop.f32.mrf.mxu0  ;;  %v883_v15 = vpop.f32.mrf.mxu1 }
 0x1d4   : > { %v932_v16 = vpop.f32.mrf.mxu2  ;;  %v945_v19 = vpop.f32.mrf.mxu3 }
 0x1d5   : > { %v949_v33 = vadd.f32 %v932_v16, %v885_v30  ;;  %v950_v5 = vadd.f32 %v945_v19, %v886_v2 }
 0x1dc   : > { %v934_v21 = vpop.f32.mrf.mxu2  ;;  %v947_v22 = vpop.f32.mrf.mxu3 }
 0x1e6   : > { %v996_v6 = vpop.f32.mrf.mxu0  ;;  %v1009_v34 = vpop.f32.mrf.mxu1 }
 0x1e7   : > { %v1013_v36 = vadd.f32 %v996_v6, %v949_v33  ;;  %v1014_v39 = vadd.f32 %v1009_v34, %v950_v5  ;;  %v1017_v33 = vld [vmem:[%s3573_s7] sm:$0x3] }
 0x1e9   : > { %v3297_v40 = vmax.f32 %v1013_v36, 0.0  ;;  %v3299_v41 = vmax.f32 %v1014_v39, 0.0 }
 0x1eb   : > { %1134 = vrot.lane.b32.xlu2 %v3299_v41, %s2933_s26  ;;  %1046 = vrot.lane.b32.xlu0 %v3299_v41, %s2932_s21  ;;  %v1245_v13 = vpack.c.bf16 %v3299_v41, %v3299_v41  ;;  %v1244_v15 = vpack.c.bf16 %v3297_v40, %v3297_v40 }
 0x1ec   : > { %1049 = vrot.lane.b32.xlu1 %v3297_v40, %s2932_s21 }
 0x1ed   : > { %v1253_v30 = vsel %vm519_vm2, %v1245_v13, 0  ;;  %v1250_v2 = vsel %vm519_vm2, %v1244_v15, 0 }
 0x1ee   : > { %v998_v42 = vpop.f32.mrf.mxu0  ;;  %v1011_v43 = vpop.f32.mrf.mxu1 }
 0x1f3   : > { %1031 = vrot.lane.b32.xlu2 %v3297_v40, %s2931_s12  ;;  %1137 = vrot.lane.b32.xlu0 %v3297_v40, %s2933_s26  ;;  %s2866_s26 = scalar_lea.hbm %s3576_s10, 16 }
 0x1f4   : > { %1027 = vrot.lane.b32.xlu1 %v3299_v41, %s2931_s12  ;;  %p2868_p4 = scmp.lt.s32.totalorder %s2866_s26, %s2862_s25 }
 0x1f6   : > { %p2869_p7 = por %p2868_p4, %p2867_p3 }
 0x1f8   : > { %p2870_p8 = pnand %p2869_p7, %p2865_p2 }
 0x1fb   : > { %1338 = vrot.lane.b32.xlu2 %v3297_v40, %s2936_s27  ;;  %1189 = vrot.lane.b32.xlu0 %v3299_v41, %s2934_s28 }
 0x1fc   : > { %1192 = vrot.lane.b32.xlu1 %v3297_v40, %s2934_s28  ;;  %s2939_s28 = smov 124  }
 0x203   : > { %1285 = vrot.lane.b32.xlu2 %v3299_v41, %s2935_s20  ;;  %1340 = vrot.lane.b32.xlu0 %v3299_v41, %s2936_s27 }
 0x204   : > { %1283 = vrot.lane.b32.xlu1 %v3297_v40, %s2935_s20 }
 0x20b   : > { %1393 = vrot.lane.b32.xlu2 %v3297_v40, %s2937_s29  ;;  %1448 = vrot.lane.b32.xlu0 %v3297_v40, %s2938_s18 }
 0x20c   : > { %1450 = vrot.lane.b32.xlu1 %v3299_v41, %s2938_s18 }
 0x213   : > { %1395 = vrot.lane.b32.xlu0 %v3299_v41, %s2937_s29  ;;  %s433_s29 = sand.u32 1, %s2912_s14  }
 0x214   : > { %s2531_s18 = sshll.u32 %s433_s29, 3  ;;  %s2392_s19 = scalar_lea.sflag [#allocation4], %s433_s29 }
 0x215   : > { %s435_s17 = scalar_lea.vmem [#allocation11], %s2531_s18 }
 0x216   : > { %s2405_s4 = sshll.u32 %s435_s17, 4  ;;  %s2406_s4 = int_to_ptr.vmem [resolvable:$true] %s2405_s4 }
 0x245   : > { %v1135_v14 = vpop.permute.xlu2 %1134 }
 0x24d   : > { %v1032_v58 = vpop.permute.xlu2 %1031 }
 0x255   : > { %v1339_v27 = vpop.permute.xlu2 %1338 }
 0x25d   : > { %v1047_v29 = vpop.permute.xlu0 %1046 }
 0x25e   : > { %v1050_v52 = vpop.permute.xlu1 %1049 }
 0x25f   : > { %v1051_v53 = vsel %vm500_vm0, %v1050_v52, %v1047_v29  ;;  %v1054_v54 = vsel %vm500_vm0, %v1047_v29, %v1050_v52 }
 0x260   : > { %v1060_v35 = vmul.f32 %v1056_v44, %v1054_v54  ;;  %v1061_v55 = vmul.f32 %v1057_v45, %v1051_v53  ;;  %v1286_v44 = vpop.permute.xlu2 %1285 }
 0x262   : > { %v1062_v59 = vpack.c.bf16 %v1060_v35, %v1060_v35  ;;  %v1063_v60 = vpack.c.bf16 %v1061_v55, %v1061_v55 }
 0x264   : > { %v1068_v31 = vsel %vm519_vm2, %v1062_v59, 0  ;;  %v1071_v12 = vsel %vm519_vm2, %v1063_v60, 0 }
 0x265   : > { %1080 = vmatpush.bf16.msra.mxu2 %v1068_v31  ;;  %1093 = vmatpush.bf16.msra.mxu3 %v1071_v12  ;;  %v1138_v61 = vpop.permute.xlu0 %1137 }
 0x266   : > { %v1139_v62 = vsel %vm599_vm4, %v1138_v61, %v1135_v14  ;;  %v1142_v63 = vsel %vm599_vm4, %v1135_v14, %v1138_v61  ;;  %v1028_v1 = vpop.permute.xlu1 %1027 }
 0x267   : > { %v1148_v3 = vmul.f32 %v1144_v46, %v1142_v63  ;;  %v1149_v4 = vmul.f32 %v1145_v47, %v1139_v62  ;;  %v1033_v7 = vsel %vm473_vm1, %v1032_v58, %v1028_v1  ;;  %v1036_v9 = vsel %vm473_vm1, %v1028_v1, %v1032_v58 }
 0x268   : > { %v1042_v10 = vmul.f32 %v1038_v25, %v1036_v9  ;;  %v1043_v11 = vmul.f32 %v1039_v26, %v1033_v7  ;;  %2552 = vmatmul.msk.bf16.vlgmr.msra.gmra.mxu2 %vm515_vm3, %v1018_v32  ;;  %2553 = vmatmul.msk.bf16.vlgmr.msra.gmra.mxu3 %vm515_vm3, %v1018_v32  ;;  %v1019_v26 = vld [vmem:[%s3573_s7 + $0x4] sm:$0x3]  ;;  %v1021_v7 = vld [vmem:[%s3573_s7 + $0x8] sm:$0x3] }
 0x269   : > { %v1150_v37 = vpack.c.bf16 %v1148_v3, %v1148_v3  ;;  %v1151_v38 = vpack.c.bf16 %v1149_v4, %v1149_v4  ;;  %v1394_v3 = vpop.permute.xlu2 %1393 }
 0x26a   : > { %v1044_v16 = vpack.c.bf16 %v1042_v10, %v1042_v10  ;;  %v1045_v19 = vpack.c.bf16 %v1043_v11, %v1043_v11 }
 0x26b   : > { %v1156_v21 = vsel %vm519_vm2, %v1150_v37, 0  ;;  %v1159_v22 = vsel %vm519_vm2, %v1151_v38, 0 }
 0x26c   : > { %v1103_v28 = vsel %vm519_vm2, %v1044_v16, 0  ;;  %v1106_v17 = vsel %vm519_vm2, %v1045_v19, 0  ;;  %1168 = vmatpush.bf16.msrb.mxu2 %v1156_v21  ;;  %1181 = vmatpush.bf16.msrb.mxu3 %v1159_v22  ;;  %v1565_v19 = vld [vmem:[#allocation2 + $0x1f0] sm:$0xff]  ;;  %v1531_v21 = vld [vmem:[#allocation2 + $0xe0] sm:$0xff] }
 0x26d   : > { %1115 = vmatpush.bf16.msrb.mxu0 %v1103_v28  ;;  %1128 = vmatpush.bf16.msrb.mxu1 %v1106_v17  ;;  %v1190_v18 = vpop.permute.xlu0 %1189  ;;  %v1563_v22 = vld [vmem:[#allocation2 + $0x1e0] sm:$0xff]  ;;  %v1561_v28 = vld [vmem:[#allocation2 + $0x1d0] sm:$0xff] }
 0x26e   : > { %v1193_v5 = vpop.permute.xlu1 %1192  ;;  %v1527_v17 = vld [vmem:[#allocation2 + $0xc0] sm:$0xff] }
 0x26f   : > { %v1194_v6 = vsel %vm663_vm5, %v1193_v5, %v1190_v18  ;;  %v1197_v34 = vsel %vm663_vm5, %v1190_v18, %v1193_v5  ;;  %v1559_v18 = vld [vmem:[#allocation2 + $0x1c0] sm:$0xff]  ;;  %v1525_v5 = vld [vmem:[#allocation2 + $0xb0] sm:$0xff] }
 0x270   : > { %1275 = vmatpush.bf16.msra.mxu3 %v1253_v30  ;;  %1262 = vmatpush.bf16.msra.mxu2 %v1250_v2  ;;  %v1203_v36 = vmul.f32 %v3336_v48, %v1197_v34  ;;  %v1204_v39 = vmul.f32 %v3338_v49, %v1194_v6  ;;  %v1023_v30 = vld [vmem:[%s3573_s7 + $0xc] sm:$0x3]  ;;  %v1534_v2 = vld [vmem:[#allocation2 + $0xf8] sm:$0xff]  ;;  %v1557_v6 = vld [vmem:[#allocation2 + $0x1b0] sm:$0xff] }
 0x271   : > { %2554 = vmatmul.msk.bf16.vlgmr.msrb.gmra.mxu0 %vm515_vm3, %v1017_v33  ;;  %2555 = vmatmul.msk.bf16.vlgmr.msrb.gmra.mxu1 %vm515_vm3, %v1017_v33  ;;  %v1566_v33 = vld [vmem:[#allocation2 + $0x1f8] sm:$0xff]  ;;  %v1532_v34 = vld [vmem:[#allocation2 + $0xe8] sm:$0xff] }
 0x272   : > { %v1205_v40 = vpack.c.bf16 %v1203_v36, %v1203_v36  ;;  %v1206_v41 = vpack.c.bf16 %v1204_v39, %v1204_v39  ;;  %v1564_v36 = vld [vmem:[#allocation2 + $0x1e8] sm:$0xff]  ;;  %v1523_v39 = vld [vmem:[#allocation2 + $0xa0] sm:$0xff] }
 0x274   : > { %v1211_v42 = vsel %vm519_vm2, %v1205_v40, 0  ;;  %v1214_v43 = vsel %vm519_vm2, %v1206_v41, 0  ;;  %v1555_v40 = vld [vmem:[#allocation2 + $0x1a0] sm:$0xff]  ;;  %v1530_v41 = vld [vmem:[#allocation2 + $0xd8] sm:$0xff] }
 0x275   : > { %1223 = vmatpush.bf16.msra.mxu0 %v1211_v42  ;;  %1236 = vmatpush.bf16.msra.mxu1 %v1214_v43  ;;  %v1341_v25 = vpop.permute.xlu0 %1340  ;;  %v1562_v42 = vld [vmem:[#allocation2 + $0x1d8] sm:$0xff]  ;;  %v1521_v43 = vld [vmem:[#allocation2 + $0x90] sm:$0xff] }
 0x276   : > { %v1342_v45 = vsel %vm830_vm7, %v1339_v27, %v1341_v25  ;;  %v1346_v46 = vsel %vm830_vm7, %v1341_v25, %v1339_v27  ;;  %v1284_v47 = vpop.permute.xlu1 %1283  ;;  %v1529_v27 = vld [vmem:[#allocation2 + $0xd0] sm:$0xff] }
 0x277   : > { %v1352_v48 = vmul.f32 %v3346_v8, %v1342_v45  ;;  %v1353_v49 = vmul.f32 %v3348_v50, %v1346_v46  ;;  %v1287_v14 = vsel %vm766_vm6, %v1284_v47, %v1286_v44  ;;  %v1291_v29 = vsel %vm766_vm6, %v1286_v44, %v1284_v47  ;;  %v1553_v25 = vld [vmem:[#allocation2 + $0x190] sm:$0xff]  ;;  %v1560_v44 = vld [vmem:[#allocation2 + $0x1c8] sm:$0xff]  ;;  %v1519_v45 = vld [vmem:[#allocation2 + $0x80] sm:$0xff] }
 0x278   : > { %v1297_v52 = vmul.f32 %v3341_v23, %v1287_v14  ;;  %v1298_v53 = vmul.f32 %v3343_v24, %v1291_v29  ;;  %2556 = vmatmul.msk.bf16.vlgmr.msrb.gmra.mxu2 %vm515_vm3, %v1019_v26  ;;  %2557 = vmatmul.msk.bf16.vlgmr.msrb.gmra.mxu3 %vm515_vm3, %v1019_v26  ;;  %v1020_v24 = vld [vmem:[%s3573_s7 + $0x6] sm:$0x3]  ;;  %v1528_v26 = vld [vmem:[#allocation2 + $0xc8] sm:$0xff]  ;;  %v1551_v46 = vld [vmem:[#allocation2 + $0x180] sm:$0xff] }
 0x279   : > { %v1354_v54 = vpack.c.bf16 %v1352_v48, %v1352_v48  ;;  %v1355_v35 = vpack.c.bf16 %v1353_v49, %v1353_v49  ;;  %v1024_v47 = vld [vmem:[%s3573_s7 + $0xe] sm:$0x3]  ;;  %v1526_v48 = vld [vmem:[#allocation2 + $0xb8] sm:$0xff]  ;;  %v1517_v14 = vld [vmem:[#allocation2 + $0x70] sm:$0xff] }
 0x27a   : > { %v1299_v55 = vpack.c.bf16 %v1297_v52, %v1297_v52  ;;  %v1300_v58 = vpack.c.bf16 %v1298_v53, %v1298_v53  ;;  %v1558_v49 = vld [vmem:[#allocation2 + $0x1b8] sm:$0xff]  ;;  %v1549_v29 = vld [vmem:[#allocation2 + $0x170] sm:$0xff]  ;;  %v1524_v52 = vld [vmem:[#allocation2 + $0xa8] sm:$0xff] }
 0x27b   : > { %v1360_v8 = vsel %vm519_vm2, %v1354_v54, 0  ;;  %v1363_v50 = vsel %vm519_vm2, %v1355_v35, 0  ;;  %v1556_v53 = vld [vmem:[#allocation2 + $0x1a8] sm:$0xff]  ;;  %v1515_v54 = vld [vmem:[#allocation2 + $0x60] sm:$0xff] }
 0x27c   : > { %v1305_v59 = vsel %vm519_vm2, %v1299_v55, 0  ;;  %v1308_v60 = vsel %vm519_vm2, %v1300_v58, 0  ;;  %1372 = vmatpush.bf16.msrb.mxu2 %v1360_v8  ;;  %1385 = vmatpush.bf16.msrb.mxu3 %v1363_v50  ;;  %v1547_v35 = vld [vmem:[#allocation2 + $0x160] sm:$0xff]  ;;  %v1522_v55 = vld [vmem:[#allocation2 + $0x98] sm:$0xff]  ;;  %v1513_v8 = vld [vmem:[#allocation2 + $0x50] sm:$0xff] }
 0x27d   : > { %1317 = vmatpush.bf16.msrb.mxu0 %v1305_v59  ;;  %1330 = vmatpush.bf16.msrb.mxu1 %v1308_v60  ;;  %v1449_v23 = vpop.permute.xlu0 %1448  ;;  %v1554_v58 = vld [vmem:[#allocation2 + $0x198] sm:$0xff]  ;;  %v1545_v50 = vld [vmem:[#allocation2 + $0x150] sm:$0xff]  ;;  %v1520_v59 = vld [vmem:[#allocation2 + $0x88] sm:$0xff] }
 0x27e   : > { %v1451_v31 = vpop.permute.xlu1 %1450  ;;  %v1552_v60 = vld [vmem:[#allocation2 + $0x188] sm:$0xff] }
 0x27f   : > { %v1452_v12 = vsel %vm958_vm9, %v1449_v23, %v1451_v31  ;;  %v1456_v61 = vsel %vm958_vm9, %v1451_v31, %v1449_v23  ;;  %v1511_v23 = vld [vmem:[#allocation2 + $0x40] sm:$0xff]  ;;  %v1025_v31 = vld [vmem:[%s3573_s7 + $0x10] sm:$0x3] }
 0x280   : > { %v1462_v32 = vmul.f32 %v3358_v56, %v1452_v12  ;;  %v1463_v62 = vmul.f32 %v3360_v57, %v1456_v61  ;;  %v1518_v12 = vld [vmem:[#allocation2 + $0x78] sm:$0xff] }
 0x281   : > { %2558 = vmatmul.msk.bf16.vlgmr.msra.gmra.mxu0 %vm515_vm3, %v1020_v24  ;;  %2559 = vmatmul.msk.bf16.vlgmr.msra.gmra.mxu1 %vm515_vm3, %v1020_v24  ;;  %v1543_v24 = vld [vmem:[#allocation2 + $0x140] sm:$0xff]  ;;  %v1550_v61 = vld [vmem:[#allocation2 + $0x178] sm:$0xff] }
 0x282   : > { %v1464_v63 = vpack.c.bf16 %v1462_v32, %v1462_v32  ;;  %v1465_v1 = vpack.c.bf16 %v1463_v62, %v1463_v62  ;;  %v1509_v32 = vld [vmem:[#allocation2 + $0x30] sm:$0xff] }
 0x283   : > { %v1541_v62 = vld [vmem:[#allocation2 + $0x130] sm:$0xff] }
 0x284   : > { %v1470_v11 = vsel %vm519_vm2, %v1464_v63, 0  ;;  %v1473_v37 = vsel %vm519_vm2, %v1465_v1, 0  ;;  %v1516_v63 = vld [vmem:[#allocation2 + $0x68] sm:$0xff] }
 0x285   : > { %v1396_v4 = vpop.permute.xlu0 %1395  ;;  %v1548_v1 = vld [vmem:[#allocation2 + $0x168] sm:$0xff] }
 0x286   : > { %v1397_v9 = vsel %vm894_vm8, %v1394_v3, %v1396_v4  ;;  %v1401_v10 = vsel %vm894_vm8, %v1396_v4, %v1394_v3  ;;  %v3454_v3 = vld.sshfl [vmem:[#allocation1] sm:$0xff pattern:$0x75316420]  ;;  %v3456_v4 = vld.sshfl [vmem:[#allocation1 + $0x8] sm:$0xff pattern:$0x75316420] }
 0x287   : > { %v1407_v56 = vmul.f32 %v3351_v20, %v1397_v9  ;;  %v1408_v57 = vmul.f32 %v3353_v51, %v1401_v10  ;;  %v1022_v20 = vld [vmem:[%s3573_s7 + $0xa] sm:$0x3]  ;;  %v1533_v51 = vld [vmem:[#allocation2 + $0xf0] sm:$0xff]  ;;  %1716 = vst [vmem:[#allocation1] ss:$2 sm:$0xff] %v3100_v0  ;;  %v1514_v10 = vld [vmem:[#allocation2 + $0x58] sm:$0xff] }
 0x288   : > { %2560 = vmatmul.msk.bf16.vlgmr.msra.gmra.mxu2 %vm515_vm3, %v1021_v7  ;;  %2561 = vmatmul.msk.bf16.vlgmr.msra.gmra.mxu3 %vm515_vm3, %v1021_v7  ;;  %v1507_v7 = vld [vmem:[#allocation2 + $0x20] sm:$0xff] }
 0x289   : > { %v1409_v38 = vpack.c.bf16 %v1407_v56, %v1407_v56  ;;  %v1410_v13 = vpack.c.bf16 %v1408_v57, %v1408_v57  ;;  %1482 = vmatpush.bf16.msra.mxu2 %v1470_v11  ;;  %1495 = vmatpush.bf16.msra.mxu3 %v1473_v37  ;;  %v1539_v9 = vld [vmem:[#allocation2 + $0x120] sm:$0xff]  ;;  %v1546_v56 = vld [vmem:[#allocation2 + $0x158] sm:$0xff]  ;;  %v1505_v57 = vld [vmem:[#allocation2 + $0x10] sm:$0xff] }
 0x28a   : > { %v1537_v11 = vld [vmem:[#allocation2 + $0x110] sm:$0xff]  ;;  %v1512_v37 = vld [vmem:[#allocation2 + $0x48] sm:$0xff] }
 0x28b   : > { %v1415_v15 = vsel %vm519_vm2, %v1409_v38, 0  ;;  %v1418_v16 = vsel %vm519_vm2, %v1410_v13, 0  ;;  %v1544_v38 = vld [vmem:[#allocation2 + $0x148] sm:$0xff]  ;;  %v1503_v13 = vld [vmem:[#allocation2] sm:$0xff] }
 0x28c   : > { %1427 = vmatpush.bf16.msra.mxu0 %v1415_v15  ;;  %1440 = vmatpush.bf16.msra.mxu1 %v1418_v16  ;;  %v1535_v15 = vld [vmem:[#allocation2 + $0x100] sm:$0xff]  ;;  %v1510_v16 = vld [vmem:[#allocation2 + $0x38] sm:$0xff] }
 0x291   : > { %2562 = vmatmul.msk.bf16.vlgmr.msrb.gmra.mxu0 %vm515_vm3, %v1022_v20  ;;  %2563 = vmatmul.msk.bf16.vlgmr.msrb.gmra.mxu1 %vm515_vm3, %v1022_v20  ;;  %v1542_v20 = vld [vmem:[#allocation2 + $0x138] sm:$0xff] }
 0x292   : > { %1572 = vmatpush.msrb.mxu0 %v1533_v51  ;;  %1592 = vmatpush.msrb.mxu1 %v1565_v19  ;;  %v1682_v51 = vld [vmem:[#allocation5 + $0xf0] sm:$0xff] }
 0x293   : > { %v1714_v19 = vld [vmem:[#allocation5 + $0x1f0] sm:$0xff] }
 0x294   : > { %1573 = vmatpush.msrb.mxu0 %v1531_v21  ;;  %1593 = vmatpush.msrb.mxu1 %v1563_v22  ;;  %v1508_v21 = vld [vmem:[#allocation2 + $0x28] sm:$0xff] }
 0x295   : > { %v1540_v22 = vld [vmem:[#allocation2 + $0x128] sm:$0xff] }
 0x296   : > { %1574 = vmatpush.msrb.mxu0 %v1529_v27  ;;  %1594 = vmatpush.msrb.mxu1 %v1561_v28  ;;  %v1680_v27 = vld [vmem:[#allocation5 + $0xe0] sm:$0xff] }
 0x297   : > { %v1712_v28 = vld [vmem:[#allocation5 + $0x1e0] sm:$0xff] }
 0x298   : > { %1575 = vmatpush.msrb.mxu0 %v1527_v17  ;;  %1595 = vmatpush.msrb.mxu1 %v1559_v18  ;;  %v1506_v17 = vld [vmem:[#allocation2 + $0x18] sm:$0xff] }
 0x299   : > { %2564 = vmatmul.msk.bf16.vlgmr.msrb.gmra.mxu2 %vm515_vm3, %v1023_v30  ;;  %2565 = vmatmul.msk.bf16.vlgmr.msrb.gmra.mxu3 %vm515_vm3, %v1023_v30  ;;  %v1538_v18 = vld [vmem:[#allocation2 + $0x118] sm:$0xff] }
 0x29a   : > { %1612 = vmatpush.msrb.mxu2 %v1534_v2  ;;  %1632 = vmatpush.msrb.mxu3 %v1566_v33  ;;  %v3459_v30 = vld.sshfl [vmem:[#allocation1] sm:$0xff pattern:$0x75316420]  ;;  %v3461_v2 = vld.sshfl [vmem:[#allocation1 + $0x8] sm:$0xff pattern:$0x75316420] }
 0x29b   : > { %1576 = vmatpush.msrb.mxu0 %v1525_v5  ;;  %1596 = vmatpush.msrb.mxu1 %v1557_v6  ;;  %v1678_v33 = vld [vmem:[#allocation5 + $0xd0] sm:$0xff]  ;;  %2375 = vst [vmem:[#allocation1] ss:$2 sm:$0xff] %v3100_v0  ;;  %v1504_v6 = vld [vmem:[#allocation2 + $0x8] sm:$0xff] }
 0x29c   : > { %1613 = vmatpush.msrb.mxu2 %v1532_v34  ;;  %1633 = vmatpush.msrb.mxu3 %v1564_v36  ;;  %v1710_v5 = vld [vmem:[#allocation5 + $0x1d0] sm:$0xff]  ;;  %v1536_v34 = vld [vmem:[#allocation2 + $0x108] sm:$0xff]  ;;  %v1676_v36 = vld [vmem:[#allocation5 + $0xc0] sm:$0xff] }
 0x29d   : > { %1577 = vmatpush.msrb.mxu0 %v1523_v39  ;;  %1597 = vmatpush.msrb.mxu1 %v1555_v40  ;;  %v1708_v39 = vld [vmem:[#allocation5 + $0x1c0] sm:$0xff]  ;;  %v1683_v40 = vld [vmem:[#allocation5 + $0xf8] sm:$0xff]  ;;  %v1713_v0 = vld [vmem:[#allocation5 + $0x1e8] sm:$0xff] }
 0x29e   : > { %1614 = vmatpush.msrb.mxu2 %v1530_v41  ;;  %1634 = vmatpush.msrb.mxu3 %v1562_v42  ;;  %v1715_v41 = vld [vmem:[#allocation5 + $0x1f8] sm:$0xff]  ;;  %v1674_v42 = vld [vmem:[#allocation5 + $0xb0] sm:$0xff] }
 0x29f   : > { %1578 = vmatpush.msrb.mxu0 %v1521_v43  ;;  %1598 = vmatpush.msrb.mxu1 %v1553_v25  ;;  %v1706_v43 = vld [vmem:[#allocation5 + $0x1b0] sm:$0xff]  ;;  %v1681_v25 = vld [vmem:[#allocation5 + $0xe8] sm:$0xff] }
 0x2a0   : > { %1615 = vmatpush.msrb.mxu2 %v1528_v26  ;;  %1635 = vmatpush.msrb.mxu3 %v1560_v44  ;;  %v1672_v26 = vld [vmem:[#allocation5 + $0xa0] sm:$0xff] }
 0x2a1   : > { %1579 = vmatpush.msrb.mxu0 %v1519_v45  ;;  %1599 = vmatpush.msrb.mxu1 %v1551_v46  ;;  %v1704_v44 = vld [vmem:[#allocation5 + $0x1a0] sm:$0xff]  ;;  %v1679_v45 = vld [vmem:[#allocation5 + $0xd8] sm:$0xff] }
 0x2a2   : > { %2566 = vmatmul.msk.bf16.vlgmr.msra.gmra.mxu0 %vm515_vm3, %v1024_v47  ;;  %2567 = vmatmul.msk.bf16.vlgmr.msra.gmra.mxu1 %vm515_vm3, %v1024_v47  ;;  %v1711_v46 = vld [vmem:[#allocation5 + $0x1d8] sm:$0xff]  ;;  %v1670_v47 = vld [vmem:[#allocation5 + $0x90] sm:$0xff] }
 0x2a3   : > { %1616 = vmatpush.msrb.mxu2 %v1526_v48  ;;  %1636 = vmatpush.msrb.mxu3 %v1558_v49  ;;  %v1702_v48 = vld [vmem:[#allocation5 + $0x190] sm:$0xff]  ;;  %v1677_v49 = vld [vmem:[#allocation5 + $0xc8] sm:$0xff] }
 0x2a4   : > { %1580 = vmatpush.msrb.mxu0 %v1517_v14  ;;  %1600 = vmatpush.msrb.mxu1 %v1549_v29  ;;  %v1709_v14 = vld [vmem:[#allocation5 + $0x1c8] sm:$0xff]  ;;  %v1668_v29 = vld [vmem:[#allocation5 + $0x80] sm:$0xff] }
 0x2a5   : > { %1617 = vmatpush.msrb.mxu2 %v1524_v52  ;;  %1637 = vmatpush.msrb.mxu3 %v1556_v53  ;;  %v1700_v52 = vld [vmem:[#allocation5 + $0x180] sm:$0xff]  ;;  %v1675_v53 = vld [vmem:[#allocation5 + $0xb8] sm:$0xff] }
 0x2a6   : > { %1581 = vmatpush.msrb.mxu0 %v1515_v54  ;;  %1601 = vmatpush.msrb.mxu1 %v1547_v35  ;;  %v1707_v54 = vld [vmem:[#allocation5 + $0x1b8] sm:$0xff]  ;;  %v1666_v35 = vld [vmem:[#allocation5 + $0x70] sm:$0xff] }
 0x2a7   : > { %1618 = vmatpush.msrb.mxu2 %v1522_v55  ;;  %1638 = vmatpush.msrb.mxu3 %v1554_v58  ;;  %v1698_v55 = vld [vmem:[#allocation5 + $0x170] sm:$0xff]  ;;  %v1673_v58 = vld [vmem:[#allocation5 + $0xa8] sm:$0xff] }
 0x2a8   : > { %1582 = vmatpush.msrb.mxu0 %v1513_v8  ;;  %1602 = vmatpush.msrb.mxu1 %v1545_v50  ;;  %v1705_v8 = vld [vmem:[#allocation5 + $0x1a8] sm:$0xff]  ;;  %v1664_v50 = vld [vmem:[#allocation5 + $0x60] sm:$0xff] }
 0x2a9   : > { %1619 = vmatpush.msrb.mxu2 %v1520_v59  ;;  %1639 = vmatpush.msrb.mxu3 %v1552_v60  ;;  %v1696_v59 = vld [vmem:[#allocation5 + $0x160] sm:$0xff]  ;;  %v1671_v60 = vld [vmem:[#allocation5 + $0x98] sm:$0xff] }
 0x2aa   : > { %1583 = vmatpush.msrb.mxu0 %v1511_v23  ;;  %1603 = vmatpush.msrb.mxu1 %v1543_v24  ;;  %v1703_v23 = vld [vmem:[#allocation5 + $0x198] sm:$0xff]  ;;  %v1662_v24 = vld [vmem:[#allocation5 + $0x50] sm:$0xff] }
 0x2ab   : > { %2568 = vmatmul.msk.bf16.vlgmr.msra.gmra.mxu2 %vm515_vm3, %v1025_v31  ;;  %2569 = vmatmul.msk.bf16.vlgmr.msra.gmra.mxu3 %vm515_vm3, %v1025_v31  ;;  %v1694_v31 = vld [vmem:[#allocation5 + $0x150] sm:$0xff] }
 0x2ac   : > { %1620 = vmatpush.msrb.mxu2 %v1518_v12  ;;  %1640 = vmatpush.msrb.mxu3 %v1550_v61  ;;  %v1669_v12 = vld [vmem:[#allocation5 + $0x88] sm:$0xff] }
 0x2ad   : > { %1584 = vmatpush.msrb.mxu0 %v1509_v32  ;;  %1604 = vmatpush.msrb.mxu1 %v1541_v62  ;;  %v1701_v61 = vld [vmem:[#allocation5 + $0x188] sm:$0xff]  ;;  %v1660_v32 = vld [vmem:[#allocation5 + $0x40] sm:$0xff] }
 0x2ae   : > { %1621 = vmatpush.msrb.mxu2 %v1516_v63  ;;  %1641 = vmatpush.msrb.mxu3 %v1548_v1  ;;  %v1692_v62 = vld [vmem:[#allocation5 + $0x140] sm:$0xff]  ;;  %v1667_v63 = vld [vmem:[#allocation5 + $0x78] sm:$0xff] }
 0x2af   : > { %1585 = vmatpush.msrb.mxu0 %v1507_v7  ;;  %1605 = vmatpush.msrb.mxu1 %v1539_v9  ;;  %v1699_v1 = vld [vmem:[#allocation5 + $0x178] sm:$0xff]  ;;  %v1658_v7 = vld [vmem:[#allocation5 + $0x30] sm:$0xff] }
 0x2b0   : > { %1622 = vmatpush.msrb.mxu2 %v1514_v10  ;;  %1642 = vmatpush.msrb.mxu3 %v1546_v56  ;;  %v1690_v9 = vld [vmem:[#allocation5 + $0x130] sm:$0xff]  ;;  %v1665_v10 = vld [vmem:[#allocation5 + $0x68] sm:$0xff] }
 0x2b1   : > { %1586 = vmatpush.msrb.mxu0 %v1505_v57  ;;  %1606 = vmatpush.msrb.mxu1 %v1537_v11  ;;  %v1697_v56 = vld [vmem:[#allocation5 + $0x168] sm:$0xff]  ;;  %v3469_v57 = vld [vmem:[%s3574_s8] sm:$0xf]  ;;  %v1656_v11 = vld [vmem:[#allocation5 + $0x20] sm:$0xff] }
 0x2b2   : > { %1623 = vmatpush.msrb.mxu2 %v1512_v37  ;;  %1643 = vmatpush.msrb.mxu3 %v1544_v38  ;;  %v1688_v37 = vld [vmem:[#allocation5 + $0x120] sm:$0xff]  ;;  %v1663_v38 = vld [vmem:[#allocation5 + $0x58] sm:$0xff] }
 0x2b3   : > { %1587 = vmatpush.msrb.mxu0 %v1503_v13  ;;  %1607 = vmatpush.msrb.mxu1 %v1535_v15  ;;  %v1695_v13 = vld [vmem:[#allocation5 + $0x158] sm:$0xff]  ;;  %v1654_v15 = vld [vmem:[#allocation5 + $0x10] sm:$0xff] }
 0x2b4   : > { %1624 = vmatpush.msrb.mxu2 %v1510_v16  ;;  %1644 = vmatpush.msrb.mxu3 %v1542_v20  ;;  %v1686_v16 = vld [vmem:[#allocation5 + $0x110] sm:$0xff]  ;;  %v1808_v20 = vunpack.c.l.b16 %v3469_v57 }
 0x2b5   : > { %1721 = vmatpush.msra.mxu0 %v1682_v51  ;;  %1741 = vmatpush.msra.mxu1 %v1714_v19  ;;  %v1661_v51 = vld [vmem:[#allocation5 + $0x48] sm:$0xff] }
 0x2b6   : > { %1625 = vmatpush.msrb.mxu2 %v1508_v21  ;;  %1645 = vmatpush.msrb.mxu3 %v1540_v22  ;;  %v1693_v19 = vld [vmem:[#allocation5 + $0x148] sm:$0xff]  ;;  %v1659_v21 = vld [vmem:[#allocation5 + $0x38] sm:$0xff] }
 0x2b7   : > { %1722 = vmatpush.msra.mxu0 %v1680_v27  ;;  %1742 = vmatpush.msra.mxu1 %v1712_v28  ;;  %v1691_v22 = vld [vmem:[#allocation5 + $0x138] sm:$0xff]  ;;  %v1809_v27 = vpack.c.b16 %v1808_v20, %v1808_v20  ;;  %v1657_v28 = vld [vmem:[#allocation5 + $0x28] sm:$0xff] }
 0x2b8   : > { %1626 = vmatpush.msrb.mxu2 %v1506_v17  ;;  %1646 = vmatpush.msrb.mxu3 %v1538_v18  ;;  %v1689_v17 = vld [vmem:[#allocation5 + $0x128] sm:$0xff]  ;;  %v1655_v18 = vld [vmem:[#allocation5 + $0x18] sm:$0xff] }
 0x2b9   : > { %1723 = vmatpush.msra.mxu0 %v1678_v33  ;;  %1743 = vmatpush.msra.mxu1 %v1710_v5  ;;  %v1687_v33 = vld [vmem:[#allocation5 + $0x118] sm:$0xff]  ;;  %v1653_v5 = vld [vmem:[#allocation5 + $0x8] sm:$0xff] }
 0x2ba   : > { %1627 = vmatpush.msrb.mxu2 %v1504_v6  ;;  %1647 = vmatpush.msrb.mxu3 %v1536_v34  ;;  %v1685_v6 = vld [vmem:[#allocation5 + $0x108] sm:$0xff]  ;;  %v3479_v34 = vrot.slane %v1809_v27, 2 }
 0x2bb   : > { %1724 = vmatpush.msra.mxu0 %v1676_v36  ;;  %1744 = vmatpush.msra.mxu1 %v1708_v39 }
 0x2bc   : > { %1761 = vmatpush.msra.mxu2 %v1683_v40  ;;  %1781 = vmatpush.msra.mxu3 %v1715_v41 }
 0x2bd   : > { %1725 = vmatpush.msra.mxu0 %v1674_v42  ;;  %1745 = vmatpush.msra.mxu1 %v1706_v43 }
 0x2be   : > { %1762 = vmatpush.msra.mxu2 %v1681_v25  ;;  %1782 = vmatpush.msra.mxu3 %v1713_v0 }
 0x2bf   : > { %1726 = vmatpush.msra.mxu0 %v1672_v26  ;;  %1746 = vmatpush.msra.mxu1 %v1704_v44 }
 0x2c0   : > { %1763 = vmatpush.msra.mxu2 %v1679_v45  ;;  %1783 = vmatpush.msra.mxu3 %v1711_v46 }
 0x2c1   : > { %1727 = vmatpush.msra.mxu0 %v1670_v47  ;;  %1747 = vmatpush.msra.mxu1 %v1702_v48 }
 0x2c2   : > { %1764 = vmatpush.msra.mxu2 %v1677_v49  ;;  %1784 = vmatpush.msra.mxu3 %v1709_v14 }
 0x2c3   : > { %1728 = vmatpush.msra.mxu0 %v1668_v29  ;;  %1748 = vmatpush.msra.mxu1 %v1700_v52 }
 0x2c4   : > { %1765 = vmatpush.msra.mxu2 %v1675_v53  ;;  %1785 = vmatpush.msra.mxu3 %v1707_v54 }
 0x2c5   : > { %1729 = vmatpush.msra.mxu0 %v1666_v35  ;;  %1749 = vmatpush.msra.mxu1 %v1698_v55 }
 0x2c6   : > { %1766 = vmatpush.msra.mxu2 %v1673_v58  ;;  %1786 = vmatpush.msra.mxu3 %v1705_v8 }
 0x2c7   : > { %1730 = vmatpush.msra.mxu0 %v1664_v50  ;;  %1750 = vmatpush.msra.mxu1 %v1696_v59 }
 0x2c8   : > { %1767 = vmatpush.msra.mxu2 %v1671_v60  ;;  %1787 = vmatpush.msra.mxu3 %v1703_v23 }
 0x2c9   : > { %1731 = vmatpush.msra.mxu0 %v1662_v24  ;;  %1751 = vmatpush.msra.mxu1 %v1694_v31 }
 0x2ca   : > { %1768 = vmatpush.msra.mxu2 %v1669_v12  ;;  %1788 = vmatpush.msra.mxu3 %v1701_v61 }
 0x2cb   : > { %1732 = vmatpush.msra.mxu0 %v1660_v32  ;;  %1752 = vmatpush.msra.mxu1 %v1692_v62 }
 0x2cc   : > { %1588 = vmatmul.f32.vlgmr.msrb.gmra.mxu0 %v3454_v3  ;;  %1608 = vmatmul.f32.vlgmr.msrb.gmra.mxu1 %v3456_v4 }
 0x2cd   : > { %1769 = vmatpush.msra.mxu2 %v1667_v63  ;;  %1789 = vmatpush.msra.mxu3 %v1699_v1 }
 0x2ce   : > { %1628 = vmatmul.f32.vlgmr.msrb.gmra.mxu2 %v3454_v3  ;;  %1648 = vmatmul.f32.vlgmr.msrb.gmra.mxu3 %v3456_v4  ;;  %v1652_v3 = vld [vmem:[#allocation5] sm:$0xff] }
 0x2cf   : > { %1733 = vmatpush.msra.mxu0 %v1658_v7  ;;  %1753 = vmatpush.msra.mxu1 %v1690_v9  ;;  %v1684_v4 = vld [vmem:[#allocation5 + $0x100] sm:$0xff] }
 0x2d0   : > { %1770 = vmatpush.msra.mxu2 %v1665_v10  ;;  %1790 = vmatpush.msra.mxu3 %v1697_v56 }
 0x2d1   : > { %1734 = vmatpush.msra.mxu0 %v1656_v11  ;;  %1754 = vmatpush.msra.mxu1 %v1688_v37 }
 0x2d2   : > { %1771 = vmatpush.msra.mxu2 %v1663_v38  ;;  %1791 = vmatpush.msra.mxu3 %v1695_v13 }
 0x2d3   : > { %1735 = vmatpush.msra.mxu0 %v1654_v15  ;;  %1755 = vmatpush.msra.mxu1 %v1686_v16 }
 0x2d4   : > { %1772 = vmatpush.msra.mxu2 %v1661_v51  ;;  %1792 = vmatpush.msra.mxu3 %v1693_v19 }
 0x2d5   : > { %1736 = vmatpush.msra.mxu0 %v1652_v3  ;;  %1756 = vmatpush.msra.mxu1 %v1684_v4 }
 0x2d6   : > { %1737 = vmatmul.f32.vlgmr.msra.gmra.mxu0 %v3459_v30  ;;  %1757 = vmatmul.f32.vlgmr.msra.gmra.mxu1 %v3461_v2 }
 0x2d7   : > { %1773 = vmatpush.msra.mxu2 %v1659_v21  ;;  %1793 = vmatpush.msra.mxu3 %v1691_v22 }
 0x2d8   : > { %1810 = vrot.lane.b32.xlu1 %v1809_v27, %s2939_s28  ;;  %1883 = vrot.lane.b32.xlu2 %v3479_v34, %s2939_s28 }
 0x2d9   : > { %1774 = vmatpush.msra.mxu2 %v1657_v28  ;;  %1794 = vmatpush.msra.mxu3 %v1689_v17 }
 0x2db   : > { %1775 = vmatpush.msra.mxu2 %v1655_v18  ;;  %1795 = vmatpush.msra.mxu3 %v1687_v33 }
 0x2dd   : > { %1776 = vmatpush.msra.mxu2 %v1653_v5  ;;  %1796 = vmatpush.msra.mxu3 %v1685_v6 }
 0x2de   : > { %1777 = vmatmul.f32.vlgmr.msra.gmra.mxu2 %v3459_v30  ;;  %1797 = vmatmul.f32.vlgmr.msra.gmra.mxu3 %v3461_v2 }
 0x2eb   : > { %v1082_v36 = vpop.f32.mrf.mxu2  ;;  %v1095_v39 = vpop.f32.mrf.mxu3 }
 0x2ee   : > { %v1117_v40 = vpop.f32.mrf.mxu0  ;;  %v1130_v41 = vpop.f32.mrf.mxu1 }
 0x2ef   : > { %v1118_v42 = vadd.f32 %v1117_v40, %v1082_v36  ;;  %v1131_v43 = vadd.f32 %v1130_v41, %v1095_v39 }
 0x2f3   : > { %v1084_v25 = vpop.f32.mrf.mxu2  ;;  %v1097_v0 = vpop.f32.mrf.mxu3 }
 0x2f4   : > { %v1802_v25 = vld [vmem:[%s3575_s9] sm:$0xf] }
 0x2f5   : > { %v1952_v0 = vunpack.c.l.b16 %v1802_v25 }
 0x2f6   : > { %v1119_v26 = vpop.f32.mrf.mxu0  ;;  %v1132_v44 = vpop.f32.mrf.mxu1 }
 0x2f7   : > { %v1953_v26 = vpack.c.b16 %v1952_v0, %v1952_v0  ;;  %v2167_v0 = vld [vmem:[#allocation8 + $0x80] sm:$0xff] }
 0x2f9   : > { %1954 = vrot.lane.b32.xlu0 %v1953_v26, %s2939_s28  ;;  %v3499_v44 = vrot.slane %v1953_v26, 2 }
 0x2fb   : > { %v1170_v45 = vpop.f32.mrf.mxu2  ;;  %v1183_v46 = vpop.f32.mrf.mxu3  ;;  %2027 = vrot.lane.b32.xlu1 %v3499_v44, %s2939_s28 }
 0x2fc   : > { %v1187_v30 = vadd.f32 %v1170_v45, %v1118_v42  ;;  %v1188_v47 = vadd.f32 %v1183_v46, %v1131_v43 }
 0x2fe   : > { %v1225_v2 = vpop.f32.mrf.mxu0  ;;  %v1238_v48 = vpop.f32.mrf.mxu1 }
 0x2ff   : > { %v1242_v49 = vadd.f32 %v1225_v2, %v1187_v30  ;;  %v1243_v14 = vadd.f32 %v1238_v48, %v1188_v47 }
 0x303   : > { %v1172_v29 = vpop.f32.mrf.mxu2  ;;  %v1185_v52 = vpop.f32.mrf.mxu3 }
 0x306   : > { %v1227_v53 = vpop.f32.mrf.mxu0  ;;  %v1240_v54 = vpop.f32.mrf.mxu1 }
 0x30b   : > { %v1264_v35 = vpop.f32.mrf.mxu2  ;;  %v1277_v55 = vpop.f32.mrf.mxu3 }
 0x30c   : > { %v1281_v58 = vadd.f32 %v1264_v35, %v1242_v49  ;;  %v1282_v8 = vadd.f32 %v1277_v55, %v1243_v14 }
 0x30e   : > { %v1319_v50 = vpop.f32.mrf.mxu0  ;;  %v1332_v59 = vpop.f32.mrf.mxu1 }
 0x30f   : > { %v1336_v60 = vadd.f32 %v1319_v50, %v1281_v58  ;;  %v1337_v23 = vadd.f32 %v1332_v59, %v1282_v8 }
 0x313   : > { %v1266_v24 = vpop.f32.mrf.mxu2  ;;  %v1279_v31 = vpop.f32.mrf.mxu3 }
 0x316   : > { %v1321_v12 = vpop.f32.mrf.mxu0  ;;  %v1334_v61 = vpop.f32.mrf.mxu1 }
 0x31c   : > { %v1374_v32 = vpop.f32.mrf.mxu2  ;;  %v1387_v62 = vpop.f32.mrf.mxu3 }
 0x31d   : > { %v1391_v63 = vadd.f32 %v1374_v32, %v1336_v60  ;;  %v1392_v1 = vadd.f32 %v1387_v62, %v1337_v23 }
 0x31f   : > { %v1429_v7 = vpop.f32.mrf.mxu0  ;;  %v1442_v9 = vpop.f32.mrf.mxu1 }
 0x320   : > { %v1446_v10 = vadd.f32 %v1429_v7, %v1391_v63  ;;  %v1447_v56 = vadd.f32 %v1442_v9, %v1392_v1 }
 0x324   : > { %v1376_v11 = vpop.f32.mrf.mxu2  ;;  %v1389_v37 = vpop.f32.mrf.mxu3 }
 0x325   : > { %v2180_v11 = vld [vmem:[#allocation8 + $0xe8] sm:$0xff]  ;;  %v2179_v37 = vld [vmem:[#allocation8 + $0xe0] sm:$0xff] }
 0x327   : > { %v1431_v38 = vpop.f32.mrf.mxu0  ;;  %v1444_v13 = vpop.f32.mrf.mxu1 }
 0x328   : > { %v2178_v38 = vld [vmem:[#allocation8 + $0xd8] sm:$0xff] }
 0x32e   : > { %v1484_v15 = vpop.f32.mrf.mxu2  ;;  %v1497_v16 = vpop.f32.mrf.mxu3 }
 0x32f   : > { %v3483_v20 = vadd.f32 %v1484_v15, %v1446_v10  ;;  %v3485_v51 = vadd.f32 %v1497_v16, %v1447_v56  ;;  %v2181_v10 = vld [vmem:[#allocation8 + $0xf0] sm:$0xff]  ;;  %v2182_v56 = vld [vmem:[#allocation8 + $0xf8] sm:$0xff]  ;;  %v2176_v16 = vld [vmem:[#allocation8 + $0xc8] sm:$0xff] }
 0x330   : > { %v2177_v15 = vld [vmem:[#allocation8 + $0xd0] sm:$0xff] }
 0x332   : > { %v1884_v2 = vpop.permute.xlu2 %1883 }
 0x336   : > { %v1486_v19 = vpop.f32.mrf.mxu2  ;;  %v1499_v3 = vpop.f32.mrf.mxu3 }
 0x337   : > { %v2214_v3 = vld [vmem:[#allocation8 + $0x1f8] sm:$0xff] }
 0x349   : > { %v1589_v4 = vpop.f32.mrf.mxu0  ;;  %v1609_v21 = vpop.f32.mrf.mxu1 }
 0x34a   : > { %v1610_v22 = vadd.f32 %v1609_v21, %v1589_v4  ;;  %v1811_v43 = vpop.permute.xlu1 %1810  ;;  %v2175_v21 = vld [vmem:[#allocation8 + $0xc0] sm:$0xff] }
 0x34c   : > { %v1803_v27 = vpack.c.bf16 %v1610_v22, %v1610_v22  ;;  %v2174_v22 = vld [vmem:[#allocation8 + $0xb8] sm:$0xff] }
 0x34e   : > { %v1851_v28 = vsel %vm519_vm2, %v1803_v27, 0  ;;  %v2212_v27 = vld [vmem:[#allocation8 + $0x1e8] sm:$0xff] }
 0x34f   : > { %1863 = vmatpush.bf16.msrb.mxu2 %v1851_v28 }
 0x351   : > { %v1629_v17 = vpop.f32.mrf.mxu2  ;;  %v1649_v18 = vpop.f32.mrf.mxu3 }
 0x352   : > { %v1650_v33 = vadd.f32 %v1649_v18, %v1629_v17  ;;  %2572 = vmatmul.msk.bf16.vlgmr.msrb.gmra.mxu2 %vm515_vm3, %v3469_v57  ;;  %v2173_v18 = vld [vmem:[#allocation8 + $0xb0] sm:$0xff] }
 0x353   : > { %1924 = vmatpush.bf16.msra.mxu2 %v1851_v28  ;;  %v1738_v5 = vpop.f32.mrf.mxu0  ;;  %v1758_v6 = vpop.f32.mrf.mxu1  ;;  %v2210_v28 = vld [vmem:[#allocation8 + $0x1d8] sm:$0xff] }
 0x354   : > { %v1804_v36 = vpack.c.bf16 %v1650_v33, %v1650_v33  ;;  %v1759_v39 = vadd.f32 %v1758_v6, %v1738_v5  ;;  %v2172_v33 = vld [vmem:[#allocation8 + $0xa8] sm:$0xff] }
 0x355   : > { %v2208_v5 = vld [vmem:[#allocation8 + $0x1c8] sm:$0xff] }
 0x356   : > { %v1854_v40 = vsel %vm519_vm2, %v1804_v36, 0  ;;  %v1805_v41 = vpack.c.bf16 %v1759_v39, %v1759_v39  ;;  %v2171_v36 = vld [vmem:[#allocation8 + $0xa0] sm:$0xff]  ;;  %v2170_v39 = vld [vmem:[#allocation8 + $0x98] sm:$0xff] }
 0x357   : > { %1876 = vmatpush.bf16.msrb.mxu3 %v1854_v40 }
 0x358   : > { %v1816_v42 = vsel %vm519_vm2, %v1805_v41, 0  ;;  %v2169_v41 = vld [vmem:[#allocation8 + $0x90] sm:$0xff] }
 0x359   : > { %1828 = vmatpush.bf16.msrb.mxu0 %v1816_v42 }
 0x35a   : > { %2573 = vmatmul.msk.bf16.vlgmr.msrb.gmra.mxu3 %vm515_vm3, %v3469_v57 }
 0x35b   : > { %1937 = vmatpush.bf16.msra.mxu3 %v1854_v40 }
 0x35c   : > { %2570 = vmatmul.msk.bf16.vlgmr.msrb.gmra.mxu0 %vm515_vm3, %v1811_v43 }
 0x35d   : > { %1895 = vmatpush.bf16.msra.mxu0 %v1816_v42  ;;  %v2206_v42 = vld [vmem:[#allocation8 + $0x1b8] sm:$0xff] }
 0x361   : > { %v1778_v45 = vpop.f32.mrf.mxu2  ;;  %v1798_v46 = vpop.f32.mrf.mxu3 }
 0x362   : > { %v1799_v30 = vadd.f32 %v1798_v46, %v1778_v45  ;;  %2576 = vmatmul.msk.bf16.vlgmr.msra.gmra.mxu2 %vm515_vm3, %v3479_v34  ;;  %v2168_v45 = vld [vmem:[#allocation8 + $0x88] sm:$0xff]  ;;  %v2211_v46 = vld [vmem:[#allocation8 + $0x1e0] sm:$0xff] }
 0x364   : > { %v1806_v57 = vpack.c.bf16 %v1799_v30, %v1799_v30  ;;  %v2165_v30 = vld [vmem:[#allocation8 + $0x70] sm:$0xff] }
 0x366   : > { %v1819_v47 = vsel %vm519_vm2, %v1806_v57, 0  ;;  %v2166_v57 = vld [vmem:[#allocation8 + $0x78] sm:$0xff] }
 0x367   : > { %1841 = vmatpush.bf16.msrb.mxu1 %v1819_v47 }
 0x36a   : > { %2571 = vmatmul.msk.bf16.vlgmr.msrb.gmra.mxu1 %vm515_vm3, %v1811_v43  ;;  %2577 = vmatmul.msk.bf16.vlgmr.msra.gmra.mxu3 %vm515_vm3, %v3479_v34 }
 0x36b   : > { %1908 = vmatpush.bf16.msra.mxu1 %v1819_v47  ;;  %v1955_v7 = vpop.permute.xlu0 %1954  ;;  %v2204_v47 = vld [vmem:[#allocation8 + $0x1a8] sm:$0xff] }
 0x36c   : > { %2574 = vmatmul.msk.bf16.vlgmr.msra.gmra.mxu0 %vm515_vm3, %v1884_v2 }
 0x36d   : > { %v3520_v26 = vpop.permute.xlu1 %2027 }
 0x37a   : > { %2575 = vmatmul.msk.bf16.vlgmr.msra.gmra.mxu1 %vm515_vm3, %v1884_v2  ;;  %v2209_v2 = vld [vmem:[#allocation8 + $0x1d0] sm:$0xff] }
 0x3d5   : > { %v1865_v48 = vpop.f32.mrf.mxu2 }
 0x3d9   : > { %v1830_v49 = vpop.f32.mrf.mxu0 }
 0x3da   : > { %v1866_v14 = vadd.f32 %v1865_v48, %v1830_v49  ;;  %v2163_v48 = vld [vmem:[#allocation8 + $0x60] sm:$0xff]  ;;  %v2164_v49 = vld [vmem:[#allocation8 + $0x68] sm:$0xff] }
 0x3dc   : > { %v1943_v29 = vmax.f32 %v1866_v14, 0.0  ;;  %v2202_v14 = vld [vmem:[#allocation8 + $0x198] sm:$0xff] }
 0x3dd   : > { %v1878_v52 = vpop.f32.mrf.mxu3  ;;  %v1867_v53 = vpop.f32.mrf.mxu2 }
 0x3de   : > { %v1947_v54 = vpack.c.bf16 %v1943_v29, %v1943_v29  ;;  %v2207_v29 = vld [vmem:[#allocation8 + $0x1c0] sm:$0xff]  ;;  %v2200_v53 = vld [vmem:[#allocation8 + $0x188] sm:$0xff] }
 0x3e0   : > { %v1995_v35 = vsel %vm519_vm2, %v1947_v54, 0  ;;  %v2205_v54 = vld [vmem:[#allocation8 + $0x1b0] sm:$0xff] }
 0x3e1   : > { %v1832_v55 = vpop.f32.mrf.mxu0  ;;  %2007 = vmatpush.bf16.msrb.mxu2 %v1995_v35 }
 0x3e2   : > { %v2160_v55 = vld [vmem:[#allocation8 + $0x48] sm:$0xff] }
 0x3e4   : > { %2580 = vmatmul.msk.bf16.vlgmr.msrb.gmra.mxu2 %vm515_vm3, %v1802_v25 }
 0x3e5   : > { %2068 = vmatpush.bf16.msra.mxu2 %v1995_v35  ;;  %v1880_v58 = vpop.f32.mrf.mxu3  ;;  %v1926_v34 = vpop.f32.mrf.mxu2  ;;  %v2159_v35 = vld [vmem:[#allocation8 + $0x40] sm:$0xff] }
 0x3e6   : > { %v2198_v58 = vld [vmem:[#allocation8 + $0x178] sm:$0xff] }
 0x3e7   : > { %v1843_v8 = vpop.f32.mrf.mxu1 }
 0x3e8   : > { %v1879_v50 = vadd.f32 %v1878_v52, %v1843_v8  ;;  %v2161_v52 = vld [vmem:[#allocation8 + $0x50] sm:$0xff] }
 0x3e9   : > { %v1897_v59 = vpop.f32.mrf.mxu0  ;;  %2255 = vmatpush.msrb.mxu2 %v2182_v56  ;;  %v2157_v8 = vld [vmem:[#allocation8 + $0x30] sm:$0xff]  ;;  %v2115_v56 = vld [vmem:[#allocation7 + $0xe0] sm:$0xff] }
 0x3ea   : > { %v1944_v60 = vmax.f32 %v1879_v50, 0.0  ;;  %v1927_v23 = vadd.f32 %v1926_v34, %v1897_v59  ;;  %v2203_v34 = vld [vmem:[#allocation8 + $0x1a0] sm:$0xff]  ;;  %v2158_v50 = vld [vmem:[#allocation8 + $0x38] sm:$0xff]  ;;  %v2196_v59 = vld [vmem:[#allocation8 + $0x168] sm:$0xff] }
 0x3eb   : > { %2256 = vmatpush.msrb.mxu2 %v2180_v11  ;;  %v2193_v11 = vld [vmem:[#allocation8 + $0x150] sm:$0xff] }
 0x3ec   : > { %v1948_v24 = vpack.c.bf16 %v1944_v60, %v1944_v60  ;;  %v1945_v31 = vmax.f32 %v1927_v23, 0.0  ;;  %v2201_v60 = vld [vmem:[#allocation8 + $0x190] sm:$0xff]  ;;  %v2155_v23 = vld [vmem:[#allocation8 + $0x20] sm:$0xff] }
 0x3ed   : > { %v1939_v12 = vpop.f32.mrf.mxu3  ;;  %v1928_v61 = vpop.f32.mrf.mxu2  ;;  %2257 = vmatpush.msrb.mxu2 %v2178_v38  ;;  %v2113_v38 = vld [vmem:[#allocation7 + $0xd0] sm:$0xff] }
 0x3ee   : > { %v1949_v32 = vpack.c.bf16 %v1945_v31, %v1945_v31  ;;  %v1998_v62 = vsel %vm519_vm2, %v1948_v24, 0  ;;  %v2156_v24 = vld [vmem:[#allocation8 + $0x28] sm:$0xff]  ;;  %v2194_v31 = vld [vmem:[#allocation8 + $0x158] sm:$0xff]  ;;  %v2153_v61 = vld [vmem:[#allocation8 + $0x10] sm:$0xff] }
 0x3ef   : > { %v1845_v63 = vpop.f32.mrf.mxu1  ;;  %2020 = vmatpush.bf16.msrb.mxu3 %v1998_v62  ;;  %2258 = vmatpush.msrb.mxu2 %v2176_v16  ;;  %v2192_v16 = vld [vmem:[#allocation8 + $0x148] sm:$0xff] }
 0x3f0   : > { %v1960_v1 = vsel %vm519_vm2, %v1949_v32, 0  ;;  %v2154_v32 = vld [vmem:[#allocation8 + $0x18] sm:$0xff]  ;;  %v2151_v63 = vld [vmem:[#allocation8] sm:$0xff] }
 0x3f1   : > { %1972 = vmatpush.bf16.msrb.mxu0 %v1960_v1  ;;  %v1899_v9 = vpop.f32.mrf.mxu0  ;;  %2259 = vmatpush.msrb.mxu2 %v2174_v22  ;;  %v2187_v22 = vld [vmem:[#allocation8 + $0x120] sm:$0xff] }
 0x3f2   : > { %2581 = vmatmul.msk.bf16.vlgmr.msrb.gmra.mxu3 %vm515_vm3, %v1802_v25  ;;  %v2213_v25 = vld [vmem:[#allocation8 + $0x1f0] sm:$0xff]  ;;  %v2195_v9 = vld [vmem:[#allocation8 + $0x160] sm:$0xff] }
 0x3f3   : > { %2081 = vmatpush.bf16.msra.mxu3 %v1998_v62  ;;  %2260 = vmatpush.msrb.mxu2 %v2172_v33  ;;  %v2197_v62 = vld [vmem:[#allocation8 + $0x170] sm:$0xff]  ;;  %v2186_v33 = vld [vmem:[#allocation8 + $0x118] sm:$0xff] }
 0x3f4   : > { %2578 = vmatmul.msk.bf16.vlgmr.msrb.gmra.mxu0 %vm515_vm3, %v1955_v7  ;;  %2584 = vmatmul.msk.bf16.vlgmr.msra.gmra.mxu2 %vm515_vm3, %v3499_v44 }
 0x3f5   : > { %2039 = vmatpush.bf16.msra.mxu0 %v1960_v1  ;;  %v1941_v13 = vpop.f32.mrf.mxu3  ;;  %2261 = vmatpush.msrb.mxu2 %v2170_v39  ;;  %v2152_v1 = vld [vmem:[#allocation8 + $0x8] sm:$0xff]  ;;  %v2106_v39 = vld [vmem:[#allocation7 + $0x98] sm:$0xff] }
 0x3f6   : > { %v2114_v13 = vld [vmem:[#allocation7 + $0xd8] sm:$0xff] }
 0x3f7   : > { %v1910_v19 = vpop.f32.mrf.mxu1  ;;  %2275 = vmatpush.msrb.mxu3 %v2214_v3  ;;  %2262 = vmatpush.msrb.mxu2 %v2168_v45  ;;  %v2190_v3 = vld [vmem:[#allocation8 + $0x138] sm:$0xff]  ;;  %v2148_v45 = vld [vmem:[#allocation7 + $0x1e8] sm:$0xff] }
 0x3f8   : > { %v1940_v4 = vadd.f32 %v1939_v12, %v1910_v19  ;;  %v2199_v12 = vld [vmem:[#allocation8 + $0x180] sm:$0xff]  ;;  %v2189_v19 = vld [vmem:[#allocation8 + $0x130] sm:$0xff] }
 0x3f9   : > { %2215 = vmatpush.msrb.mxu0 %v2181_v10  ;;  %2276 = vmatpush.msrb.mxu3 %v2212_v27  ;;  %v2118_v10 = vld [vmem:[#allocation7 + $0xf8] sm:$0xff]  ;;  %v2188_v27 = vld [vmem:[#allocation8 + $0x128] sm:$0xff] }
 0x3fa   : > { %v1946_v17 = vmax.f32 %v1940_v4, 0.0  ;;  %2263 = vmatpush.msrb.mxu2 %v2166_v57  ;;  %v2111_v4 = vld [vmem:[#allocation7 + $0xc0] sm:$0xff]  ;;  %v2145_v57 = vld [vmem:[#allocation7 + $0x1d0] sm:$0xff] }
 0x3fb   : > { %2216 = vmatpush.msrb.mxu0 %v2179_v37  ;;  %2277 = vmatpush.msrb.mxu3 %v2210_v28  ;;  %v2116_v37 = vld [vmem:[#allocation7 + $0xe8] sm:$0xff]  ;;  %v2109_v28 = vld [vmem:[#allocation7 + $0xb0] sm:$0xff] }
 0x3fc   : > { %v1950_v6 = vpack.c.bf16 %v1946_v17, %v1946_v17  ;;  %2264 = vmatpush.msrb.mxu2 %v2164_v49  ;;  %v2110_v17 = vld [vmem:[#allocation7 + $0xb8] sm:$0xff]  ;;  %v2143_v49 = vld [vmem:[#allocation7 + $0x1c0] sm:$0xff] }
 0x3fd   : > { %2217 = vmatpush.msrb.mxu0 %v2177_v15  ;;  %2278 = vmatpush.msrb.mxu3 %v2208_v5  ;;  %v2191_v15 = vld [vmem:[#allocation8 + $0x140] sm:$0xff] }
 0x3fe   : > { %v1963_v40 = vsel %vm519_vm2, %v1950_v6, 0  ;;  %v2107_v5 = vld [vmem:[#allocation7 + $0xa0] sm:$0xff]  ;;  %v2108_v6 = vld [vmem:[#allocation7 + $0xa8] sm:$0xff] }
 0x3ff   : > { %2218 = vmatpush.msrb.mxu0 %v2175_v21  ;;  %v1912_v43 = vpop.f32.mrf.mxu1  ;;  %1985 = vmatpush.bf16.msrb.mxu1 %v1963_v40  ;;  %v2112_v21 = vld [vmem:[#allocation7 + $0xc8] sm:$0xff] }
 0x400   : > { %2279 = vmatpush.msrb.mxu3 %v2206_v42  ;;  %v2149_v42 = vld [vmem:[#allocation7 + $0x1f0] sm:$0xff]  ;;  %v2150_v43 = vld [vmem:[#allocation7 + $0x1f8] sm:$0xff] }
 0x401   : > { %2219 = vmatpush.msrb.mxu0 %v2173_v18  ;;  %v2185_v18 = vld [vmem:[#allocation8 + $0x110] sm:$0xff] }
 0x402   : > { %2579 = vmatmul.msk.bf16.vlgmr.msrb.gmra.mxu1 %vm515_vm3, %v1955_v7  ;;  %2585 = vmatmul.msk.bf16.vlgmr.msra.gmra.mxu3 %vm515_vm3, %v3499_v44  ;;  %v2162_v44 = vld [vmem:[#allocation8 + $0x58] sm:$0xff]  ;;  %v2117_v7 = vld [vmem:[#allocation7 + $0xf0] sm:$0xff] }
 0x403   : > { %2220 = vmatpush.msrb.mxu0 %v2171_v36  ;;  %2052 = vmatpush.bf16.msra.mxu1 %v1963_v40  ;;  %v2105_v36 = vld [vmem:[#allocation7 + $0x90] sm:$0xff]  ;;  %v2183_v40 = vld [vmem:[#allocation8 + $0x100] sm:$0xff] }
 0x404   : > { %2582 = vmatmul.msk.bf16.vlgmr.msra.gmra.mxu0 %vm515_vm3, %v3520_v26  ;;  %2280 = vmatpush.msrb.mxu3 %v2204_v47  ;;  %v2146_v47 = vld [vmem:[#allocation7 + $0x1d8] sm:$0xff] }
 0x405   : > { %2221 = vmatpush.msrb.mxu0 %v2169_v41  ;;  %2265 = vmatpush.msrb.mxu2 %v2162_v44  ;;  %v2184_v41 = vld [vmem:[#allocation8 + $0x108] sm:$0xff]  ;;  %v2141_v44 = vld [vmem:[#allocation7 + $0x1b0] sm:$0xff] }
 0x406   : > { %2281 = vmatpush.msrb.mxu3 %v2202_v14  ;;  %v2144_v14 = vld [vmem:[#allocation7 + $0x1c8] sm:$0xff] }
 0x407   : > { %2235 = vmatpush.msrb.mxu1 %v2213_v25  ;;  %2222 = vmatpush.msrb.mxu0 %v2167_v0  ;;  %v2103_v25 = vld [vmem:[#allocation7 + $0x80] sm:$0xff]  ;;  %v2104_v0 = vld [vmem:[#allocation7 + $0x88] sm:$0xff] }
 0x408   : > { %2282 = vmatpush.msrb.mxu3 %v2200_v53  ;;  %2266 = vmatpush.msrb.mxu2 %v2160_v55  ;;  %v2142_v53 = vld [vmem:[#allocation7 + $0x1b8] sm:$0xff]  ;;  %v2139_v55 = vld [vmem:[#allocation7 + $0x1a0] sm:$0xff] }
 0x409   : > { %2236 = vmatpush.msrb.mxu1 %v2211_v46  ;;  %2223 = vmatpush.msrb.mxu0 %v2165_v30  ;;  %v2101_v46 = vld [vmem:[#allocation7 + $0x70] sm:$0xff]  ;;  %v2102_v30 = vld [vmem:[#allocation7 + $0x78] sm:$0xff] }
 0x40a   : > { %2283 = vmatpush.msrb.mxu3 %v2198_v58  ;;  %2267 = vmatpush.msrb.mxu2 %v2158_v50  ;;  %v2140_v58 = vld [vmem:[#allocation7 + $0x1a8] sm:$0xff]  ;;  %v2137_v50 = vld [vmem:[#allocation7 + $0x190] sm:$0xff] }
 0x40b   : > { %2237 = vmatpush.msrb.mxu1 %v2209_v2  ;;  %2224 = vmatpush.msrb.mxu0 %v2163_v48  ;;  %v2099_v2 = vld [vmem:[#allocation7 + $0x60] sm:$0xff]  ;;  %v2100_v48 = vld [vmem:[#allocation7 + $0x68] sm:$0xff] }
 0x40c   : > { %2284 = vmatpush.msrb.mxu3 %v2196_v59  ;;  %2268 = vmatpush.msrb.mxu2 %v2156_v24  ;;  %v2138_v59 = vld [vmem:[#allocation7 + $0x198] sm:$0xff]  ;;  %v2092_v24 = vld [vmem:[#allocation7 + $0x28] sm:$0xff] }
 0x40d   : > { %2238 = vmatpush.msrb.mxu1 %v2207_v29  ;;  %2225 = vmatpush.msrb.mxu0 %v2161_v52  ;;  %v2097_v29 = vld [vmem:[#allocation7 + $0x50] sm:$0xff]  ;;  %v2098_v52 = vld [vmem:[#allocation7 + $0x58] sm:$0xff] }
 0x40e   : > { %2285 = vmatpush.msrb.mxu3 %v2194_v31  ;;  %2269 = vmatpush.msrb.mxu2 %v2154_v32  ;;  %v2135_v31 = vld [vmem:[#allocation7 + $0x180] sm:$0xff]  ;;  %v2090_v32 = vld [vmem:[#allocation7 + $0x18] sm:$0xff] }
 0x40f   : > { %2239 = vmatpush.msrb.mxu1 %v2205_v54  ;;  %2226 = vmatpush.msrb.mxu0 %v2159_v35  ;;  %v2095_v54 = vld [vmem:[#allocation7 + $0x40] sm:$0xff]  ;;  %v2096_v35 = vld [vmem:[#allocation7 + $0x48] sm:$0xff] }
 0x410   : > { %2270 = vmatpush.msrb.mxu2 %v2152_v1  ;;  %2286 = vmatpush.msrb.mxu3 %v2192_v16  ;;  %v2087_v1 = vld [vmem:[#allocation7] sm:$0xff]  ;;  %v2125_v16 = vld [vmem:[#allocation7 + $0x130] sm:$0xff] }
 0x411   : > { %2240 = vmatpush.msrb.mxu1 %v2203_v34  ;;  %2227 = vmatpush.msrb.mxu0 %v2157_v8  ;;  %v2093_v34 = vld [vmem:[#allocation7 + $0x30] sm:$0xff]  ;;  %v2094_v8 = vld [vmem:[#allocation7 + $0x38] sm:$0xff] }
 0x412   : > { %2583 = vmatmul.msk.bf16.vlgmr.msra.gmra.mxu1 %vm515_vm3, %v3520_v26  ;;  %2335 = vmatpush.msra.mxu2 %v2118_v10  ;;  %v2147_v26 = vld [vmem:[#allocation7 + $0x1e0] sm:$0xff]  ;;  %v2132_v10 = vld [vmem:[#allocation7 + $0x168] sm:$0xff] }
 0x413   : > { %2241 = vmatpush.msrb.mxu1 %v2201_v60  ;;  %2228 = vmatpush.msrb.mxu0 %v2155_v23  ;;  %v2091_v60 = vld [vmem:[#allocation7 + $0x20] sm:$0xff] }
 0x414   : > { %2336 = vmatpush.msra.mxu2 %v2116_v37  ;;  %2287 = vmatpush.msrb.mxu3 %v2190_v3  ;;  %v2123_v3 = vld [vmem:[#allocation7 + $0x120] sm:$0xff] }
 0x415   : > { %2242 = vmatpush.msrb.mxu1 %v2199_v12  ;;  %2229 = vmatpush.msrb.mxu0 %v2153_v61  ;;  %v2136_v12 = vld [vmem:[#allocation7 + $0x188] sm:$0xff]  ;;  %v2089_v61 = vld [vmem:[#allocation7 + $0x10] sm:$0xff] }
 0x416   : > { %2337 = vmatpush.msra.mxu2 %v2114_v13  ;;  %2288 = vmatpush.msrb.mxu3 %v2188_v27  ;;  %v2128_v13 = vld [vmem:[#allocation7 + $0x148] sm:$0xff]  ;;  %v2122_v27 = vld [vmem:[#allocation7 + $0x118] sm:$0xff] }
 0x417   : > { %2243 = vmatpush.msrb.mxu1 %v2197_v62  ;;  %2230 = vmatpush.msrb.mxu0 %v2151_v63  ;;  %v2133_v62 = vld [vmem:[#allocation7 + $0x170] sm:$0xff]  ;;  %v2134_v63 = vld [vmem:[#allocation7 + $0x178] sm:$0xff] }
 0x418   : > { %2338 = vmatpush.msra.mxu2 %v2112_v21  ;;  %2289 = vmatpush.msrb.mxu3 %v2186_v33  ;;  %v2121_v21 = vld [vmem:[#allocation7 + $0x110] sm:$0xff] }
 0x419   : > { %2295 = vmatpush.msra.mxu0 %v2117_v7  ;;  %2244 = vmatpush.msrb.mxu1 %v2195_v9  ;;  %v2088_v7 = vld [vmem:[#allocation7 + $0x8] sm:$0xff]  ;;  %v2131_v9 = vld [vmem:[#allocation7 + $0x160] sm:$0xff] }
 0x41a   : > { %2339 = vmatpush.msra.mxu2 %v2110_v17  ;;  %2290 = vmatpush.msrb.mxu3 %v2184_v41 }
 0x41b   : > { %2296 = vmatpush.msra.mxu0 %v2115_v56  ;;  %2245 = vmatpush.msrb.mxu1 %v2193_v11  ;;  %v2129_v56 = vld [vmem:[#allocation7 + $0x150] sm:$0xff]  ;;  %v2130_v11 = vld [vmem:[#allocation7 + $0x158] sm:$0xff] }
 0x41c   : > { %2340 = vmatpush.msra.mxu2 %v2108_v6  ;;  %2355 = vmatpush.msra.mxu3 %v2150_v43 }
 0x41d   : > { %2297 = vmatpush.msra.mxu0 %v2113_v38  ;;  %2246 = vmatpush.msrb.mxu1 %v2191_v15  ;;  %v2127_v38 = vld [vmem:[#allocation7 + $0x140] sm:$0xff] }
 0x41e   : > { %2341 = vmatpush.msra.mxu2 %v2106_v39  ;;  %2356 = vmatpush.msra.mxu3 %v2148_v45 }
 0x41f   : > { %2298 = vmatpush.msra.mxu0 %v2111_v4  ;;  %2247 = vmatpush.msrb.mxu1 %v2189_v19  ;;  %v2126_v19 = vld [vmem:[#allocation7 + $0x138] sm:$0xff]  ;;  %v2124_v4 = vld [vmem:[#allocation7 + $0x128] sm:$0xff] }
 0x420   : > { %2342 = vmatpush.msra.mxu2 %v2104_v0  ;;  %2357 = vmatpush.msra.mxu3 %v2146_v47 }
 0x421   : > { %2299 = vmatpush.msra.mxu0 %v2109_v28  ;;  %2248 = vmatpush.msrb.mxu1 %v2187_v22  ;;  %v2119_v28 = vld [vmem:[#allocation7 + $0x100] sm:$0xff] }
 0x422   : > { %2343 = vmatpush.msra.mxu2 %v2102_v30  ;;  %2358 = vmatpush.msra.mxu3 %v2144_v14 }
 0x423   : > { %2300 = vmatpush.msra.mxu0 %v2107_v5  ;;  %2249 = vmatpush.msrb.mxu1 %v2185_v18  ;;  %v2120_v18 = vld [vmem:[#allocation7 + $0x108] sm:$0xff] }
 0x424   : > { %2344 = vmatpush.msra.mxu2 %v2100_v48  ;;  %2359 = vmatpush.msra.mxu3 %v2142_v53 }
 0x425   : > { %2301 = vmatpush.msra.mxu0 %v2105_v36  ;;  %2250 = vmatpush.msrb.mxu1 %v2183_v40 }
 0x426   : > { %2345 = vmatpush.msra.mxu2 %v2098_v52  ;;  %2360 = vmatpush.msra.mxu3 %v2140_v58  ;;  %v2377_v52 = vld.sshfl [vmem:[#allocation1 + $0x8] sm:$0xff pattern:$0x75316420] }
 0x427   : > { %2315 = vmatpush.msra.mxu1 %v2149_v42  ;;  %2302 = vmatpush.msra.mxu0 %v2103_v25 }
 0x428   : > { %2346 = vmatpush.msra.mxu2 %v2096_v35  ;;  %2361 = vmatpush.msra.mxu3 %v2138_v59 }
 0x429   : > { %2316 = vmatpush.msra.mxu1 %v2147_v26  ;;  %2303 = vmatpush.msra.mxu0 %v2101_v46 }
 0x42a   : > { %2347 = vmatpush.msra.mxu2 %v2094_v8  ;;  %2362 = vmatpush.msra.mxu3 %v2136_v12 }
 0x42b   : > { %2317 = vmatpush.msra.mxu1 %v2145_v57  ;;  %2304 = vmatpush.msra.mxu0 %v2099_v2 }
 0x42c   : > { %2348 = vmatpush.msra.mxu2 %v2092_v24  ;;  %2363 = vmatpush.msra.mxu3 %v2134_v63 }
 0x42d   : > { %2318 = vmatpush.msra.mxu1 %v2143_v49  ;;  %2305 = vmatpush.msra.mxu0 %v2097_v29 }
 0x42e   : > { %2349 = vmatpush.msra.mxu2 %v2090_v32  ;;  %2364 = vmatpush.msra.mxu3 %v2132_v10 }
 0x42f   : > { %2319 = vmatpush.msra.mxu1 %v2141_v44  ;;  %2306 = vmatpush.msra.mxu0 %v2095_v54 }
 0x430   : > { %2350 = vmatpush.msra.mxu2 %v2088_v7  ;;  %2365 = vmatpush.msra.mxu3 %v2130_v11 }
 0x431   : > { %2320 = vmatpush.msra.mxu1 %v2139_v55  ;;  %2307 = vmatpush.msra.mxu0 %v2093_v34  ;;  %v2376_v55 = vld.sshfl [vmem:[#allocation1] sm:$0xff pattern:$0x75316420]  ;;  %v2381_v34 = vadd.f32 %v2377_v52, %v3485_v51 }
 0x432   : > { %2366 = vmatpush.msra.mxu3 %v2128_v13  ;;  %v2380_v59 = vadd.f32 %v2376_v55, %v3483_v20 }
 0x433   : > { %2321 = vmatpush.msra.mxu1 %v2137_v50  ;;  %2308 = vmatpush.msra.mxu0 %v2091_v60 }
 0x434   : > { %2367 = vmatpush.msra.mxu3 %v2126_v19 }
 0x435   : > { %2322 = vmatpush.msra.mxu1 %v2135_v31  ;;  %2309 = vmatpush.msra.mxu0 %v2089_v61 }
 0x436   : > { %2368 = vmatpush.msra.mxu3 %v2124_v4 }
 0x437   : > { %2323 = vmatpush.msra.mxu1 %v2133_v62  ;;  %2310 = vmatpush.msra.mxu0 %v2087_v1 }
 0x438   : > { %2369 = vmatpush.msra.mxu3 %v2122_v27 }
 0x439   : > { %2324 = vmatpush.msra.mxu1 %v2131_v9 }
 0x43a   : > { %2370 = vmatpush.msra.mxu3 %v2120_v18 }
 0x43b   : > { %2325 = vmatpush.msra.mxu1 %v2129_v56 }
 0x43d   : > { %2326 = vmatpush.msra.mxu1 %v2127_v38 }
 0x43f   : > { %2327 = vmatpush.msra.mxu1 %v2125_v16 }
 0x441   : > { %2328 = vmatpush.msra.mxu1 %v2123_v3 }
 0x443   : > { %2329 = vmatpush.msra.mxu1 %v2121_v21 }
 0x445   : > { %2330 = vmatpush.msra.mxu1 %v2119_v28 }
 0x467   : > { %v3529_v23 = vpop.f32.mrf.mxu2 }
 0x46f   : > { %v2011_v37 = vpop.f32.mrf.mxu2 }
 0x471   : > { %v1974_v15 = vpop.f32.mrf.mxu0 }
 0x472   : > { %v2010_v25 = vadd.f32 %v3529_v23, %v1974_v15 }
 0x475   : > { %v2022_v22 = vpop.f32.mrf.mxu3 }
 0x477   : > { %v2070_v17 = vpop.f32.mrf.mxu2 }
 0x479   : > { %v1976_v33 = vpop.f32.mrf.mxu0 }
 0x47d   : > { %v2024_v5 = vpop.f32.mrf.mxu3 }
 0x47f   : > { %v1987_v6 = vpop.f32.mrf.mxu1  ;;  %v2072_v36 = vpop.f32.mrf.mxu2 }
 0x480   : > { %v2023_v30 = vadd.f32 %v2022_v22, %v1987_v6 }
 0x481   : > { %v2041_v39 = vpop.f32.mrf.mxu0 }
 0x482   : > { %v2071_v40 = vadd.f32 %v2070_v17, %v2041_v39 }
 0x484   : > { %2231 = vmatmul.f32.vlgmr.msrb.gmra.mxu0 %v2071_v40  ;;  %2271 = vmatmul.f32.vlgmr.msrb.gmra.mxu2 %v2071_v40 }
 0x485   : > { %v2083_v41 = vpop.f32.mrf.mxu3 }
 0x487   : > { %v1989_v42 = vpop.f32.mrf.mxu1 }
 0x489   : > { %v2043_v43 = vpop.f32.mrf.mxu0 }
 0x48c   : > { %2311 = vmatmul.f32.vlgmr.msra.gmra.mxu0 %v2010_v25  ;;  %2351 = vmatmul.f32.vlgmr.msra.gmra.mxu2 %v2010_v25 }
 0x48d   : > { %v2085_v0 = vpop.f32.mrf.mxu3 }
 0x48f   : > { %v2054_v26 = vpop.f32.mrf.mxu1 }
 0x490   : > { %v2084_v45 = vadd.f32 %v2083_v41, %v2054_v26 }
 0x492   : > { %2251 = vmatmul.f32.vlgmr.msrb.gmra.mxu1 %v2084_v45  ;;  %2291 = vmatmul.f32.vlgmr.msrb.gmra.mxu3 %v2084_v45 }
 0x497   : > { %v2056_v46 = vpop.f32.mrf.mxu1 }
 0x49a   : > { %2331 = vmatmul.f32.vlgmr.msra.gmra.mxu1 %v2023_v30  ;;  %2371 = vmatmul.f32.vlgmr.msra.gmra.mxu3 %v2023_v30 }
 0x501   : > { %v2232_v57 = vpop.f32.mrf.mxu0 }
 0x507   : > { %v2272_v47 = vpop.f32.mrf.mxu2 }
 0x509   : > { %v2312_v29 = vpop.f32.mrf.mxu0 }
 0x50f   : > { %v2252_v2 = vpop.f32.mrf.mxu1  ;;  %v2352_v44 = vpop.f32.mrf.mxu2 }
 0x510   : > { %v2253_v49 = vadd.f32 %v2252_v2, %v2232_v57 }
 0x512   : > { %v2313_v54 = vadd.f32 %v2312_v29, %v2253_v49 }
 0x515   : > { %v2292_v48 = vpop.f32.mrf.mxu3 }
 0x516   : > { %v2293_v14 = vadd.f32 %v2292_v48, %v2272_v47 }
 0x517   : > { %v2332_v53 = vpop.f32.mrf.mxu1 }
 0x518   : > { %v2353_v35 = vadd.f32 %v2352_v44, %v2293_v14  ;;  %v2333_v8 = vadd.f32 %v2332_v53, %v2313_v54 }
 0x51a   : > { %v2382_v23 = vadd.f32 %v2380_v59, %v2333_v8 }
 0x51d   : > { %v2372_v58 = vpop.f32.mrf.mxu3 }
 0x51e   : > { %v2373_v50 = vadd.f32 %v2372_v58, %v2353_v35 }
 0x520   : > { %v2383_v60 = vadd.f32 %v2381_v34, %v2373_v50 }
 0x522   : > { %v2386_v24 = vrot.slane %v2383_v60, 4 }
 0x524   : > { %v2388_v31 = vsel %vm2387_vm10, %v2382_v23, %v2386_v24 }
 0x525   : > { %2390 = vst [vmem:[%s435_s17] sm:$0xff] %v2388_v31 }
 0x526   : > { %2873 = shalt.err (!%p2870_p8)
}
 0x527   : > { %2613 = dma.vmem_to_hbm [thread:$0]  (%p3033_p5), %s2406_s4, 128, %s2408_s15, %s2392_s19  }
 0x528 PF: > { %p2645_p9 = scmp.ge.s32.totalorder %s2920_s16, 2  ;;  %s2419_s29 = sand.u32 1, %s2908_s13  }
 0x529   : > { %s2420_s18 = scalar_lea.sflag [#allocation4], %s2419_s29 }
 0x52a   : > { %p2632_p10 = pnand %p2645_p9, %p3037_p6 }
 0x52c   : > { %p2633_p11 = pneg %p2632_p10 }
 0x52e   : > { %2903 = dma.done.wait (%p2633_p11), %s2420_s18, 128  }
 0x52f   : > { %2905 = vsyncadd (%p2633_p11), %s2420_s18, 4294967168  ;;  %s3594_s16 = sld [smem:[#allocation17_spill]]  ;;  %s3597_s13 = smov %s2912_s14 }
 0x530   : > { %s3595_s30 = sld [smem:[#allocation16_spill]] }
 0x531   : > { %s3596_s15 = sld [smem:[#allocation18_spill]] }
 0x535   : > { %p23_p12 = scmp.ge.s32.totalorder %s3594_s16, 4  }
 0x536   : > { %s3598_s14 = smov %s3595_s30 }
 0x537   :  { %25 = sbr.rel (!%p23_p12) target bundleno = 9 (0x9), region = 116 }
 0x53c   :  { %2426 = vsyncpa [#allocation3], 1 }
 0x53d   :  { %2428 = vsyncpa [#allocation3 + $0x1], 1 }
 0x53e   :  { %2429 = vsyncpa [#allocation6], 1 }
 0x53f   :  { %2430 = vsyncpa [#allocation9], 1 }
 0x540   :  { %2431 = vsyncpa [#allocation4], 1 }
 0x541   :  { %2433 = vsyncpa [#allocation4 + $0x1], 1 }

</bundles_post_ra>
